<compile_context>
chip_gen: v6e
topology: v6e:2x2x1
jax: 0.10.0
libtpu: 0.0.40
codegen_flags: <defaults>
</compile_context>

<pallas_src>
import functools
import math

import jax
import jax.numpy as jnp
from jax import lax
from jax.experimental import pallas as pl
from jax.experimental.pallas import tpu as pltpu


def _round_up(x, m):
    return ((x + m - 1) // m) * m


# ----------------------------------------------------------------------------
# Fused kernel: LSTM recurrence + multi-head self-attention + residual +
# LayerNorm + mean pooling + hidden->embedding projection + item scores.
# All feature dims are pre-padded to 128 lanes; batch is padded to 8 sublanes.
# ----------------------------------------------------------------------------
def _fused_kernel(emb_ref, mask_ref, wih_ref, whh_ref, b_ref,
                  wq_ref, bq_ref, wk_ref, bk_ref, wv_ref, bv_ref,
                  wo_ref, bo_ref, ln_g_ref, ln_b_ref,
                  wh2e_ref, bh2e_ref, item_t_ref,
                  scores_ref, gx_ref, *, num_heads, true_hidden):
    Bp, S = mask_ref.shape                  # padded batch (mult of 8), seq len
    Hp = whh_ref.shape[0]                   # hidden padded to 128 lanes
    HB = wq_ref.shape[1] // num_heads       # per-head lane block (128)
    hd = true_hidden // num_heads           # TRUE head dim -> softmax scale
    scale = 1.0 / math.sqrt(hd)
    f32 = jnp.float32

    # ---- LSTM: input-to-hidden part hoisted out of the recurrence ----------
    # One lane-dense (S*Bp, Ep) @ (Ep, 4*Hp) matmul + bias, done once.
    gx_ref[...] = (jnp.dot(emb_ref[...], wih_ref[...],
                           preferred_element_type=f32) + b_ref[...])  # (S*Bp, 4Hp)

    # TODO(synk): keep Whh resident in the MXU across the unrolled recurrence
    # via pltpu.matmul_push_rhs / matmul_acc_lhs / matmul_pop.
    whh = whh_ref[...]
    h = jnp.zeros((Bp, Hp), f32)
    c = jnp.zeros((Bp, Hp), f32)
    hs = []
    for t in range(S):                      # S static & small -> fully unrolled
        g = gx_ref[t * Bp:(t + 1) * Bp, :] + jnp.dot(
            h, whh, preferred_element_type=f32)                       # (Bp, 4Hp)
        act = jax.nn.sigmoid(g)             # ONE wide EUP op covers i, f, o
        i_g = act[:, 0 * Hp:1 * Hp]         # 128-lane aligned gate slices
        f_g = act[:, 1 * Hp:2 * Hp]
        g_g = jnp.tanh(g[:, 2 * Hp:3 * Hp])
        o_g = act[:, 3 * Hp:4 * Hp]
        c = f_g * c + i_g * g_g
        h = o_g * jnp.tanh(c)
        hs.append(h)                        # register resident, written once below

    # pad_packed_sequence emulation: zero padded steps, once, vectorized.
    mask = mask_ref[...]                                              # (Bp, S)
    x_bsh = jnp.stack(hs, axis=1) * mask[:, :, None]                  # (Bp, S, Hp)
    x2 = x_bsh.reshape(Bp * S, Hp)          # leading-dim merge: no data movement

    # ---- fused QKV projections; heads in independent 128-lane blocks -------
    q = jnp.dot(x2, wq_ref[...], preferred_element_type=f32) + bq_ref[...]
    k = jnp.dot(x2, wk_ref[...], preferred_element_type=f32) + bk_ref[...]
    v = jnp.dot(x2, wv_ref[...], preferred_element_type=f32) + bv_ref[...]

    key_valid = mask[:, None, :] > 0.0                                # (Bp, 1, S)
    heads = []
    for n in range(num_heads):              # tiny static loop, vreg-aligned slices
        sl = slice(n * HB, (n + 1) * HB)
        q_n = q[:, sl].reshape(Bp, S, HB)
        k_n = k[:, sl].reshape(Bp, S, HB)
        v_n = v[:, sl].reshape(Bp, S, HB)
        s_n = jnp.einsum('bqd,bkd->bqk', q_n, k_n,
                         preferred_element_type=f32) * scale          # (Bp, S, S)
        s_n = jnp.where(key_valid, s_n, -1e30)    # finite fill: no NaN risk
        s_n = s_n - jnp.max(s_n, axis=-1, keepdims=True)
        p_n = jnp.exp(s_n)
        p_n = p_n / jnp.sum(p_n, axis=-1, keepdims=True)   # exact softmax
        heads.append(jnp.einsum('bqk,bkd->bqd', p_n, v_n,
                                preferred_element_type=f32))          # (Bp, S, HB)
    # lane-block concat of full 128-wide head blocks (no lane interleave)
    w_cat = jnp.concatenate(heads, axis=-1).reshape(Bp * S, num_heads * HB)

    # ---- single output projection + residual + LayerNorm -------------------
    resid = (jnp.dot(w_cat, wo_ref[...], preferred_element_type=f32)
             + bo_ref[...] + x2)                                      # (Bp*S, Hp)
    # Padding lanes of resid are exactly zero; normalize with the TRUE H.
    inv_h = 1.0 / true_hidden
    mu = jnp.sum(resid, axis=-1, keepdims=True) * inv_h
    var = jnp.sum(resid * resid, axis=-1, keepdims=True) * inv_h - mu * mu
    mh = (resid - mu) * lax.rsqrt(var + 1e-5) * ln_g_ref[...] + ln_b_ref[...]

    # ---- mean pool over sequence, project to embedding dim, score items ----
    pooled = jnp.mean(mh.reshape(Bp, S, Hp), axis=1)                  # (Bp, Hp)
    emb_out = (jnp.dot(pooled, wh2e_ref[...], preferred_element_type=f32)
               + bh2e_ref[...])                                       # (Bp, Ep)
    # TODO(synk): for large catalogues grid this matmul over item-lane tiles
    # (parallel axis -> both v7x TensorCores) and stream item_t_pad from HBM.
    scores_ref[...] = jnp.dot(emb_out, item_t_ref[...],
                              preferred_element_type=f32)             # (Bp, n_pad)


# ----------------------------------------------------------------------------
# Wrapper (embedding gather + mask construction in plain JAX, one pallas_call)
# ----------------------------------------------------------------------------
def lstm_attention_forward(x, lengths, params, num_heads):
    """x: (S, B) int32 item ids; lengths: python list (sorted descending)."""
    # TODO(synk): bucket max_len to a few static sizes in production to avoid
    # recompiling the fully-unrolled kernel for every distinct max(lengths).
    max_len = int(max(lengths))
    x = x[:max_len]
    S, B = x.shape
    Bp = _round_up(B, 8)                    # pad batch to a sublane multiple
    H = params['whh_t'].shape[0]            # true hidden size
    Hp = params['whh_p'].shape[0]
    Ep = params['emb_pad'].shape[1]
    nh = num_heads
    HB = params['wq_p'].shape[1] // nh

    lengths_arr = jnp.zeros((Bp,), jnp.int32).at[:B].set(
        jnp.asarray(lengths, jnp.int32))
    x_p = jnp.zeros((S, Bp), jnp.int32).at[:, :B].set(x)   # pad ids with 0

    # Embedding lookup (padding_idx=0 row is zero); dropout = identity (eval).
    emb2 = jnp.take(params['emb_pad'], x_p.reshape(-1), axis=0
                    ).astype(jnp.float32)                             # (S*Bp, Ep)
    # Validity mask from lengths (equivalent to sum(lstm_out,-1)!=0 of the spec).
    mask = (jnp.arange(S, dtype=jnp.int32)[None, :]
            < lengths_arr[:, None]).astype(jnp.float32)               # (Bp, S)

    item_t_pad = params['item_t_pad']
    n_pad = item_t_pad.shape[1]

    kernel = functools.partial(_fused_kernel, num_heads=nh, true_hidden=H)
    inputs = (emb2, mask,
              params['wih_p'], params['whh_p'], params['lstm_b_p'],
              params['wq_p'], params['bq_p'], params['wk_p'], params['bk_p'],
              params['wv_p'], params['bv_p'], params['wo_p'], params['bo_p'],
              params['ln_g_p'], params['ln_b_p'],
              params['wh2e_p'], params['bh2e_p'], item_t_pad)

    flops = int(
        2 * S * Bp * Ep * 4 * Hp            # hoisted input gates
        + 2 * S * Bp * Hp * 4 * Hp          # recurrent gates
        + 3 * 2 * Bp * S * Hp * nh * HB     # q, k, v projections
        + nh * 4 * Bp * S * S * HB          # scores + weighted values
        + 2 * Bp * S * nh * HB * Hp         # output projection
        + 2 * Bp * Hp * Ep                  # hidden -> embedding
        + 2 * Bp * Ep * n_pad)              # item scores
    transcendentals = int(S * Bp * 6 * Hp + nh * Bp * S * S)
    bytes_accessed = int(4 * (sum(int(a.size) for a in inputs) + Bp * n_pad))

    scores_pad = pl.pallas_call(
        kernel,
        out_shape=jax.ShapeDtypeStruct((Bp, n_pad), jnp.float32),
        in_specs=[pl.BlockSpec(memory_space=pltpu.MemorySpace.VMEM)] * len(inputs),
        out_specs=pl.BlockSpec(memory_space=pltpu.MemorySpace.VMEM),
        scratch_shapes=[pltpu.VMEM((S * Bp, 4 * Hp), jnp.float32)],  # hoisted gates
        cost_estimate=pl.CostEstimate(flops=flops,
                                      transcendentals=transcendentals,
                                      bytes_accessed=bytes_accessed),
    )(*inputs)
    return scores_pad[:B, :params['n_items']]


# ----------------------------------------------------------------------------
# Deterministic parameter initialization (shapes from the module's __init__)
# plus lane-aligned, zero-padded copies for the kernel.
# ----------------------------------------------------------------------------
def init_params(key, n_items, hidden_size, embedding_dim, num_heads):
    H, E, N, nh = hidden_size, embedding_dim, n_items, num_heads
    hd = H // nh
    Hp = _round_up(H, 128)
    Ep = _round_up(E, 128)
    HB = _round_up(hd, 128)                # per-head lane block
    f32 = jnp.float32

    keys = jax.random.split(key, 16)
    ku = lambda k, shape, bound: jax.random.uniform(k, shape, f32, -bound, bound)

    emb = jax.random.normal(keys[0], (N, E), f32)
    emb = emb.at[0].set(0.0)               # padding_idx = 0

    kl = 1.0 / math.sqrt(H)
    w_ih = ku(keys[1], (4 * H, E), kl)
    w_hh = ku(keys[2], (4 * H, H), kl)
    b_ih = ku(keys[3], (4 * H,), kl)
    b_hh = ku(keys[4], (4 * H,), kl)

    wq = ku(keys[5], (H, H), kl); bq = ku(keys[6], (H,), kl)
    wk = ku(keys[7], (H, H), kl); bk = ku(keys[8], (H,), kl)
    wv = ku(keys[9], (H, H), kl); bv = ku(keys[10], (H,), kl)
    wo = ku(keys[11], (H, H), kl); bo = ku(keys[12], (H,), kl)

    ln_g = jnp.ones((H,), f32)
    ln_b = jnp.zeros((H,), f32)

    wh2e = ku(keys[13], (E, H), kl)        # hidden_to_embedding
    bh2e = ku(keys[14], (E,), kl)
    # embedding_to_hidden is unused in forward() -> not materialized.

    item_t = emb.T                         # (E, N) item embedding table
    n_pad = _round_up(N, 128)              # lane-dense scores output
    lstm_b = b_ih + b_hh

    def pad2(a, rows, cols):
        return jnp.zeros((rows, cols), f32).at[:a.shape[0], :a.shape[1]].set(a)

    # gate-block padded LSTM weights: gates i|f|g|o each get a 128-lane block
    wih_p = (jnp.zeros((Ep, 4, Hp), f32)
             .at[:E, :, :H].set(w_ih.T.reshape(E, 4, H)).reshape(Ep, 4 * Hp))
    whh_p = (jnp.zeros((Hp, 4, Hp), f32)
             .at[:H, :, :H].set(w_hh.T.reshape(H, 4, H)).reshape(Hp, 4 * Hp))
    lstm_b_p = (jnp.zeros((4, Hp), f32)
                .at[:, :H].set(lstm_b.reshape(4, H)).reshape(1, 4 * Hp))

    # head-block padded attention weights: each head gets its own 128-lane block
    def head_w(w):                         # torch Linear weight (H_out, H_in)
        return (jnp.zeros((Hp, nh, HB), f32)
                .at[:H, :, :hd].set(w.T.reshape(H, nh, hd)).reshape(Hp, nh * HB))

    def head_b(b):
        return (jnp.zeros((nh, HB), f32)
                .at[:, :hd].set(b.reshape(nh, hd)).reshape(1, nh * HB))

    wo_p = (jnp.zeros((nh, HB, Hp), f32)
            .at[:, :hd, :H].set(wo.T.reshape(nh, hd, H)).reshape(nh * HB, Hp))

    return dict(
        # ---- unpadded (used by the pure-JAX reference) ----
        emb=emb, n_items=N,
        wih_t=w_ih.T, whh_t=w_hh.T, lstm_b=lstm_b.reshape(1, 4 * H),
        wq_t=wq.T, bq=bq.reshape(1, H),
        wk_t=wk.T, bk=bk.reshape(1, H),
        wv_t=wv.T, bv=bv.reshape(1, H),
        wo_t=wo.T, bo=bo.reshape(1, H),
        ln_g=ln_g.reshape(1, H), ln_b=ln_b.reshape(1, H),
        wh2e_t=wh2e.T, bh2e=bh2e.reshape(1, E),
        item_t=item_t,
        # ---- padded / lane-aligned (used by the kernel) ----
        emb_pad=pad2(emb, N, Ep),
        wih_p=wih_p, whh_p=whh_p, lstm_b_p=lstm_b_p,
        wq_p=head_w(wq), bq_p=head_b(bq),
        wk_p=head_w(wk), bk_p=head_b(bk),
        wv_p=head_w(wv), bv_p=head_b(bv),
        wo_p=wo_p, bo_p=pad2(bo.reshape(1, H), 1, Hp),
        ln_g_p=pad2(ln_g.reshape(1, H), 1, Hp),
        ln_b_p=pad2(ln_b.reshape(1, H), 1, Hp),
        wh2e_p=pad2(wh2e.T, Hp, Ep), bh2e_p=pad2(bh2e.reshape(1, E), 1, Ep),
        item_t_pad=pad2(item_t, Ep, n_pad),
    )


# ----------------------------------------------------------------------------
# Pure-JAX reference (mirrors the PyTorch forward) for a sanity check.
# ----------------------------------------------------------------------------
def reference_forward(x, lengths, params, num_heads):
    max_len = int(max(lengths))
    x = x[:max_len]
    S, B = x.shape
    H = params['whh_t'].shape[0]
    hd = H // num_heads
    lengths_arr = jnp.asarray(lengths, jnp.int32)

    embs = jnp.take(params['emb'], x, axis=0)
    h = jnp.zeros((B, H), jnp.float32)
    c = jnp.zeros((B, H), jnp.float32)
    outs = []
    for t in range(S):
        g = embs[t] @ params['wih_t'] + h @ params['whh_t'] + params['lstm_b']
        i = jax.nn.sigmoid(g[:, :H]); f = jax.nn.sigmoid(g[:, H:2 * H])
        gg = jnp.tanh(g[:, 2 * H:3 * H]); o = jax.nn.sigmoid(g[:, 3 * H:])
        c = f * c + i * gg
        h = o * jnp.tanh(c)
        outs.append(h)
    lstm_out = jnp.stack(outs, 0)                                   # (S, B, H)
    valid = (jnp.arange(S)[:, None] < lengths_arr[None, :]).astype(jnp.float32)
    lstm_out = lstm_out * valid[:, :, None]
    xb = jnp.transpose(lstm_out, (1, 0, 2))                         # (B, S, H)

    mask = jnp.sum(xb, -1) != 0
    q = (xb @ params['wq_t'] + params['bq']).reshape(B, S, num_heads, hd).transpose(0, 2, 1, 3)
    k = (xb @ params['wk_t'] + params['bk']).reshape(B, S, num_heads, hd).transpose(0, 2, 1, 3)
    v = (xb @ params['wv_t'] + params['bv']).reshape(B, S, num_heads, hd).transpose(0, 2, 1, 3)
    score = jnp.einsum('bnqd,bnkd->bnqk', q, k) / math.sqrt(hd)
    score = jnp.where(mask[:, None, None, :], score, -jnp.inf)
    attn = jax.nn.softmax(score, axis=-1)
    weighted = jnp.einsum('bnqk,bnkd->bnqd', attn, v)
    weighted = weighted.transpose(0, 2, 1, 3).reshape(B, S, H)
    resid = weighted @ params['wo_t'] + params['bo'] + xb
    mean = jnp.mean(resid, -1, keepdims=True)
    var = jnp.mean((resid - mean) ** 2, -1, keepdims=True)
    mh = (resid - mean) / jnp.sqrt(var + 1e-5) * params['ln_g'] + params['ln_b']
    pooled = jnp.mean(mh, axis=1)
    emb_out = pooled @ params['wh2e_t'] + params['bh2e']
    return emb_out @ params['item_t']


if __name__ == "__main__":
    # Small config consistent with the module
    N_ITEMS = 50
    HIDDEN = 32
    EMB_DIM = 16
    NUM_HEADS = 2
    SEQ = 8
    BATCH = 2

    key = jax.random.PRNGKey(0)
    k_x, _ = jax.random.split(key)

    # (S, B) int32 item ids; lengths sorted descending (pack_padded_sequence).
    lengths = [8, 5]
    x = jax.random.randint(k_x, (SEQ, BATCH), 1, N_ITEMS, dtype=jnp.int32)
    # zero-pad (padding token 0) past each sequence's length
    t_idx = jnp.arange(SEQ, dtype=jnp.int32)[:, None]
    x = jnp.where(t_idx < jnp.asarray(lengths, jnp.int32)[None, :], x, 0)

    params = init_params(jax.random.PRNGKey(42), N_ITEMS, HIDDEN, EMB_DIM, NUM_HEADS)

    scores = lstm_attention_forward(x, lengths, params, NUM_HEADS)
    scores = jax.block_until_ready(scores)

    ref = reference_forward(x, lengths, params, NUM_HEADS)
    assert scores.shape == (BATCH, N_ITEMS)
    max_err = float(jnp.max(jnp.abs(scores - ref)))
    # Exact softmax reciprocal -> tight tolerance (only f32 reassociation noise).
    assert jnp.allclose(scores, ref, rtol=1e-3, atol=1e-3), max_err

    # TODO(synk): dropout (drop_prob=0.45) is treated as identity (eval mode);
    # no Pallas RNG dropout emitted.
    print("KERNEL_OK")
</pallas_src>

<mosaic_0001>
module attributes {stable_mosaic.version = 11 : i64} {
  func.func @_fused_kernel(%arg0: memref<64x128xf32, #tpu.memory_space<vmem>>, %arg1: memref<8x8xf32, #tpu.memory_space<vmem>>, %arg2: memref<128x512xf32, #tpu.memory_space<vmem>>, %arg3: memref<128x512xf32, #tpu.memory_space<vmem>>, %arg4: memref<1x512xf32, #tpu.memory_space<vmem>>, %arg5: memref<128x256xf32, #tpu.memory_space<vmem>>, %arg6: memref<1x256xf32, #tpu.memory_space<vmem>>, %arg7: memref<128x256xf32, #tpu.memory_space<vmem>>, %arg8: memref<1x256xf32, #tpu.memory_space<vmem>>, %arg9: memref<128x256xf32, #tpu.memory_space<vmem>>, %arg10: memref<1x256xf32, #tpu.memory_space<vmem>>, %arg11: memref<256x128xf32, #tpu.memory_space<vmem>>, %arg12: memref<1x128xf32, #tpu.memory_space<vmem>>, %arg13: memref<1x128xf32, #tpu.memory_space<vmem>>, %arg14: memref<1x128xf32, #tpu.memory_space<vmem>>, %arg15: memref<128x128xf32, #tpu.memory_space<vmem>>, %arg16: memref<1x128xf32, #tpu.memory_space<vmem>>, %arg17: memref<128x128xf32, #tpu.memory_space<vmem>>, %arg18: memref<8x128xf32, #tpu.memory_space<vmem>>, %arg19: memref<64x512xf32, #tpu.memory_space<vmem>>) attributes {dimension_semantics = [], scalar_prefetch = 0 : i64, scratch_operands = 1 : i64, tpu.core_type = #tpu.core_type<tc>} {
    %c0 = arith.constant 0 : index
    %c0_0 = arith.constant 0 : index
    %0 = vector.load %arg0[%c0, %c0_0] : memref<64x128xf32, #tpu.memory_space<vmem>>, vector<64x128xf32>
    %c0_1 = arith.constant 0 : index
    %c0_2 = arith.constant 0 : index
    %1 = vector.load %arg2[%c0_1, %c0_2] : memref<128x512xf32, #tpu.memory_space<vmem>>, vector<128x512xf32>
    %cst = arith.constant dense<0.000000e+00> : vector<64x512xf32>
    %2 = tpu.matmul %0, %1, %cst {dimension_numbers = #tpu.dot_dimension_numbers<[1], [0], [0], [1], [0, 0, 1, 1], [], []>} : vector<64x128xf32>, vector<128x512xf32>, vector<64x512xf32> -> vector<64x512xf32>
    %c0_3 = arith.constant 0 : index
    %c0_4 = arith.constant 0 : index
    %3 = vector.load %arg4[%c0_3, %c0_4] : memref<1x512xf32, #tpu.memory_space<vmem>>, vector<1x512xf32>
    %4 = vector.broadcast %3 : vector<1x512xf32> to vector<64x512xf32>
    %5 = arith.addf %2, %4 : vector<64x512xf32>
    %c0_5 = arith.constant 0 : index
    %c0_6 = arith.constant 0 : index
    %6 = vector.load %arg19[%c0_5, %c0_6] : memref<64x512xf32, #tpu.memory_space<vmem>>, vector<64x512xf32>
    tpu.vector_store %arg19[%c0_5, %c0_6], %5 {strides = array<i32>} : memref<64x512xf32, #tpu.memory_space<vmem>>, vector<64x512xf32>,
    %c0_7 = arith.constant 0 : index
    %c0_8 = arith.constant 0 : index
    %7 = vector.load %arg3[%c0_7, %c0_8] : memref<128x512xf32, #tpu.memory_space<vmem>>, vector<128x512xf32>
    %cst_9 = arith.constant 0.000000e+00 : f32
    %8 = vector.broadcast %cst_9 : f32 to vector<8x128xf32>
    %cst_10 = arith.constant 0.000000e+00 : f32
    %9 = vector.broadcast %cst_10 : f32 to vector<8x128xf32>
    %c0_11 = arith.constant 0 : index
    %c0_12 = arith.constant 0 : index
    %10 = vector.load %arg19[%c0_11, %c0_12] : memref<64x512xf32, #tpu.memory_space<vmem>>, vector<8x512xf32>
    %cst_13 = arith.constant dense<0.000000e+00> : vector<8x512xf32>
    %11 = tpu.matmul %8, %7, %cst_13 {dimension_numbers = #tpu.dot_dimension_numbers<[1], [0], [0], [1], [0, 0, 1, 1], [], []>} : vector<8x128xf32>, vector<128x512xf32>, vector<8x512xf32> -> vector<8x512xf32>
    %12 = arith.addf %10, %11 : vector<8x512xf32>
    %13 = arith.negf %12 : vector<8x512xf32>
    %14 = math.exp %13 : vector<8x512xf32>
    %cst_14 = arith.constant 1.000000e+00 : f32
    %15 = vector.broadcast %cst_14 : f32 to vector<8x512xf32>
    %16 = arith.addf %15, %14 : vector<8x512xf32>
    %17 = arith.divf %15, %16 : vector<8x512xf32>
    %18 = vector.extract_strided_slice %17 {offsets = [0, 0], sizes = [8, 128], strides = [1, 1]} : vector<8x512xf32> to vector<8x128xf32>
    %19 = vector.extract_strided_slice %17 {offsets = [0, 128], sizes = [8, 128], strides = [1, 1]} : vector<8x512xf32> to vector<8x128xf32>
    %20 = vector.extract_strided_slice %12 {offsets = [0, 256], sizes = [8, 128], strides = [1, 1]} : vector<8x512xf32> to vector<8x128xf32>
    %21 = math.tanh %20 : vector<8x128xf32>
    %22 = vector.extract_strided_slice %17 {offsets = [0, 384], sizes = [8, 128], strides = [1, 1]} : vector<8x512xf32> to vector<8x128xf32>
    %23 = arith.mulf %19, %9 : vector<8x128xf32>
    %24 = arith.mulf %18, %21 : vector<8x128xf32>
    %25 = arith.addf %23, %24 : vector<8x128xf32>
    %26 = math.tanh %25 : vector<8x128xf32>
    %27 = arith.mulf %22, %26 : vector<8x128xf32>
    %c8 = arith.constant 8 : index
    %c0_15 = arith.constant 0 : index
    %28 = vector.load %arg19[%c8, %c0_15] : memref<64x512xf32, #tpu.memory_space<vmem>>, vector<8x512xf32>
    %cst_16 = arith.constant dense<0.000000e+00> : vector<8x512xf32>
    %29 = tpu.matmul %27, %7, %cst_16 {dimension_numbers = #tpu.dot_dimension_numbers<[1], [0], [0], [1], [0, 0, 1, 1], [], []>} : vector<8x128xf32>, vector<128x512xf32>, vector<8x512xf32> -> vector<8x512xf32>
    %30 = arith.addf %28, %29 : vector<8x512xf32>
    %31 = arith.negf %30 : vector<8x512xf32>
    %32 = math.exp %31 : vector<8x512xf32>
    %cst_17 = arith.constant 1.000000e+00 : f32
    %33 = vector.broadcast %cst_17 : f32 to vector<8x512xf32>
    %34 = arith.addf %33, %32 : vector<8x512xf32>
    %35 = arith.divf %33, %34 : vector<8x512xf32>
    %36 = vector.extract_strided_slice %35 {offsets = [0, 0], sizes = [8, 128], strides = [1, 1]} : vector<8x512xf32> to vector<8x128xf32>
    %37 = vector.extract_strided_slice %35 {offsets = [0, 128], sizes = [8, 128], strides = [1, 1]} : vector<8x512xf32> to vector<8x128xf32>
    %38 = vector.extract_strided_slice %30 {offsets = [0, 256], sizes = [8, 128], strides = [1, 1]} : vector<8x512xf32> to vector<8x128xf32>
    %39 = math.tanh %38 : vector<8x128xf32>
    %40 = vector.extract_strided_slice %35 {offsets = [0, 384], sizes = [8, 128], strides = [1, 1]} : vector<8x512xf32> to vector<8x128xf32>
    %41 = arith.mulf %37, %25 : vector<8x128xf32>
    %42 = arith.mulf %36, %39 : vector<8x128xf32>
    %43 = arith.addf %41, %42 : vector<8x128xf32>
    %44 = math.tanh %43 : vector<8x128xf32>
    %45 = arith.mulf %40, %44 : vector<8x128xf32>
    %c16 = arith.constant 16 : index
    %c0_18 = arith.constant 0 : index
    %46 = vector.load %arg19[%c16, %c0_18] : memref<64x512xf32, #tpu.memory_space<vmem>>, vector<8x512xf32>
    %cst_19 = arith.constant dense<0.000000e+00> : vector<8x512xf32>
    %47 = tpu.matmul %45, %7, %cst_19 {dimension_numbers = #tpu.dot_dimension_numbers<[1], [0], [0], [1], [0, 0, 1, 1], [], []>} : vector<8x128xf32>, vector<128x512xf32>, vector<8x512xf32> -> vector<8x512xf32>
    %48 = arith.addf %46, %47 : vector<8x512xf32>
    %49 = arith.negf %48 : vector<8x512xf32>
    %50 = math.exp %49 : vector<8x512xf32>
    %cst_20 = arith.constant 1.000000e+00 : f32
    %51 = vector.broadcast %cst_20 : f32 to vector<8x512xf32>
    %52 = arith.addf %51, %50 : vector<8x512xf32>
    %53 = arith.divf %51, %52 : vector<8x512xf32>
    %54 = vector.extract_strided_slice %53 {offsets = [0, 0], sizes = [8, 128], strides = [1, 1]} : vector<8x512xf32> to vector<8x128xf32>
    %55 = vector.extract_strided_slice %53 {offsets = [0, 128], sizes = [8, 128], strides = [1, 1]} : vector<8x512xf32> to vector<8x128xf32>
    %56 = vector.extract_strided_slice %48 {offsets = [0, 256], sizes = [8, 128], strides = [1, 1]} : vector<8x512xf32> to vector<8x128xf32>
    %57 = math.tanh %56 : vector<8x128xf32>
    %58 = vector.extract_strided_slice %53 {offsets = [0, 384], sizes = [8, 128], strides = [1, 1]} : vector<8x512xf32> to vector<8x128xf32>
    %59 = arith.mulf %55, %43 : vector<8x128xf32>
    %60 = arith.mulf %54, %57 : vector<8x128xf32>
    %61 = arith.addf %59, %60 : vector<8x128xf32>
    %62 = math.tanh %61 : vector<8x128xf32>
    %63 = arith.mulf %58, %62 : vector<8x128xf32>
    %c24 = arith.constant 24 : index
    %c0_21 = arith.constant 0 : index
    %64 = vector.load %arg19[%c24, %c0_21] : memref<64x512xf32, #tpu.memory_space<vmem>>, vector<8x512xf32>
    %cst_22 = arith.constant dense<0.000000e+00> : vector<8x512xf32>
    %65 = tpu.matmul %63, %7, %cst_22 {dimension_numbers = #tpu.dot_dimension_numbers<[1], [0], [0], [1], [0, 0, 1, 1], [], []>} : vector<8x128xf32>, vector<128x512xf32>, vector<8x512xf32> -> vector<8x512xf32>
    %66 = arith.addf %64, %65 : vector<8x512xf32>
    %67 = arith.negf %66 : vector<8x512xf32>
    %68 = math.exp %67 : vector<8x512xf32>
    %cst_23 = arith.constant 1.000000e+00 : f32
    %69 = vector.broadcast %cst_23 : f32 to vector<8x512xf32>
    %70 = arith.addf %69, %68 : vector<8x512xf32>
    %71 = arith.divf %69, %70 : vector<8x512xf32>
    %72 = vector.extract_strided_slice %71 {offsets = [0, 0], sizes = [8, 128], strides = [1, 1]} : vector<8x512xf32> to vector<8x128xf32>
    %73 = vector.extract_strided_slice %71 {offsets = [0, 128], sizes = [8, 128], strides = [1, 1]} : vector<8x512xf32> to vector<8x128xf32>
    %74 = vector.extract_strided_slice %66 {offsets = [0, 256], sizes = [8, 128], strides = [1, 1]} : vector<8x512xf32> to vector<8x128xf32>
    %75 = math.tanh %74 : vector<8x128xf32>
    %76 = vector.extract_strided_slice %71 {offsets = [0, 384], sizes = [8, 128], strides = [1, 1]} : vector<8x512xf32> to vector<8x128xf32>
    %77 = arith.mulf %73, %61 : vector<8x128xf32>
    %78 = arith.mulf %72, %75 : vector<8x128xf32>
    %79 = arith.addf %77, %78 : vector<8x128xf32>
    %80 = math.tanh %79 : vector<8x128xf32>
    %81 = arith.mulf %76, %80 : vector<8x128xf32>
    %c32 = arith.constant 32 : index
    %c0_24 = arith.constant 0 : index
    %82 = vector.load %arg19[%c32, %c0_24] : memref<64x512xf32, #tpu.memory_space<vmem>>, vector<8x512xf32>
    %cst_25 = arith.constant dense<0.000000e+00> : vector<8x512xf32>
    %83 = tpu.matmul %81, %7, %cst_25 {dimension_numbers = #tpu.dot_dimension_numbers<[1], [0], [0], [1], [0, 0, 1, 1], [], []>} : vector<8x128xf32>, vector<128x512xf32>, vector<8x512xf32> -> vector<8x512xf32>
    %84 = arith.addf %82, %83 : vector<8x512xf32>
    %85 = arith.negf %84 : vector<8x512xf32>
    %86 = math.exp %85 : vector<8x512xf32>
    %cst_26 = arith.constant 1.000000e+00 : f32
    %87 = vector.broadcast %cst_26 : f32 to vector<8x512xf32>
    %88 = arith.addf %87, %86 : vector<8x512xf32>
    %89 = arith.divf %87, %88 : vector<8x512xf32>
    %90 = vector.extract_strided_slice %89 {offsets = [0, 0], sizes = [8, 128], strides = [1, 1]} : vector<8x512xf32> to vector<8x128xf32>
    %91 = vector.extract_strided_slice %89 {offsets = [0, 128], sizes = [8, 128], strides = [1, 1]} : vector<8x512xf32> to vector<8x128xf32>
    %92 = vector.extract_strided_slice %84 {offsets = [0, 256], sizes = [8, 128], strides = [1, 1]} : vector<8x512xf32> to vector<8x128xf32>
    %93 = math.tanh %92 : vector<8x128xf32>
    %94 = vector.extract_strided_slice %89 {offsets = [0, 384], sizes = [8, 128], strides = [1, 1]} : vector<8x512xf32> to vector<8x128xf32>
    %95 = arith.mulf %91, %79 : vector<8x128xf32>
    %96 = arith.mulf %90, %93 : vector<8x128xf32>
    %97 = arith.addf %95, %96 : vector<8x128xf32>
    %98 = math.tanh %97 : vector<8x128xf32>
    %99 = arith.mulf %94, %98 : vector<8x128xf32>
    %c40 = arith.constant 40 : index
    %c0_27 = arith.constant 0 : index
    %100 = vector.load %arg19[%c40, %c0_27] : memref<64x512xf32, #tpu.memory_space<vmem>>, vector<8x512xf32>
    %cst_28 = arith.constant dense<0.000000e+00> : vector<8x512xf32>
    %101 = tpu.matmul %99, %7, %cst_28 {dimension_numbers = #tpu.dot_dimension_numbers<[1], [0], [0], [1], [0, 0, 1, 1], [], []>} : vector<8x128xf32>, vector<128x512xf32>, vector<8x512xf32> -> vector<8x512xf32>
    %102 = arith.addf %100, %101 : vector<8x512xf32>
    %103 = arith.negf %102 : vector<8x512xf32>
    %104 = math.exp %103 : vector<8x512xf32>
    %cst_29 = arith.constant 1.000000e+00 : f32
    %105 = vector.broadcast %cst_29 : f32 to vector<8x512xf32>
    %106 = arith.addf %105, %104 : vector<8x512xf32>
    %107 = arith.divf %105, %106 : vector<8x512xf32>
    %108 = vector.extract_strided_slice %107 {offsets = [0, 0], sizes = [8, 128], strides = [1, 1]} : vector<8x512xf32> to vector<8x128xf32>
    %109 = vector.extract_strided_slice %107 {offsets = [0, 128], sizes = [8, 128], strides = [1, 1]} : vector<8x512xf32> to vector<8x128xf32>
    %110 = vector.extract_strided_slice %102 {offsets = [0, 256], sizes = [8, 128], strides = [1, 1]} : vector<8x512xf32> to vector<8x128xf32>
    %111 = math.tanh %110 : vector<8x128xf32>
    %112 = vector.extract_strided_slice %107 {offsets = [0, 384], sizes = [8, 128], strides = [1, 1]} : vector<8x512xf32> to vector<8x128xf32>
    %113 = arith.mulf %109, %97 : vector<8x128xf32>
    %114 = arith.mulf %108, %111 : vector<8x128xf32>
    %115 = arith.addf %113, %114 : vector<8x128xf32>
    %116 = math.tanh %115 : vector<8x128xf32>
    %117 = arith.mulf %112, %116 : vector<8x128xf32>
    %c48 = arith.constant 48 : index
    %c0_30 = arith.constant 0 : index
    %118 = vector.load %arg19[%c48, %c0_30] : memref<64x512xf32, #tpu.memory_space<vmem>>, vector<8x512xf32>
    %cst_31 = arith.constant dense<0.000000e+00> : vector<8x512xf32>
    %119 = tpu.matmul %117, %7, %cst_31 {dimension_numbers = #tpu.dot_dimension_numbers<[1], [0], [0], [1], [0, 0, 1, 1], [], []>} : vector<8x128xf32>, vector<128x512xf32>, vector<8x512xf32> -> vector<8x512xf32>
    %120 = arith.addf %118, %119 : vector<8x512xf32>
    %121 = arith.negf %120 : vector<8x512xf32>
    %122 = math.exp %121 : vector<8x512xf32>
    %cst_32 = arith.constant 1.000000e+00 : f32
    %123 = vector.broadcast %cst_32 : f32 to vector<8x512xf32>
    %124 = arith.addf %123, %122 : vector<8x512xf32>
    %125 = arith.divf %123, %124 : vector<8x512xf32>
    %126 = vector.extract_strided_slice %125 {offsets = [0, 0], sizes = [8, 128], strides = [1, 1]} : vector<8x512xf32> to vector<8x128xf32>
    %127 = vector.extract_strided_slice %125 {offsets = [0, 128], sizes = [8, 128], strides = [1, 1]} : vector<8x512xf32> to vector<8x128xf32>
    %128 = vector.extract_strided_slice %120 {offsets = [0, 256], sizes = [8, 128], strides = [1, 1]} : vector<8x512xf32> to vector<8x128xf32>
    %129 = math.tanh %128 : vector<8x128xf32>
    %130 = vector.extract_strided_slice %125 {offsets = [0, 384], sizes = [8, 128], strides = [1, 1]} : vector<8x512xf32> to vector<8x128xf32>
    %131 = arith.mulf %127, %115 : vector<8x128xf32>
    %132 = arith.mulf %126, %129 : vector<8x128xf32>
    %133 = arith.addf %131, %132 : vector<8x128xf32>
    %134 = math.tanh %133 : vector<8x128xf32>
    %135 = arith.mulf %130, %134 : vector<8x128xf32>
    %c56 = arith.constant 56 : index
    %c0_33 = arith.constant 0 : index
    %136 = vector.load %arg19[%c56, %c0_33] : memref<64x512xf32, #tpu.memory_space<vmem>>, vector<8x512xf32>
    %cst_34 = arith.constant dense<0.000000e+00> : vector<8x512xf32>
    %137 = tpu.matmul %135, %7, %cst_34 {dimension_numbers = #tpu.dot_dimension_numbers<[1], [0], [0], [1], [0, 0, 1, 1], [], []>} : vector<8x128xf32>, vector<128x512xf32>, vector<8x512xf32> -> vector<8x512xf32>
    %138 = arith.addf %136, %137 : vector<8x512xf32>
    %139 = arith.negf %138 : vector<8x512xf32>
    %140 = math.exp %139 : vector<8x512xf32>
    %cst_35 = arith.constant 1.000000e+00 : f32
    %141 = vector.broadcast %cst_35 : f32 to vector<8x512xf32>
    %142 = arith.addf %141, %140 : vector<8x512xf32>
    %143 = arith.divf %141, %142 : vector<8x512xf32>
    %144 = vector.extract_strided_slice %143 {offsets = [0, 0], sizes = [8, 128], strides = [1, 1]} : vector<8x512xf32> to vector<8x128xf32>
    %145 = vector.extract_strided_slice %143 {offsets = [0, 128], sizes = [8, 128], strides = [1, 1]} : vector<8x512xf32> to vector<8x128xf32>
    %146 = vector.extract_strided_slice %138 {offsets = [0, 256], sizes = [8, 128], strides = [1, 1]} : vector<8x512xf32> to vector<8x128xf32>
    %147 = math.tanh %146 : vector<8x128xf32>
    %148 = vector.extract_strided_slice %143 {offsets = [0, 384], sizes = [8, 128], strides = [1, 1]} : vector<8x512xf32> to vector<8x128xf32>
    %149 = arith.mulf %145, %133 : vector<8x128xf32>
    %150 = arith.mulf %144, %147 : vector<8x128xf32>
    %151 = arith.addf %149, %150 : vector<8x128xf32>
    %152 = math.tanh %151 : vector<8x128xf32>
    %153 = arith.mulf %148, %152 : vector<8x128xf32>
    %c0_36 = arith.constant 0 : index
    %c0_37 = arith.constant 0 : index
    %154 = vector.load %arg1[%c0_36, %c0_37] : memref<8x8xf32, #tpu.memory_space<vmem>>, vector<8x8xf32>
    %155 = vector.shape_cast %27 : vector<8x128xf32> to vector<8x1x128xf32>
    %156 = vector.shape_cast %45 : vector<8x128xf32> to vector<8x1x128xf32>
    %157 = vector.shape_cast %63 : vector<8x128xf32> to vector<8x1x128xf32>
    %158 = vector.shape_cast %81 : vector<8x128xf32> to vector<8x1x128xf32>
    %159 = vector.shape_cast %99 : vector<8x128xf32> to vector<8x1x128xf32>
    %160 = vector.shape_cast %117 : vector<8x128xf32> to vector<8x1x128xf32>
    %161 = vector.shape_cast %135 : vector<8x128xf32> to vector<8x1x128xf32>
    %162 = vector.shape_cast %153 : vector<8x128xf32> to vector<8x1x128xf32>
    %163 = tpu.concatenate %155, %156, %157, %158, %159, %160, %161, %162 in 1 : vector<8x1x128xf32>, vector<8x1x128xf32>, vector<8x1x128xf32>, vector<8x1x128xf32>, vector<8x1x128xf32>, vector<8x1x128xf32>, vector<8x1x128xf32>, vector<8x1x128xf32> -> vector<8x8x128xf32>
    %164 = vector.shape_cast %154 : vector<8x8xf32> to vector<8x8x1xf32>
    %165 = vector.broadcast %164 : vector<8x8x1xf32> to vector<8x8x128xf32>
    %166 = arith.mulf %163, %165 : vector<8x8x128xf32>
    %167 = vector.shape_cast %166 : vector<8x8x128xf32> to vector<64x128xf32>
    %c0_38 = arith.constant 0 : index
    %c0_39 = arith.constant 0 : index
    %168 = vector.load %arg5[%c0_38, %c0_39] : memref<128x256xf32, #tpu.memory_space<vmem>>, vector<128x256xf32>
    %cst_40 = arith.constant dense<0.000000e+00> : vector<64x256xf32>
    %169 = tpu.matmul %167, %168, %cst_40 {dimension_numbers = #tpu.dot_dimension_numbers<[1], [0], [0], [1], [0, 0, 1, 1], [], []>} : vector<64x128xf32>, vector<128x256xf32>, vector<64x256xf32> -> vector<64x256xf32>
    %c0_41 = arith.constant 0 : index
    %c0_42 = arith.constant 0 : index
    %170 = vector.load %arg6[%c0_41, %c0_42] : memref<1x256xf32, #tpu.memory_space<vmem>>, vector<1x256xf32>
    %171 = vector.broadcast %170 : vector<1x256xf32> to vector<64x256xf32>
    %172 = arith.addf %169, %171 : vector<64x256xf32>
    %c0_43 = arith.constant 0 : index
    %c0_44 = arith.constant 0 : index
    %173 = vector.load %arg7[%c0_43, %c0_44] : memref<128x256xf32, #tpu.memory_space<vmem>>, vector<128x256xf32>
    %cst_45 = arith.constant dense<0.000000e+00> : vector<64x256xf32>
    %174 = tpu.matmul %167, %173, %cst_45 {dimension_numbers = #tpu.dot_dimension_numbers<[1], [0], [0], [1], [0, 0, 1, 1], [], []>} : vector<64x128xf32>, vector<128x256xf32>, vector<64x256xf32> -> vector<64x256xf32>
    %c0_46 = arith.constant 0 : index
    %c0_47 = arith.constant 0 : index
    %175 = vector.load %arg8[%c0_46, %c0_47] : memref<1x256xf32, #tpu.memory_space<vmem>>, vector<1x256xf32>
    %176 = vector.broadcast %175 : vector<1x256xf32> to vector<64x256xf32>
    %177 = arith.addf %174, %176 : vector<64x256xf32>
    %c0_48 = arith.constant 0 : index
    %c0_49 = arith.constant 0 : index
    %178 = vector.load %arg9[%c0_48, %c0_49] : memref<128x256xf32, #tpu.memory_space<vmem>>, vector<128x256xf32>
    %cst_50 = arith.constant dense<0.000000e+00> : vector<64x256xf32>
    %179 = tpu.matmul %167, %178, %cst_50 {dimension_numbers = #tpu.dot_dimension_numbers<[1], [0], [0], [1], [0, 0, 1, 1], [], []>} : vector<64x128xf32>, vector<128x256xf32>, vector<64x256xf32> -> vector<64x256xf32>
    %c0_51 = arith.constant 0 : index
    %c0_52 = arith.constant 0 : index
    %180 = vector.load %arg10[%c0_51, %c0_52] : memref<1x256xf32, #tpu.memory_space<vmem>>, vector<1x256xf32>
    %181 = vector.broadcast %180 : vector<1x256xf32> to vector<64x256xf32>
    %182 = arith.addf %179, %181 : vector<64x256xf32>
    %183 = vector.shape_cast %154 : vector<8x8xf32> to vector<8x1x8xf32>
    %cst_53 = arith.constant 0.000000e+00 : f32
    %184 = vector.broadcast %cst_53 : f32 to vector<8x1x8xf32>
    %185 = arith.cmpf ogt, %183, %184 : vector<8x1x8xf32>
    %186 = vector.extract_strided_slice %172 {offsets = [0, 0], sizes = [64, 128], strides = [1, 1]} : vector<64x256xf32> to vector<64x128xf32>
    %187 = vector.shape_cast %186 : vector<64x128xf32> to vector<8x8x128xf32>
    %188 = vector.extract_strided_slice %177 {offsets = [0, 0], sizes = [64, 128], strides = [1, 1]} : vector<64x256xf32> to vector<64x128xf32>
    %189 = vector.shape_cast %188 : vector<64x128xf32> to vector<8x8x128xf32>
    %190 = vector.extract_strided_slice %182 {offsets = [0, 0], sizes = [64, 128], strides = [1, 1]} : vector<64x256xf32> to vector<64x128xf32>
    %191 = vector.shape_cast %190 : vector<64x128xf32> to vector<8x8x128xf32>
    "tpu.trace_start"() <{level = 10 : i32, message = "bqd,bkd->bqk"}> : () -> ()
    %cst_54 = arith.constant dense<0.000000e+00> : vector<8x8x8xf32>
    %192 = tpu.matmul %187, %189, %cst_54 {dimension_numbers = #tpu.dot_dimension_numbers<[2], [2], [1], [1], [0, 0, 0, 1, 1, 1], [0], [0]>} : vector<8x8x128xf32>, vector<8x8x128xf32>, vector<8x8x8xf32> -> vector<8x8x8xf32>
    "tpu.trace_stop"() : () -> ()
    %cst_55 = arith.constant 2.500000e-01 : f32
    %193 = vector.broadcast %cst_55 : f32 to vector<8x8x8xf32>
    %194 = arith.mulf %192, %193 : vector<8x8x8xf32>
    %cst_56 = arith.constant -1.000000e+30 : f32
    %195 = vector.shape_cast %185 : vector<8x1x8xi1> to vector<8x1x8xi1>
    %196 = vector.broadcast %195 : vector<8x1x8xi1> to vector<8x8x8xi1>
    %197 = vector.broadcast %cst_56 : f32 to vector<8x8x8xf32>
    %198 = arith.select %196, %194, %197 : vector<8x8x8xi1>, vector<8x8x8xf32>
    %cst_57 = arith.constant dense<0xFF800000> : vector<8x8xf32>
    %199 = vector.multi_reduction <maximumf>, %198, %cst_57 [2] : vector<8x8x8xf32> to vector<8x8xf32>
    %200 = vector.shape_cast %199 : vector<8x8xf32> to vector<8x8x1xf32>
    %201 = vector.broadcast %200 : vector<8x8x1xf32> to vector<8x8x8xf32>
    %202 = arith.subf %198, %201 : vector<8x8x8xf32>
    %203 = math.exp %202 : vector<8x8x8xf32>
    %cst_58 = arith.constant dense<0.000000e+00> : vector<8x8xf32>
    %204 = vector.multi_reduction <add>, %203, %cst_58 [2] : vector<8x8x8xf32> to vector<8x8xf32>
    %205 = vector.shape_cast %204 : vector<8x8xf32> to vector<8x8x1xf32>
    %206 = vector.broadcast %205 : vector<8x8x1xf32> to vector<8x8x8xf32>
    %207 = arith.divf %203, %206 : vector<8x8x8xf32>
    "tpu.trace_start"() <{level = 10 : i32, message = "bqk,bkd->bqd"}> : () -> ()
    %cst_59 = arith.constant dense<0.000000e+00> : vector<8x8x128xf32>
    %208 = tpu.matmul %207, %191, %cst_59 {dimension_numbers = #tpu.dot_dimension_numbers<[2], [1], [1], [2], [0, 0, 0, 1, 1, 2], [0], [0]>} : vector<8x8x8xf32>, vector<8x8x128xf32>, vector<8x8x128xf32> -> vector<8x8x128xf32>
    "tpu.trace_stop"() : () -> ()
    %209 = vector.extract_strided_slice %172 {offsets = [0, 128], sizes = [64, 128], strides = [1, 1]} : vector<64x256xf32> to vector<64x128xf32>
    %210 = vector.shape_cast %209 : vector<64x128xf32> to vector<8x8x128xf32>
    %211 = vector.extract_strided_slice %177 {offsets = [0, 128], sizes = [64, 128], strides = [1, 1]} : vector<64x256xf32> to vector<64x128xf32>
    %212 = vector.shape_cast %211 : vector<64x128xf32> to vector<8x8x128xf32>
    %213 = vector.extract_strided_slice %182 {offsets = [0, 128], sizes = [64, 128], strides = [1, 1]} : vector<64x256xf32> to vector<64x128xf32>
    %214 = vector.shape_cast %213 : vector<64x128xf32> to vector<8x8x128xf32>
    "tpu.trace_start"() <{level = 10 : i32, message = "bqd,bkd->bqk"}> : () -> ()
    %cst_60 = arith.constant dense<0.000000e+00> : vector<8x8x8xf32>
    %215 = tpu.matmul %210, %212, %cst_60 {dimension_numbers = #tpu.dot_dimension_numbers<[2], [2], [1], [1], [0, 0, 0, 1, 1, 1], [0], [0]>} : vector<8x8x128xf32>, vector<8x8x128xf32>, vector<8x8x8xf32> -> vector<8x8x8xf32>
    "tpu.trace_stop"() : () -> ()
    %cst_61 = arith.constant 2.500000e-01 : f32
    %216 = vector.broadcast %cst_61 : f32 to vector<8x8x8xf32>
    %217 = arith.mulf %215, %216 : vector<8x8x8xf32>
    %cst_62 = arith.constant -1.000000e+30 : f32
    %218 = vector.shape_cast %185 : vector<8x1x8xi1> to vector<8x1x8xi1>
    %219 = vector.broadcast %218 : vector<8x1x8xi1> to vector<8x8x8xi1>
    %220 = vector.broadcast %cst_62 : f32 to vector<8x8x8xf32>
    %221 = arith.select %219, %217, %220 : vector<8x8x8xi1>, vector<8x8x8xf32>
    %cst_63 = arith.constant dense<0xFF800000> : vector<8x8xf32>
    %222 = vector.multi_reduction <maximumf>, %221, %cst_63 [2] : vector<8x8x8xf32> to vector<8x8xf32>
    %223 = vector.shape_cast %222 : vector<8x8xf32> to vector<8x8x1xf32>
    %224 = vector.broadcast %223 : vector<8x8x1xf32> to vector<8x8x8xf32>
    %225 = arith.subf %221, %224 : vector<8x8x8xf32>
    %226 = math.exp %225 : vector<8x8x8xf32>
    %cst_64 = arith.constant dense<0.000000e+00> : vector<8x8xf32>
    %227 = vector.multi_reduction <add>, %226, %cst_64 [2] : vector<8x8x8xf32> to vector<8x8xf32>
    %228 = vector.shape_cast %227 : vector<8x8xf32> to vector<8x8x1xf32>
    %229 = vector.broadcast %228 : vector<8x8x1xf32> to vector<8x8x8xf32>
    %230 = arith.divf %226, %229 : vector<8x8x8xf32>
    "tpu.trace_start"() <{level = 10 : i32, message = "bqk,bkd->bqd"}> : () -> ()
    %cst_65 = arith.constant dense<0.000000e+00> : vector<8x8x128xf32>
    %231 = tpu.matmul %230, %214, %cst_65 {dimension_numbers = #tpu.dot_dimension_numbers<[2], [1], [1], [2], [0, 0, 0, 1, 1, 2], [0], [0]>} : vector<8x8x8xf32>, vector<8x8x128xf32>, vector<8x8x128xf32> -> vector<8x8x128xf32>
    "tpu.trace_stop"() : () -> ()
    %232 = tpu.concatenate %208, %231 in 2 : vector<8x8x128xf32>, vector<8x8x128xf32> -> vector<8x8x256xf32>
    %233 = vector.shape_cast %232 : vector<8x8x256xf32> to vector<64x256xf32>
    %c0_66 = arith.constant 0 : index
    %c0_67 = arith.constant 0 : index
    %234 = vector.load %arg11[%c0_66, %c0_67] : memref<256x128xf32, #tpu.memory_space<vmem>>, vector<256x128xf32>
    %cst_68 = arith.constant dense<0.000000e+00> : vector<64x128xf32>
    %235 = tpu.matmul %233, %234, %cst_68 {dimension_numbers = #tpu.dot_dimension_numbers<[1], [0], [0], [1], [0, 0, 1, 1], [], []>} : vector<64x256xf32>, vector<256x128xf32>, vector<64x128xf32> -> vector<64x128xf32>
    %c0_69 = arith.constant 0 : index
    %c0_70 = arith.constant 0 : index
    %236 = vector.load %arg12[%c0_69, %c0_70] : memref<1x128xf32, #tpu.memory_space<vmem>>, vector<1x128xf32>
    %237 = vector.broadcast %236 : vector<1x128xf32> to vector<64x128xf32>
    %238 = arith.addf %235, %237 : vector<64x128xf32>
    %239 = arith.addf %238, %167 : vector<64x128xf32>
    %cst_71 = arith.constant dense<0.000000e+00> : vector<64xf32>
    %240 = vector.multi_reduction <add>, %239, %cst_71 [1] : vector<64x128xf32> to vector<64xf32>
    %241 = vector.shape_cast %240 : vector<64xf32> to vector<64x1xf32>
    %cst_72 = arith.constant 3.125000e-02 : f32
    %242 = vector.broadcast %cst_72 : f32 to vector<64x1xf32>
    %243 = arith.mulf %241, %242 : vector<64x1xf32>
    %244 = arith.mulf %239, %239 : vector<64x128xf32>
    %cst_73 = arith.constant dense<0.000000e+00> : vector<64xf32>
    %245 = vector.multi_reduction <add>, %244, %cst_73 [1] : vector<64x128xf32> to vector<64xf32>
    %246 = vector.shape_cast %245 : vector<64xf32> to vector<64x1xf32>
    %cst_74 = arith.constant 3.125000e-02 : f32
    %247 = vector.broadcast %cst_74 : f32 to vector<64x1xf32>
    %248 = arith.mulf %246, %247 : vector<64x1xf32>
    %249 = arith.mulf %243, %243 : vector<64x1xf32>
    %250 = arith.subf %248, %249 : vector<64x1xf32>
    %251 = vector.broadcast %243 : vector<64x1xf32> to vector<64x128xf32>
    %252 = arith.subf %239, %251 : vector<64x128xf32>
    %cst_75 = arith.constant 9.99999974E-6 : f32
    %253 = vector.broadcast %cst_75 : f32 to vector<64x1xf32>
    %254 = arith.addf %250, %253 : vector<64x1xf32>
    %255 = math.rsqrt %254 : vector<64x1xf32>
    %256 = vector.broadcast %255 : vector<64x1xf32> to vector<64x128xf32>
    %257 = arith.mulf %252, %256 : vector<64x128xf32>
    %c0_76 = arith.constant 0 : index
    %c0_77 = arith.constant 0 : index
    %258 = vector.load %arg13[%c0_76, %c0_77] : memref<1x128xf32, #tpu.memory_space<vmem>>, vector<1x128xf32>
    %259 = vector.broadcast %258 : vector<1x128xf32> to vector<64x128xf32>
    %260 = arith.mulf %257, %259 : vector<64x128xf32>
    %c0_78 = arith.constant 0 : index
    %c0_79 = arith.constant 0 : index
    %261 = vector.load %arg14[%c0_78, %c0_79] : memref<1x128xf32, #tpu.memory_space<vmem>>, vector<1x128xf32>
    %262 = vector.broadcast %261 : vector<1x128xf32> to vector<64x128xf32>
    %263 = arith.addf %260, %262 : vector<64x128xf32>
    %264 = vector.shape_cast %263 : vector<64x128xf32> to vector<8x8x128xf32>
    %cst_80 = arith.constant dense<0.000000e+00> : vector<8x128xf32>
    %265 = vector.multi_reduction <add>, %264, %cst_80 [1] : vector<8x8x128xf32> to vector<8x128xf32>
    %cst_81 = arith.constant 8.000000e+00 : f32
    %266 = vector.broadcast %cst_81 : f32 to vector<8x128xf32>
    %267 = arith.divf %265, %266 : vector<8x128xf32>
    %c0_82 = arith.constant 0 : index
    %c0_83 = arith.constant 0 : index
    %268 = vector.load %arg15[%c0_82, %c0_83] : memref<128x128xf32, #tpu.memory_space<vmem>>, vector<128x128xf32>
    %cst_84 = arith.constant dense<0.000000e+00> : vector<8x128xf32>
    %269 = tpu.matmul %267, %268, %cst_84 {dimension_numbers = #tpu.dot_dimension_numbers<[1], [0], [0], [1], [0, 0, 1, 1], [], []>} : vector<8x128xf32>, vector<128x128xf32>, vector<8x128xf32> -> vector<8x128xf32>
    %c0_85 = arith.constant 0 : index
    %c0_86 = arith.constant 0 : index
    %270 = vector.load %arg16[%c0_85, %c0_86] : memref<1x128xf32, #tpu.memory_space<vmem>>, vector<1x128xf32>
    %271 = vector.broadcast %270 : vector<1x128xf32> to vector<8x128xf32>
    %272 = arith.addf %269, %271 : vector<8x128xf32>
    %c0_87 = arith.constant 0 : index
    %c0_88 = arith.constant 0 : index
    %273 = vector.load %arg17[%c0_87, %c0_88] : memref<128x128xf32, #tpu.memory_space<vmem>>, vector<128x128xf32>
    %cst_89 = arith.constant dense<0.000000e+00> : vector<8x128xf32>
    %274 = tpu.matmul %272, %273, %cst_89 {dimension_numbers = #tpu.dot_dimension_numbers<[1], [0], [0], [1], [0, 0, 1, 1], [], []>} : vector<8x128xf32>, vector<128x128xf32>, vector<8x128xf32> -> vector<8x128xf32>
    %c0_90 = arith.constant 0 : index
    %c0_91 = arith.constant 0 : index
    %275 = vector.load %arg18[%c0_90, %c0_91] : memref<8x128xf32, #tpu.memory_space<vmem>>, vector<8x128xf32>
    tpu.vector_store %arg18[%c0_90, %c0_91], %274 {strides = array<i32>} : memref<8x128xf32, #tpu.memory_space<vmem>>, vector<8x128xf32>,
    return
  }
}

</mosaic_0001>

<bundles_post_ra>
// kernel: tpu_custom_call.1
= control target key start
LH: loop header
LB: loop body
LE: loop exit
PB: predicated region body
PF: predicated region fallthrough
CT: control target
= control target key end

     0   :  { %s9560_s0 = inlined_call_operand.hbm [shape: f32[64,128], index: 0, kind: input, shape index: {}]   ;;  %s9561_s1 = inlined_call_operand.hbm [shape: f32[8,8], index: 1, kind: input, shape index: {}]   ;;  %s9562_s2 = inlined_call_operand.hbm [shape: f32[128,512], index: 2, kind: input, shape index: {}]   ;;  %s9563_s3 = inlined_call_operand.hbm [shape: f32[128,512], index: 3, kind: input, shape index: {}]   ;;  %s9564_s4 = inlined_call_operand.vmem [shape: f32[1,512], index: 4, kind: input, shape index: {}]   ;;  %s9565_s5 = inlined_call_operand.hbm [shape: f32[128,256], index: 5, kind: input, shape index: {}]   ;;  %s9566_s6 = inlined_call_operand.vmem [shape: f32[1,256], index: 6, kind: input, shape index: {}]   ;;  %s9567_s7 = inlined_call_operand.hbm [shape: f32[128,256], index: 7, kind: input, shape index: {}]   ;;  %s9568_s8 = inlined_call_operand.vmem [shape: f32[1,256], index: 8, kind: input, shape index: {}]   ;;  %s9569_s9 = inlined_call_operand.hbm [shape: f32[128,256], index: 9, kind: input, shape index: {}]   ;;  %s9570_s10 = inlined_call_operand.vmem [shape: f32[1,256], index: 10, kind: input, shape index: {}]   ;;  %s9571_s11 = inlined_call_operand.hbm [shape: f32[256,128], index: 11, kind: input, shape index: {}]   ;;  %s9572_s12 = inlined_call_operand.vmem [shape: f32[1,128], index: 12, kind: input, shape index: {}]   ;;  %s9573_s13 = inlined_call_operand.vmem [shape: f32[1,128], index: 13, kind: input, shape index: {}]   ;;  %s9574_s14 = inlined_call_operand.vmem [shape: f32[1,128], index: 14, kind: input, shape index: {}]   ;;  %s9575_s15 = inlined_call_operand.hbm [shape: f32[128,128], index: 15, kind: input, shape index: {}]   ;;  %s9576_s16 = inlined_call_operand.vmem [shape: f32[1,128], index: 16, kind: input, shape index: {}]   ;;  %s9577_s17 = inlined_call_operand.hbm [shape: f32[128,128], index: 17, kind: input, shape index: {}]   ;;  %s9578_s18 = inlined_call_operand.hbm [shape: f32[8,128], index: 18, kind: output, shape index: {}]  }
   0x1   :  { %9703 = sst [smem:[#allocation81_spill]] %s9560_s0 }
   0x2   :  { %9704 = sst [smem:[#allocation82_spill]] %s9561_s1 }
   0x3   :  { %9705 = sst [smem:[#allocation83_spill]] %s9562_s2 }
   0x4   :  { %23 = vsyncpa [#allocation4], 0 }
   0x5   :  { %24 = vsyncpa [#allocation7], 0 }
   0x6   :  { %25 = vsyncpa [#allocation10], 0 }
   0x7   :  { %26 = vsyncpa [#allocation13], 0 }
   0x8   :  { %27 = vsyncpa [#allocation16], 0 }
   0x9   :  { %28 = vsyncpa [#allocation19], 0 }
   0xa   :  { %29 = vsyncpa [#allocation5], 0  ;;  %s7455_s27 = smov [#allocation6]  }
   0xb   :  { %s48_s28 = sshll.u32 %s7455_s27, 4  ;;  %s49_s28 = int_to_ptr.vmem [resolvable:$true] %s48_s28 }
   0xc   :  { %s7229_s29 = scalar_lea.vmem %s49_s28, 128  ;;  %p7234_p1 = scmp.lt.s32.totalorder %s49_s28, %s49_s28 }
   0xd   :  { %p7230_p0 = scmp.ne.s32.totalorder %s49_s28, %s7229_s29  ;;  %p7235_p2 = scmp.lt.s32.totalorder %s7229_s29, %s7229_s29 }
   0xf   :  { %p7236_p3 = por %p7235_p2, %p7234_p1 }
  0x11   :  { %p7237_p4 = pnand %p7236_p3, %p7230_p0 }
  0x13   :  { %7240 = shalt.err (!%p7237_p4)
}
  0x14   :  { %s9706_s19 = sld [smem:[#allocation82_spill]]  ;;  %s7456_s1 = smov [#allocation9]  }
  0x15   :  { %s69_s20 = sshll.u32 %s7456_s1, 4  ;;  %s70_s20 = int_to_ptr.vmem [resolvable:$true] %s69_s20 }
  0x16   :  { %s7249_s21 = scalar_lea.vmem %s70_s20, 8192  ;;  %p7254_p6 = scmp.lt.s32.totalorder %s70_s20, %s70_s20 }
  0x17   :  { %p7250_p5 = scmp.ne.s32.totalorder %s70_s20, %s7249_s21  ;;  %p7255_p7 = scmp.lt.s32.totalorder %s7249_s21, %s7249_s21 }
  0x19   :  { %p7256_p8 = por %p7255_p7, %p7254_p6 }
  0x1a   :  { %51 = dma.hbm_to_vmem [thread:$0]  %s9706_s19, 128, %s49_s28, [#allocation7]  }
  0x1b   :  { %p7257_p9 = pnand %p7256_p8, %p7250_p5 }
  0x1d   :  { %7260 = shalt.err (!%p7257_p9)
}
  0x1e   :  { %s7457_s22 = smov 512   ;;  %s7458_s2 = smov 32  }
  0x1f   :  { %75 = dma.hbm_to_vmem [thread:$0]  %s9563_s3, 8192, %s70_s20, [#allocation10], %s7457_s22, %s7457_s22, %s7458_s2  }
  0x20   :  { %s7459_s25 = smov [#allocation12]  }
  0x21   :  { %s97_s26 = sshll.u32 %s7459_s25, 4  ;;  %s98_s26 = int_to_ptr.vmem [resolvable:$true] %s97_s26 }
  0x22   :  { %s7269_s27 = scalar_lea.vmem %s98_s26, 4096  ;;  %p7274_p11 = scmp.lt.s32.totalorder %s98_s26, %s98_s26 }
  0x23   :  { %p7270_p10 = scmp.ne.s32.totalorder %s98_s26, %s7269_s27  ;;  %p7275_p12 = scmp.lt.s32.totalorder %s7269_s27, %s7269_s27 }
  0x25   :  { %p7276_p13 = por %p7275_p12, %p7274_p11 }
  0x27   :  { %p7277_p0 = pnand %p7276_p13, %p7270_p10 }
  0x29   :  { %7280 = shalt.err (!%p7277_p0)
}
  0x2a   :  { %s7460_s28 = smov 256   ;;  %s7461_s29 = smov 16  }
  0x2b   :  { %103 = dma.hbm_to_vmem [thread:$0]  %s9567_s7, 4096, %s98_s26, [#allocation13], %s7460_s28, %s7460_s28, %s7461_s29  }
  0x2c   :  { %s7462_s3 = smov [#allocation15]   ;;  %s7463_s1 = smov [#allocation3]  }
  0x2d   :  { %s125_s19 = sshll.u32 %s7462_s3, 4  ;;  %s35_s20 = sshll.u32 %s7463_s1, 4  ;;  %s126_s19 = int_to_ptr.vmem [resolvable:$true] %s125_s19  ;;  %s36_s20 = int_to_ptr.vmem [resolvable:$true] %s35_s20 }
  0x2e   :  { %s7289_s21 = scalar_lea.vmem %s126_s19, 4096  ;;  %p7294_p2 = scmp.lt.s32.totalorder %s126_s19, %s126_s19 }
  0x2f   :  { %p7290_p1 = scmp.ne.s32.totalorder %s126_s19, %s7289_s21  ;;  %p7295_p3 = scmp.lt.s32.totalorder %s7289_s21, %s7289_s21 }
  0x31   :  { %p7296_p4 = por %p7295_p3, %p7294_p2 }
  0x33   :  { %p7297_p5 = pnand %p7296_p4, %p7290_p1 }
  0x35   :  { %7300 = shalt.err (!%p7297_p5)
}
  0x36   :  { %s7464_s23 = smov 128   ;;  %s7465_s24 = smov 8  }
  0x37   :  { %131 = dma.hbm_to_vmem [thread:$0]  %s9571_s11, 4096, %s126_s19, [#allocation16], %s7464_s23, %s7464_s23, %s7465_s24  }
  0x38   :  { %s7309_s7 = scalar_lea.vmem %s36_s20, 1024  ;;  %p7314_p7 = scmp.lt.s32.totalorder %s36_s20, %s36_s20 }
  0x39   :  { %p7310_p6 = scmp.ne.s32.totalorder %s36_s20, %s7309_s7  ;;  %p7315_p8 = scmp.lt.s32.totalorder %s7309_s7, %s7309_s7 }
  0x3b   :  { %p7316_p9 = por %p7315_p8, %p7314_p7 }
  0x3d   :  { %p7317_p10 = pnand %p7316_p9, %p7310_p6 }
  0x3f   :  { %7320 = shalt.err (!%p7317_p10)
}
  0x40   :  { %s9707_s0 = sld [smem:[#allocation81_spill]]  ;;  %s7466_s3 = smov [#allocation8]  }
  0x41   :  { %s57_s1 = sshll.u32 %s7466_s3, 4  ;;  %s7467_s21 = smov [#allocation11]   ;;  %s58_s1 = int_to_ptr.vmem [resolvable:$true] %s57_s1 }
  0x42   :  { %s83_s11 = sshll.u32 %s7467_s21, 4  ;;  %s7329_s19 = scalar_lea.vmem %s58_s1, 8192  ;;  %s84_s11 = int_to_ptr.vmem [resolvable:$true] %s83_s11 }
  0x43   :  { %p7330_p11 = scmp.ne.s32.totalorder %s58_s1, %s7329_s19  ;;  %p7334_p12 = scmp.lt.s32.totalorder %s58_s1, %s58_s1 }
  0x44   :  { %p7335_p13 = scmp.lt.s32.totalorder %s7329_s19, %s7329_s19 }
  0x46   :  { %41 = dma.hbm_to_vmem [thread:$0]  %s9707_s0, 1024, %s36_s20, [#allocation4], %s7464_s23, %s7464_s23, %s7465_s24  }
  0x47   :  { %p7336_p0 = por %p7335_p13, %p7334_p12 }
  0x49   :  { %p7337_p1 = pnand %p7336_p0, %p7330_p11 }
  0x4b   :  { %7340 = shalt.err (!%p7337_p1)
}
  0x4c   :  { %s9708_s7 = sld [smem:[#allocation83_spill]]  ;;  %s7349_s20 = scalar_lea.vmem %s84_s11, 4096 }
  0x4d   :  { %p7350_p2 = scmp.ne.s32.totalorder %s84_s11, %s7349_s20  ;;  %p7354_p3 = scmp.lt.s32.totalorder %s84_s11, %s84_s11 }
  0x4e   :  { %p7355_p4 = scmp.lt.s32.totalorder %s7349_s20, %s7349_s20 }
  0x50   :  { %p7356_p5 = por %p7355_p4, %p7354_p3 }
  0x52   :  { %63 = dma.hbm_to_vmem [thread:$0]  %s9708_s7, 8192, %s58_s1, [#allocation7], %s7457_s22, %s7457_s22, %s7458_s2  }
  0x53   :  { %p7357_p6 = pnand %p7356_p5, %p7350_p2 }
  0x55   :  { %7360 = shalt.err (!%p7357_p6)
}
  0x56   :  { %89 = dma.hbm_to_vmem [thread:$0]  %s9565_s5, 4096, %s84_s11, [#allocation10], %s7460_s28, %s7460_s28, %s7461_s29  }
  0x57   :  { %s7468_s0 = smov [#allocation14]   ;;  %s7469_s21 = smov [#allocation17]  }
  0x58   :  { %s111_s3 = sshll.u32 %s7468_s0, 4  ;;  %s143_s22 = sshll.u32 %s7469_s21, 4  ;;  %s112_s3 = int_to_ptr.vmem [resolvable:$true] %s111_s3  ;;  %s144_s22 = int_to_ptr.vmem [resolvable:$true] %s143_s22 }
  0x59   :  { %s7369_s2 = scalar_lea.vmem %s112_s3, 4096  ;;  %p7374_p8 = scmp.lt.s32.totalorder %s112_s3, %s112_s3 }
  0x5a   :  { %p7370_p7 = scmp.ne.s32.totalorder %s112_s3, %s7369_s2  ;;  %p7375_p9 = scmp.lt.s32.totalorder %s7369_s2, %s7369_s2 }
  0x5c   :  { %p7376_p10 = por %p7375_p9, %p7374_p8 }
  0x5e   :  { %p7377_p11 = pnand %p7376_p10, %p7370_p7 }
  0x60   :  { %7380 = shalt.err (!%p7377_p11)
}
  0x61   :  { %117 = dma.hbm_to_vmem [thread:$0]  %s9569_s9, 4096, %s112_s3, [#allocation13], %s7460_s28, %s7460_s28, %s7461_s29  }
  0x62   :  { %s7389_s5 = scalar_lea.vmem %s144_s22, 2048  ;;  %p7394_p13 = scmp.lt.s32.totalorder %s144_s22, %s144_s22 }
  0x63   :  { %p7390_p12 = scmp.ne.s32.totalorder %s144_s22, %s7389_s5  ;;  %p7395_p0 = scmp.lt.s32.totalorder %s7389_s5, %s7389_s5 }
  0x65   :  { %p7396_p1 = por %p7395_p0, %p7394_p13 }
  0x67   :  { %p7397_p2 = pnand %p7396_p1, %p7390_p12 }
  0x69   :  { %7400 = shalt.err (!%p7397_p2)
}
  0x6a   :  { %149 = dma.hbm_to_vmem [thread:$0]  %s9575_s15, 2048, %s144_s22, [#allocation16], %s7464_s23, %s7464_s23, %s7465_s24  }
  0x6b   :  { %s7470_s27 = smov [#allocation18]  }
  0x6c   :  { %s157_s7 = sshll.u32 %s7470_s27, 4  ;;  %s158_s7 = int_to_ptr.vmem [resolvable:$true] %s157_s7 }
  0x6d   :  { %s7409_s20 = scalar_lea.vmem %s158_s7, 2048  ;;  %p7414_p4 = scmp.lt.s32.totalorder %s158_s7, %s158_s7 }
  0x6e   :  { %p7410_p3 = scmp.ne.s32.totalorder %s158_s7, %s7409_s20  ;;  %p7415_p5 = scmp.lt.s32.totalorder %s7409_s20, %s7409_s20 }
  0x70   :  { %p7416_p6 = por %p7415_p5, %p7414_p4 }
  0x72   :  { %p7417_p7 = pnand %p7416_p6, %p7410_p3 }
  0x74   :  { %7420 = shalt.err (!%p7417_p7)
}
  0x75   :  { %163 = dma.hbm_to_vmem [thread:$0]  %s9577_s17, 2048, %s158_s7, [#allocation19], %s7464_s23, %s7464_s23, %s7465_s24  }
  0x76   :  { %7441 = dma.done.wait [#allocation4], 1024  }
  0x77   :  { %7442 = vsyncadd [#allocation4], 4294966272 }
  0x78   :  { %7443 = dma.done.wait [#allocation7], 8320  }
  0x79   :  { %7444 = vsyncadd [#allocation7], 4294958976 }
  0x7a   :  { %7445 = dma.done.wait [#allocation10], 12288  }
  0x7b   :  { %7446 = vsyncadd [#allocation10], 4294955008 }
  0x7c   :  { %7447 = dma.done.wait [#allocation13], 8192  }
  0x7d   :  { %7448 = vsyncadd [#allocation13], 4294959104 }
  0x7e   :  { %7449 = dma.done.wait [#allocation16], 6144  }
  0x7f   :  { %7450 = vsyncadd [#allocation16], 4294961152 }
  0x80   :  { %7451 = dma.done.wait [#allocation19], 2048  }
  0x81   :  { %7452 = vsyncadd [#allocation19], 4294965248  ;;  %v9579_v0 = vmov 0.0   ;;  %v263_v1 = vld [vmem:[#allocation8 + $0x1e8] sm:$0xff]  ;;  %v265_v2 = vld [vmem:[#allocation8 + $0x1f8] sm:$0xff]  ;;  %vm2691_vm0 = vcmask 1040384  }
  0x82   :  { %352 = vmatprep.mubr.f32.mxu0 %v9579_v0  ;;  %465 = vmatprep.mubr.f32.mxu1 %v9579_v0  ;;  %v262_v3 = vld [vmem:[#allocation8 + $0x1e0] sm:$0xff]  ;;  %v264_v4 = vld [vmem:[#allocation8 + $0x1f0] sm:$0xff]  ;;  %v259_v5 = vld [vmem:[#allocation8 + $0x1c8] sm:$0xff]  ;;  %vm2700_vm1 = vcmask 1041408   ;;  %vm2709_vm2 = vcmask 1042432   ;;  %vm2718_vm3 = vcmask 1043456  }
  0x83   :  { %288 = vmatprep.subr.mxu0 %v263_v1  ;;  %401 = vmatprep.subr.mxu1 %v265_v2  ;;  %v261_v6 = vld [vmem:[#allocation8 + $0x1d8] sm:$0xff]  ;;  %v258_v7 = vld [vmem:[#allocation8 + $0x1c0] sm:$0xff]  ;;  %v260_v8 = vld [vmem:[#allocation8 + $0x1d0] sm:$0xff]  ;;  %vm2727_vm4 = vcmask 1044480   ;;  %vm2736_vm5 = vcmask 1045504   ;;  %vm2745_vm6 = vcmask 1046528  }
  0x84   :  { %289 = vmatpush1.msra.mxu0 %v262_v3  ;;  %402 = vmatpush1.msra.mxu1 %v264_v4  ;;  %v255_v9 = vld [vmem:[#allocation8 + $0x1a8] sm:$0xff]  ;;  %v257_v10 = vld [vmem:[#allocation8 + $0x1b8] sm:$0xff]  ;;  %v254_v11 = vld [vmem:[#allocation8 + $0x1a0] sm:$0xff]  ;;  %vm7473_vm7 = vmmov 0   ;;  %vm3979_vm11 = vcmask 64512   ;;  %s7475_s21 = smov [#allocation20]  }
  0x85   :  { %290 = vmatprep.subr.mxu0 %v259_v5  ;;  %403 = vmatprep.subr.mxu1 %v261_v6  ;;  %v256_v12 = vld [vmem:[#allocation8 + $0x1b0] sm:$0xff]  ;;  %v251_v13 = vld [vmem:[#allocation8 + $0x188] sm:$0xff]  ;;  %v253_v14 = vld [vmem:[#allocation8 + $0x198] sm:$0xff]  ;;  %s6452_s22 = sshll.u32 %s7475_s21, 4  ;;  %s6453_s22 = int_to_ptr.vmem [resolvable:$true] %s6452_s22 }
  0x86   :  { %291 = vmatpush1.msra.mxu0 %v258_v7  ;;  %404 = vmatpush1.msra.mxu1 %v260_v8  ;;  %v250_v15 = vld [vmem:[#allocation8 + $0x180] sm:$0xff]  ;;  %v252_v16 = vld [vmem:[#allocation8 + $0x190] sm:$0xff]  ;;  %v247_v17 = vld [vmem:[#allocation8 + $0x168] sm:$0xff]  ;;  %s7421_s2 = scalar_lea.vmem %s6453_s22, 128  ;;  %p7426_p9 = scmp.lt.s32.totalorder %s6453_s22, %s6453_s22 }
  0x87   :  { %292 = vmatprep.subr.mxu0 %v255_v9  ;;  %405 = vmatprep.subr.mxu1 %v257_v10  ;;  %v249_v18 = vld [vmem:[#allocation8 + $0x178] sm:$0xff]  ;;  %v246_v19 = vld [vmem:[#allocation8 + $0x160] sm:$0xff]  ;;  %v248_v20 = vld [vmem:[#allocation8 + $0x170] sm:$0xff]  ;;  %p7422_p8 = scmp.ne.s32.totalorder %s6453_s22, %s7421_s2  ;;  %p7427_p10 = scmp.lt.s32.totalorder %s7421_s2, %s7421_s2 }
  0x88   :  { %293 = vmatpush1.msra.mxu0 %v254_v11  ;;  %406 = vmatpush1.msra.mxu1 %v256_v12  ;;  %v243_v21 = vld [vmem:[#allocation8 + $0x148] sm:$0xff]  ;;  %v245_v22 = vld [vmem:[#allocation8 + $0x158] sm:$0xff]  ;;  %v242_v23 = vld [vmem:[#allocation8 + $0x140] sm:$0xff] }
  0x89   :  { %294 = vmatprep.subr.mxu0 %v251_v13  ;;  %407 = vmatprep.subr.mxu1 %v253_v14  ;;  %v244_v24 = vld [vmem:[#allocation8 + $0x150] sm:$0xff]  ;;  %v239_v25 = vld [vmem:[#allocation8 + $0x128] sm:$0xff]  ;;  %v241_v26 = vld [vmem:[#allocation8 + $0x138] sm:$0xff]  ;;  %p7428_p11 = por %p7427_p10, %p7426_p9 }
  0x8a   :  { %295 = vmatpush1.msra.mxu0 %v250_v15  ;;  %408 = vmatpush1.msra.mxu1 %v252_v16  ;;  %v238_v27 = vld [vmem:[#allocation8 + $0x120] sm:$0xff]  ;;  %v240_v28 = vld [vmem:[#allocation8 + $0x130] sm:$0xff]  ;;  %v235_v29 = vld [vmem:[#allocation8 + $0x108] sm:$0xff] }
  0x8b   :  { %296 = vmatprep.subr.mxu0 %v247_v17  ;;  %409 = vmatprep.subr.mxu1 %v249_v18  ;;  %v237_v30 = vld [vmem:[#allocation8 + $0x118] sm:$0xff]  ;;  %v234_v31 = vld [vmem:[#allocation8 + $0x100] sm:$0xff]  ;;  %v236_v32 = vld [vmem:[#allocation8 + $0x110] sm:$0xff]  ;;  %p7429_p12 = pnand %p7428_p11, %p7422_p8 }
  0x8c   :  { %297 = vmatpush1.msra.mxu0 %v246_v19  ;;  %410 = vmatpush1.msra.mxu1 %v248_v20  ;;  %v231_v33 = vld [vmem:[#allocation8 + $0xe8] sm:$0xff]  ;;  %v233_v34 = vld [vmem:[#allocation8 + $0xf8] sm:$0xff]  ;;  %v230_v35 = vld [vmem:[#allocation8 + $0xe0] sm:$0xff] }
  0x8d   :  { %298 = vmatprep.subr.mxu0 %v243_v21  ;;  %411 = vmatprep.subr.mxu1 %v245_v22  ;;  %v232_v36 = vld [vmem:[#allocation8 + $0xf0] sm:$0xff]  ;;  %v227_v37 = vld [vmem:[#allocation8 + $0xc8] sm:$0xff]  ;;  %v229_v38 = vld [vmem:[#allocation8 + $0xd8] sm:$0xff] }
  0x8e   :  { %299 = vmatpush1.msra.mxu0 %v242_v23  ;;  %412 = vmatpush1.msra.mxu1 %v244_v24  ;;  %v226_v39 = vld [vmem:[#allocation8 + $0xc0] sm:$0xff]  ;;  %v228_v40 = vld [vmem:[#allocation8 + $0xd0] sm:$0xff]  ;;  %v223_v41 = vld [vmem:[#allocation8 + $0xa8] sm:$0xff] }
  0x8f   :  { %300 = vmatprep.subr.mxu0 %v239_v25  ;;  %413 = vmatprep.subr.mxu1 %v241_v26  ;;  %v225_v42 = vld [vmem:[#allocation8 + $0xb8] sm:$0xff]  ;;  %v222_v43 = vld [vmem:[#allocation8 + $0xa0] sm:$0xff]  ;;  %v224_v44 = vld [vmem:[#allocation8 + $0xb0] sm:$0xff] }
  0x90   :  { %301 = vmatpush1.msra.mxu0 %v238_v27  ;;  %414 = vmatpush1.msra.mxu1 %v240_v28  ;;  %v219_v45 = vld [vmem:[#allocation8 + $0x88] sm:$0xff]  ;;  %v221_v46 = vld [vmem:[#allocation8 + $0x98] sm:$0xff]  ;;  %v218_v47 = vld [vmem:[#allocation8 + $0x80] sm:$0xff] }
  0x91   :  { %302 = vmatprep.subr.mxu0 %v235_v29  ;;  %415 = vmatprep.subr.mxu1 %v237_v30  ;;  %v220_v48 = vld [vmem:[#allocation8 + $0x90] sm:$0xff]  ;;  %v215_v49 = vld [vmem:[#allocation8 + $0x68] sm:$0xff]  ;;  %v217_v50 = vld [vmem:[#allocation8 + $0x78] sm:$0xff] }
  0x92   :  { %303 = vmatpush1.msra.mxu0 %v234_v31  ;;  %416 = vmatpush1.msra.mxu1 %v236_v32  ;;  %v214_v51 = vld [vmem:[#allocation8 + $0x60] sm:$0xff]  ;;  %v216_v52 = vld [vmem:[#allocation8 + $0x70] sm:$0xff]  ;;  %v211_v53 = vld [vmem:[#allocation8 + $0x48] sm:$0xff] }
  0x93   :  { %304 = vmatprep.subr.mxu0 %v231_v33  ;;  %417 = vmatprep.subr.mxu1 %v233_v34  ;;  %v213_v54 = vld [vmem:[#allocation8 + $0x58] sm:$0xff]  ;;  %v210_v55 = vld [vmem:[#allocation8 + $0x40] sm:$0xff]  ;;  %v212_v56 = vld [vmem:[#allocation8 + $0x50] sm:$0xff] }
  0x94   :  { %305 = vmatpush1.msra.mxu0 %v230_v35  ;;  %418 = vmatpush1.msra.mxu1 %v232_v36  ;;  %v207_v57 = vld [vmem:[#allocation8 + $0x28] sm:$0xff]  ;;  %v209_v58 = vld [vmem:[#allocation8 + $0x38] sm:$0xff]  ;;  %v206_v59 = vld [vmem:[#allocation8 + $0x20] sm:$0xff] }
  0x95   :  { %306 = vmatprep.subr.mxu0 %v227_v37  ;;  %419 = vmatprep.subr.mxu1 %v229_v38  ;;  %v208_v60 = vld [vmem:[#allocation8 + $0x30] sm:$0xff]  ;;  %v203_v61 = vld [vmem:[#allocation8 + $0x8] sm:$0xff]  ;;  %v205_v62 = vld [vmem:[#allocation8 + $0x18] sm:$0xff] }
  0x96   :  { %307 = vmatpush1.msra.mxu0 %v226_v39  ;;  %420 = vmatpush1.msra.mxu1 %v228_v40  ;;  %v202_v63 = vld [vmem:[#allocation8] sm:$0xff]  ;;  %v204_v1 = vld [vmem:[#allocation8 + $0x10] sm:$0xff]  ;;  %v194_v2 = vld [vmem:[#allocation3] sm:$0xff] }
  0x97   :  { %308 = vmatprep.subr.mxu0 %v223_v41  ;;  %421 = vmatprep.subr.mxu1 %v225_v42  ;;  %v7630_v3 = vld [vmem:[#allocation9 + $0x1e8] sm:$0xff]  ;;  %v7632_v4 = vld [vmem:[#allocation9 + $0x1f8] sm:$0xff]  ;;  %v7634_v5 = vld [vmem:[#allocation9 + $0x1e0] sm:$0xff] }
  0x98   :  { %309 = vmatpush1.msra.mxu0 %v222_v43  ;;  %422 = vmatpush1.msra.mxu1 %v224_v44  ;;  %9709 = vst [vmem:[#allocation28_spill] sm:$0xff] %v7630_v3  ;;  %9710 = vst [vmem:[#allocation29_spill] sm:$0xff] %v7632_v4  ;;  %v7636_v6 = vld [vmem:[#allocation9 + $0x1f0] sm:$0xff]  ;;  %v7638_v7 = vld [vmem:[#allocation9 + $0x1c8] sm:$0xff] }
  0x99   :  { %310 = vmatprep.subr.mxu0 %v219_v45  ;;  %423 = vmatprep.subr.mxu1 %v221_v46  ;;  %v7640_v8 = vld [vmem:[#allocation9 + $0x1d8] sm:$0xff]  ;;  %v7646_v9 = vld [vmem:[#allocation9 + $0x1c0] sm:$0xff]  ;;  %v7648_v10 = vld [vmem:[#allocation9 + $0x1d0] sm:$0xff] }
  0x9a   :  { %311 = vmatpush1.msra.mxu0 %v218_v47  ;;  %424 = vmatpush1.msra.mxu1 %v220_v48  ;;  %v195_v11 = vld [vmem:[#allocation3 + $0x8] sm:$0xff]  ;;  %v7654_v12 = vld [vmem:[#allocation9 + $0x1a8] sm:$0xff]  ;;  %v7656_v13 = vld [vmem:[#allocation9 + $0x1b8] sm:$0xff] }
  0x9b   :  { %312 = vmatprep.subr.mxu0 %v215_v49  ;;  %425 = vmatprep.subr.mxu1 %v217_v50  ;;  %v7660_v14 = vld [vmem:[#allocation9 + $0x1a0] sm:$0xff]  ;;  %v7662_v15 = vld [vmem:[#allocation9 + $0x1b0] sm:$0xff]  ;;  %v7664_v16 = vld [vmem:[#allocation9 + $0x188] sm:$0xff] }
  0x9c   :  { %313 = vmatpush1.msra.mxu0 %v214_v51  ;;  %426 = vmatpush1.msra.mxu1 %v216_v52  ;;  %v7666_v17 = vld [vmem:[#allocation9 + $0x198] sm:$0xff]  ;;  %v7672_v18 = vld [vmem:[#allocation9 + $0x180] sm:$0xff]  ;;  %v7674_v19 = vld [vmem:[#allocation9 + $0x190] sm:$0xff] }
  0x9d   :  { %314 = vmatprep.subr.mxu0 %v211_v53  ;;  %427 = vmatprep.subr.mxu1 %v213_v54  ;;  %v196_v20 = vld [vmem:[#allocation3 + $0x10] sm:$0xff]  ;;  %v7682_v22 = vld [vmem:[#allocation9 + $0x178] sm:$0xff]  ;;  %v7686_v23 = vld [vmem:[#allocation9 + $0x160] sm:$0xff] }
  0x9e   :  { %315 = vmatpush1.msra.mxu0 %v210_v55  ;;  %428 = vmatpush1.msra.mxu1 %v212_v56  ;;  %v7680_v21 = vld [vmem:[#allocation9 + $0x168] sm:$0xff]  ;;  %v7688_v24 = vld [vmem:[#allocation9 + $0x170] sm:$0xff]  ;;  %v7692_v26 = vld [vmem:[#allocation9 + $0x158] sm:$0xff] }
  0x9f   :  { %316 = vmatprep.subr.mxu0 %v207_v57  ;;  %429 = vmatprep.subr.mxu1 %v209_v58  ;;  %v7690_v25 = vld [vmem:[#allocation9 + $0x148] sm:$0xff]  ;;  %v7698_v27 = vld [vmem:[#allocation9 + $0x140] sm:$0xff]  ;;  %v7700_v28 = vld [vmem:[#allocation9 + $0x150] sm:$0xff] }
  0xa0   :  { %317 = vmatpush1.msra.mxu0 %v206_v59  ;;  %430 = vmatpush1.msra.mxu1 %v208_v60  ;;  %v197_v29 = vld [vmem:[#allocation3 + $0x18] sm:$0xff]  ;;  %v7706_v30 = vld [vmem:[#allocation9 + $0x128] sm:$0xff]  ;;  %v7708_v31 = vld [vmem:[#allocation9 + $0x138] sm:$0xff] }
  0xa1   :  { %318 = vmatprep.subr.mxu0 %v203_v61  ;;  %431 = vmatprep.subr.mxu1 %v205_v62  ;;  %v7712_v32 = vld [vmem:[#allocation9 + $0x120] sm:$0xff]  ;;  %v7714_v33 = vld [vmem:[#allocation9 + $0x130] sm:$0xff]  ;;  %v7716_v34 = vld [vmem:[#allocation9 + $0x108] sm:$0xff] }
  0xa2   :  { %319 = vmatpush1.msra.mxu0 %v202_v63  ;;  %432 = vmatpush1.msra.mxu1 %v204_v1  ;;  %v7718_v35 = vld [vmem:[#allocation9 + $0x118] sm:$0xff]  ;;  %v7724_v36 = vld [vmem:[#allocation9 + $0x100] sm:$0xff]  ;;  %v7726_v37 = vld [vmem:[#allocation9 + $0x110] sm:$0xff] }
  0xa3   :  { %353 = vmatmul.mubr.f32.vlgmr.msra.gmra.mxu0 %v194_v2  ;;  %466 = vmatmul.mubr.f32.vlgmr.msra.gmra.mxu1 %v194_v2  ;;  %v198_v38 = vld [vmem:[#allocation3 + $0x20] sm:$0xff]  ;;  %v7732_v39 = vld [vmem:[#allocation9 + $0xe8] sm:$0xff]  ;;  %v7738_v41 = vld [vmem:[#allocation9 + $0xe0] sm:$0xff] }
  0xa4   :  { %614 = vmatprep.subr.mxu0 %v7630_v3  ;;  %685 = vmatprep.subr.mxu1 %v7632_v4  ;;  %v7734_v40 = vld [vmem:[#allocation9 + $0xf8] sm:$0xff]  ;;  %v7740_v42 = vld [vmem:[#allocation9 + $0xf0] sm:$0xff]  ;;  %v7742_v43 = vld [vmem:[#allocation9 + $0xc8] sm:$0xff] }
  0xa5   :  { %615 = vmatpush1.msra.mxu0 %v7634_v5  ;;  %686 = vmatpush1.msra.mxu1 %v7636_v6  ;;  %v7744_v44 = vld [vmem:[#allocation9 + $0xd8] sm:$0xff]  ;;  %v7750_v45 = vld [vmem:[#allocation9 + $0xc0] sm:$0xff]  ;;  %v7752_v46 = vld [vmem:[#allocation9 + $0xd0] sm:$0xff] }
  0xa6   :  { %616 = vmatprep.subr.mxu0 %v7638_v7  ;;  %687 = vmatprep.subr.mxu1 %v7640_v8  ;;  %v199_v47 = vld [vmem:[#allocation3 + $0x28] sm:$0xff]  ;;  %v7758_v48 = vld [vmem:[#allocation9 + $0xa8] sm:$0xff]  ;;  %v7760_v49 = vld [vmem:[#allocation9 + $0xb8] sm:$0xff] }
  0xa7   :  { %358 = vmatprep.mubr.f32.mxu0 %v9579_v0  ;;  %471 = vmatprep.mubr.f32.mxu1 %v9579_v0  ;;  %v7764_v50 = vld [vmem:[#allocation9 + $0xa0] sm:$0xff]  ;;  %v7766_v51 = vld [vmem:[#allocation9 + $0xb0] sm:$0xff]  ;;  %v7768_v52 = vld [vmem:[#allocation9 + $0x88] sm:$0xff] }
  0xa8   :  { %617 = vmatpush1.msra.mxu0 %v7646_v9  ;;  %688 = vmatpush1.msra.mxu1 %v7648_v10  ;;  %9711 = vst [vmem:[#allocation30_spill] sm:$0xff] %v7766_v51  ;;  %9712 = vst [vmem:[#allocation31_spill] sm:$0xff] %v7768_v52  ;;  %v7770_v53 = vld [vmem:[#allocation9 + $0x98] sm:$0xff]  ;;  %v7776_v54 = vld [vmem:[#allocation9 + $0x80] sm:$0xff] }
  0xa9   :  { %359 = vmatmul.mubr.f32.gmra.mxu0 %v195_v11  ;;  %472 = vmatmul.mubr.f32.gmra.mxu1 %v195_v11  ;;  %9713 = vst [vmem:[#allocation32_spill] sm:$0xff] %v7770_v53  ;;  %9714 = vst [vmem:[#allocation33_spill] sm:$0xff] %v7776_v54  ;;  %v7778_v55 = vld [vmem:[#allocation9 + $0x90] sm:$0xff]  ;;  %v200_v56 = vld [vmem:[#allocation3 + $0x30] sm:$0xff] }
  0xaa   :  { %618 = vmatprep.subr.mxu0 %v7654_v12  ;;  %689 = vmatprep.subr.mxu1 %v7656_v13  ;;  %9715 = vst [vmem:[#allocation34_spill] sm:$0xff] %v7778_v55  ;;  %v7784_v57 = vld [vmem:[#allocation9 + $0x68] sm:$0xff]  ;;  %v7786_v58 = vld [vmem:[#allocation9 + $0x78] sm:$0xff]  ;;  %v7790_v59 = vld [vmem:[#allocation9 + $0x60] sm:$0xff] }
  0xab   :  { %619 = vmatpush1.msra.mxu0 %v7660_v14  ;;  %690 = vmatpush1.msra.mxu1 %v7662_v15  ;;  %9716 = vst [vmem:[#allocation35_spill] sm:$0xff] %v7784_v57  ;;  %9717 = vst [vmem:[#allocation36_spill] sm:$0xff] %v7786_v58  ;;  %v7792_v60 = vld [vmem:[#allocation9 + $0x70] sm:$0xff]  ;;  %v7794_v61 = vld [vmem:[#allocation9 + $0x48] sm:$0xff] }
  0xac   :  { %620 = vmatprep.subr.mxu0 %v7664_v16  ;;  %691 = vmatprep.subr.mxu1 %v7666_v17  ;;  %9718 = vst [vmem:[#allocation37_spill] sm:$0xff] %v7790_v59  ;;  %9719 = vst [vmem:[#allocation38_spill] sm:$0xff] %v7792_v60  ;;  %v7796_v62 = vld [vmem:[#allocation9 + $0x58] sm:$0xff]  ;;  %v7802_v63 = vld [vmem:[#allocation9 + $0x40] sm:$0xff] }
  0xad   :  { %364 = vmatprep.mubr.f32.mxu0 %v9579_v0  ;;  %477 = vmatprep.mubr.f32.mxu1 %v9579_v0  ;;  %9720 = vst [vmem:[#allocation39_spill] sm:$0xff] %v7794_v61  ;;  %9721 = vst [vmem:[#allocation40_spill] sm:$0xff] %v7796_v62  ;;  %v7804_v1 = vld [vmem:[#allocation9 + $0x50] sm:$0xff]  ;;  %v7810_v11 = vld [vmem:[#allocation9 + $0x28] sm:$0xff] }
  0xae   :  { %621 = vmatpush1.msra.mxu0 %v7672_v18  ;;  %692 = vmatpush1.msra.mxu1 %v7674_v19  ;;  %9722 = vst [vmem:[#allocation41_spill] sm:$0xff] %v7802_v63  ;;  %9723 = vst [vmem:[#allocation42_spill] sm:$0xff] %v7804_v1  ;;  %v201_v2 = vld [vmem:[#allocation3 + $0x38] sm:$0xff] }
  0xaf   :  { %365 = vmatmul.mubr.f32.gmra.mxu0 %v196_v20  ;;  %478 = vmatmul.mubr.f32.gmra.mxu1 %v196_v20  ;;  %9724 = vst [vmem:[#allocation43_spill] sm:$0xff] %v7810_v11  ;;  %v7812_v20 = vld [vmem:[#allocation9 + $0x38] sm:$0xff] }
  0xb0   :  { %622 = vmatprep.subr.mxu0 %v7680_v21  ;;  %693 = vmatprep.subr.mxu1 %v7682_v22  ;;  %9725 = vst [vmem:[#allocation44_spill] sm:$0xff] %v7812_v20 }
  0xb1   :  { %623 = vmatpush1.msra.mxu0 %v7686_v23  ;;  %694 = vmatpush1.msra.mxu1 %v7688_v24 }
  0xb2   :  { %624 = vmatprep.subr.mxu0 %v7690_v25  ;;  %695 = vmatprep.subr.mxu1 %v7692_v26 }
  0xb3   :  { %370 = vmatprep.mubr.f32.mxu0 %v9579_v0  ;;  %483 = vmatprep.mubr.f32.mxu1 %v9579_v0 }
  0xb4   :  { %625 = vmatpush1.msra.mxu0 %v7698_v27  ;;  %696 = vmatpush1.msra.mxu1 %v7700_v28 }
  0xb5   :  { %371 = vmatmul.mubr.f32.gmra.mxu0 %v197_v29  ;;  %484 = vmatmul.mubr.f32.gmra.mxu1 %v197_v29  ;;  %v7816_v29 = vld [vmem:[#allocation9 + $0x20] sm:$0xff] }
  0xb6   :  { %626 = vmatprep.subr.mxu0 %v7706_v30  ;;  %697 = vmatprep.subr.mxu1 %v7708_v31  ;;  %9726 = vst [vmem:[#allocation45_spill] sm:$0xff] %v7816_v29 }
  0xb7   :  { %627 = vmatpush1.msra.mxu0 %v7712_v32  ;;  %698 = vmatpush1.msra.mxu1 %v7714_v33 }
  0xb8   :  { %628 = vmatprep.subr.mxu0 %v7716_v34  ;;  %699 = vmatprep.subr.mxu1 %v7718_v35 }
  0xb9   :  { %376 = vmatprep.mubr.f32.mxu0 %v9579_v0  ;;  %489 = vmatprep.mubr.f32.mxu1 %v9579_v0 }
  0xba   :  { %629 = vmatpush1.msra.mxu0 %v7724_v36  ;;  %700 = vmatpush1.msra.mxu1 %v7726_v37 }
  0xbb   :  { %377 = vmatmul.mubr.f32.gmra.mxu0 %v198_v38  ;;  %490 = vmatmul.mubr.f32.gmra.mxu1 %v198_v38  ;;  %v7818_v38 = vld [vmem:[#allocation9 + $0x30] sm:$0xff] }
  0xbc   :  { %630 = vmatprep.subr.mxu0 %v7732_v39  ;;  %701 = vmatprep.subr.mxu1 %v7734_v40  ;;  %9727 = vst [vmem:[#allocation46_spill] sm:$0xff] %v7818_v38 }
  0xbd   :  { %631 = vmatpush1.msra.mxu0 %v7738_v41  ;;  %702 = vmatpush1.msra.mxu1 %v7740_v42 }
  0xbe   :  { %632 = vmatprep.subr.mxu0 %v7742_v43  ;;  %703 = vmatprep.subr.mxu1 %v7744_v44 }
  0xbf   :  { %382 = vmatprep.mubr.f32.mxu0 %v9579_v0  ;;  %495 = vmatprep.mubr.f32.mxu1 %v9579_v0 }
  0xc0   :  { %633 = vmatpush1.msra.mxu0 %v7750_v45  ;;  %704 = vmatpush1.msra.mxu1 %v7752_v46 }
  0xc1   :  { %383 = vmatmul.mubr.f32.gmra.mxu0 %v199_v47  ;;  %496 = vmatmul.mubr.f32.gmra.mxu1 %v199_v47  ;;  %v7820_v47 = vld [vmem:[#allocation9 + $0x8] sm:$0xff] }
  0xc2   :  { %634 = vmatprep.subr.mxu0 %v7758_v48  ;;  %705 = vmatprep.subr.mxu1 %v7760_v49  ;;  %9728 = vst [vmem:[#allocation47_spill] sm:$0xff] %v7820_v47 }
  0xc3   :  { %635 = vmatpush1.msra.mxu0 %v7764_v50  ;;  %706 = vmatpush1.msra.mxu1 %v7766_v51 }
  0xc4   :  { %636 = vmatprep.subr.mxu0 %v7768_v52  ;;  %707 = vmatprep.subr.mxu1 %v7770_v53 }
  0xc5   :  { %388 = vmatprep.mubr.f32.mxu0 %v9579_v0  ;;  %501 = vmatprep.mubr.f32.mxu1 %v9579_v0 }
  0xc6   :  { %637 = vmatpush1.msra.mxu0 %v7776_v54  ;;  %708 = vmatpush1.msra.mxu1 %v7778_v55 }
  0xc7   :  { %389 = vmatmul.mubr.f32.gmra.mxu0 %v200_v56  ;;  %502 = vmatmul.mubr.f32.gmra.mxu1 %v200_v56  ;;  %v7822_v56 = vld [vmem:[#allocation9 + $0x18] sm:$0xff] }
  0xc8   :  { %638 = vmatprep.subr.mxu0 %v7784_v57  ;;  %709 = vmatprep.subr.mxu1 %v7786_v58  ;;  %9729 = vst [vmem:[#allocation48_spill] sm:$0xff] %v7822_v56 }
  0xc9   :  { %639 = vmatpush1.msra.mxu0 %v7790_v59  ;;  %710 = vmatpush1.msra.mxu1 %v7792_v60 }
  0xca   :  { %640 = vmatprep.subr.mxu0 %v7794_v61  ;;  %711 = vmatprep.subr.mxu1 %v7796_v62 }
  0xcb   :  { %394 = vmatprep.mubr.f32.mxu0 %v9579_v0  ;;  %507 = vmatprep.mubr.f32.mxu1 %v9579_v0  ;;  %v7826_v0 = vld [vmem:[#allocation9] sm:$0xff] }
  0xcc   :  { %641 = vmatpush1.msra.mxu0 %v7802_v63  ;;  %712 = vmatpush1.msra.mxu1 %v7804_v1  ;;  %9730 = vst [vmem:[#allocation49_spill] sm:$0xff] %v7826_v0  ;;  %v7830_v1 = vld [vmem:[#allocation9 + $0x10] sm:$0xff] }
  0xcd   :  { %395 = vmatmul.mubr.f32.gmra.mxu0 %v201_v2  ;;  %508 = vmatmul.mubr.f32.gmra.mxu1 %v201_v2  ;;  %9731 = vst [vmem:[#allocation50_spill] sm:$0xff] %v7830_v1  ;;  %v9732_v2 = vmov 0.0  }
  0xce   :  { %642 = vmatprep.subr.mxu0 %v7810_v11  ;;  %713 = vmatprep.subr.mxu1 %v7812_v20 }
  0xcf   :  { %643 = vmatpush1.msra.mxu0 %v7816_v29  ;;  %714 = vmatpush1.msra.mxu1 %v7818_v38 }
  0xd0   :  { %644 = vmatprep.subr.mxu0 %v7820_v47  ;;  %715 = vmatprep.subr.mxu1 %v7822_v56 }
  0xd1   :  { %645 = vmatpush1.msra.mxu0 %v7826_v0  ;;  %678 = vmatprep.mubr.f32.mxu0 %v9732_v2 }
  0xd2   :  { %716 = vmatpush1.msra.mxu1 %v7830_v1  ;;  %749 = vmatprep.mubr.f32.mxu1 %v9732_v2 }
  0xd3   :  { %679 = vmatmul.mubr.f32.vlgmr.msra.gmra.mxu0 %v9732_v2  ;;  %750 = vmatmul.mubr.f32.vlgmr.msra.gmra.mxu1 %v9732_v2 }
  0xd4   :  { %788 = vmatprep.subr.mxu0 %v7630_v3  ;;  %859 = vmatprep.subr.mxu1 %v7632_v4 }
  0xd5   :  { %789 = vmatpush1.msra.mxu0 %v7634_v5  ;;  %860 = vmatpush1.msra.mxu1 %v7636_v6 }
  0xd6   :  { %790 = vmatprep.subr.mxu0 %v7638_v7  ;;  %861 = vmatprep.subr.mxu1 %v7640_v8 }
  0xd7   :  { %791 = vmatpush1.msra.mxu0 %v7646_v9  ;;  %862 = vmatpush1.msra.mxu1 %v7648_v10 }
  0xd8   :  { %792 = vmatprep.subr.mxu0 %v7654_v12  ;;  %863 = vmatprep.subr.mxu1 %v7656_v13 }
  0xd9   :  { %793 = vmatpush1.msra.mxu0 %v7660_v14  ;;  %864 = vmatpush1.msra.mxu1 %v7662_v15 }
  0xda   :  { %794 = vmatprep.subr.mxu0 %v7664_v16  ;;  %865 = vmatprep.subr.mxu1 %v7666_v17 }
  0xdb   :  { %795 = vmatpush1.msra.mxu0 %v7672_v18  ;;  %866 = vmatpush1.msra.mxu1 %v7674_v19 }
  0xdc   :  { %796 = vmatprep.subr.mxu0 %v7680_v21  ;;  %867 = vmatprep.subr.mxu1 %v7682_v22 }
  0xdd   :  { %797 = vmatpush1.msra.mxu0 %v7686_v23  ;;  %868 = vmatpush1.msra.mxu1 %v7688_v24 }
  0xde   :  { %798 = vmatprep.subr.mxu0 %v7690_v25  ;;  %869 = vmatprep.subr.mxu1 %v7692_v26 }
  0xdf   :  { %799 = vmatpush1.msra.mxu0 %v7698_v27  ;;  %870 = vmatpush1.msra.mxu1 %v7700_v28 }
  0xe0   :  { %800 = vmatprep.subr.mxu0 %v7706_v30  ;;  %871 = vmatprep.subr.mxu1 %v7708_v31 }
  0xe1   :  { %801 = vmatpush1.msra.mxu0 %v7712_v32  ;;  %872 = vmatpush1.msra.mxu1 %v7714_v33 }
  0xe2   :  { %802 = vmatprep.subr.mxu0 %v7716_v34  ;;  %873 = vmatprep.subr.mxu1 %v7718_v35 }
  0xe3   :  { %803 = vmatpush1.msra.mxu0 %v7724_v36  ;;  %874 = vmatpush1.msra.mxu1 %v7726_v37 }
  0xe4   :  { %804 = vmatprep.subr.mxu0 %v7732_v39  ;;  %875 = vmatprep.subr.mxu1 %v7734_v40 }
  0xe5   :  { %805 = vmatpush1.msra.mxu0 %v7738_v41  ;;  %876 = vmatpush1.msra.mxu1 %v7740_v42 }
  0xe6   :  { %806 = vmatprep.subr.mxu0 %v7742_v43  ;;  %877 = vmatprep.subr.mxu1 %v7744_v44 }
  0xe7   :  { %807 = vmatpush1.msra.mxu0 %v7750_v45  ;;  %878 = vmatpush1.msra.mxu1 %v7752_v46 }
  0xe8   :  { %808 = vmatprep.subr.mxu0 %v7758_v48  ;;  %879 = vmatprep.subr.mxu1 %v7760_v49 }
  0xe9   :  { %809 = vmatpush1.msra.mxu0 %v7764_v50  ;;  %880 = vmatpush1.msra.mxu1 %v7766_v51 }
  0xea   :  { %810 = vmatprep.subr.mxu0 %v7768_v52  ;;  %881 = vmatprep.subr.mxu1 %v7770_v53  ;;  %v9733_v52 = vld [vmem:[#allocation42_spill] sm:$0xff] }
  0xeb   :  { %811 = vmatpush1.msra.mxu0 %v7776_v54  ;;  %882 = vmatpush1.msra.mxu1 %v7778_v55 }
  0xec   :  { %812 = vmatprep.subr.mxu0 %v7784_v57  ;;  %883 = vmatprep.subr.mxu1 %v7786_v58 }
  0xed   :  { %813 = vmatpush1.msra.mxu0 %v7790_v59  ;;  %884 = vmatpush1.msra.mxu1 %v7792_v60 }
  0xee   :  { %814 = vmatprep.subr.mxu0 %v7794_v61  ;;  %885 = vmatprep.subr.mxu1 %v7796_v62 }
  0xef   :  { %815 = vmatpush1.msra.mxu0 %v7802_v63  ;;  %886 = vmatpush1.msra.mxu1 %v9733_v52 }
  0xf0   :  { %816 = vmatprep.subr.mxu0 %v7810_v11  ;;  %887 = vmatprep.subr.mxu1 %v7812_v20  ;;  %v268_v20 = vlaneseq }
  0xf1   :  { %817 = vmatpush1.msra.mxu0 %v7816_v29  ;;  %888 = vmatpush1.msra.mxu1 %v7818_v38 }
  0xf2   :  { %818 = vmatprep.subr.mxu0 %v7820_v47  ;;  %889 = vmatprep.subr.mxu1 %v7822_v56  ;;  %v7908_v29 = vshrl.u32 %v268_v20, 7 }
  0xf3   :  { %819 = vmatpush1.msra.mxu0 %v7826_v0  ;;  %852 = vmatprep.mubr.f32.mxu0 %v9732_v2 }
  0xf4   :  { %890 = vmatpush1.msra.mxu1 %v7830_v1  ;;  %923 = vmatprep.mubr.f32.mxu1 %v9732_v2  ;;  %9734 = vst [vmem:[#allocation51_spill] sm:$0xff] %v7908_v29  ;;  %v7915_v56 = vsub.s32 0, %v7908_v29  ;;  %v9622_v0 = vsub.s32 2, %v7908_v29  ;;  %v266_v1 = vld [vmem:[%s9564_s4] sm:$0xf]  ;;  %v7926_v20 = vsub.s32 1, %v7908_v29 }
  0xf5   :  { %962 = vmatprep.subr.mxu0 %v7630_v3  ;;  %1033 = vmatprep.subr.mxu1 %v7632_v4  ;;  %v9631_v4 = vsub.s32 3, %v7908_v29 }
  0xf6   :  { %9735 = vst [vmem:[#allocation52_spill] sm:$0xff] %v7915_v56  ;;  %9736 = vst [vmem:[#allocation53_spill] sm:$0xff] %v7926_v20  ;;  %v271_v11 = vrot.slane %v266_v1, %v7915_v56  ;;  %v7932_v52 = vrot.slane %v266_v1, %v9622_v0  ;;  %v275_v61 = vrot.slane %v266_v1, %v7926_v20 }
  0xf7   :  { %v7937_v60 = vrot.slane %v266_v1, %v9631_v4 }
 0x163   :  { %v7910_v38 = vpop.f32.mrf.mxu0  ;;  %v7912_v47 = vpop.f32.mrf.mxu1 }
 0x165   :  { %v7921_v2 = vpop.f32.mrf.mxu0  ;;  %v7923_v3 = vpop.f32.mrf.mxu1 }
 0x169   :  { %v360_v63 = vpop.f32.mrf.mxu0  ;;  %v473_v62 = vpop.f32.mrf.mxu1 }
 0x16a   :  { %v7939_v59 = vadd.f32 %v360_v63, %v271_v11  ;;  %v7942_v58 = vadd.f32 %v473_v62, %v7932_v52 }
 0x16b   :  { %v362_v57 = vpop.f32.mrf.mxu0  ;;  %v475_v55 = vpop.f32.mrf.mxu1 }
 0x16c   :  { %9737 = vst [vmem:[#allocation54_spill] sm:$0xff] %v7942_v58  ;;  %v7944_v56 = vadd.f32 %v362_v57, %v275_v61  ;;  %v7947_v0 = vadd.f32 %v475_v55, %v7937_v60 }
 0x16e   :  { %9738 = vst [vmem:[#allocation55_spill] sm:$0xff] %v7944_v56  ;;  %9739 = vst [vmem:[#allocation56_spill] sm:$0xff] %v7947_v0 }
 0x16f   :  { %v366_v54 = vpop.f32.mrf.mxu0  ;;  %v479_v53 = vpop.f32.mrf.mxu1 }
 0x170   :  { %v7949_v51 = vadd.f32 %v366_v54, %v271_v11  ;;  %v7952_v20 = vadd.f32 %v479_v53, %v7932_v52 }
 0x171   :  { %v368_v1 = vpop.f32.mrf.mxu0  ;;  %v481_v63 = vpop.f32.mrf.mxu1 }
 0x172   :  { %9740 = vst [vmem:[#allocation57_spill] sm:$0xff] %v7949_v51  ;;  %9741 = vst [vmem:[#allocation58_spill] sm:$0xff] %v7952_v20  ;;  %v7954_v4 = vadd.f32 %v368_v1, %v275_v61  ;;  %v7957_v62 = vadd.f32 %v481_v63, %v7937_v60 }
 0x174   :  { %9742 = vst [vmem:[#allocation59_spill] sm:$0xff] %v7954_v4  ;;  %9743 = vst [vmem:[#allocation60_spill] sm:$0xff] %v7957_v62 }
 0x175   :  { %v372_v29 = vpop.f32.mrf.mxu0  ;;  %v485_v57 = vpop.f32.mrf.mxu1 }
 0x176   :  { %v7959_v58 = vadd.f32 %v372_v29, %v271_v11  ;;  %v7962_v55 = vadd.f32 %v485_v57, %v7932_v52 }
 0x177   :  { %v374_v0 = vpop.f32.mrf.mxu0  ;;  %v487_v54 = vpop.f32.mrf.mxu1 }
 0x178   :  { %9744 = vst [vmem:[#allocation61_spill] sm:$0xff] %v7959_v58  ;;  %9745 = vst [vmem:[#allocation62_spill] sm:$0xff] %v7962_v55  ;;  %v7964_v51 = vadd.f32 %v374_v0, %v275_v61  ;;  %v7967_v53 = vadd.f32 %v487_v54, %v7937_v60 }
 0x17a   :  { %9746 = vst [vmem:[#allocation63_spill] sm:$0xff] %v7964_v51  ;;  %9747 = vst [vmem:[#allocation64_spill] sm:$0xff] %v7967_v53 }
 0x17b   :  { %v378_v20 = vpop.f32.mrf.mxu0  ;;  %v491_v1 = vpop.f32.mrf.mxu1 }
 0x17c   :  { %v7969_v4 = vadd.f32 %v378_v20, %v271_v11  ;;  %v7972_v63 = vadd.f32 %v491_v1, %v7932_v52 }
 0x17d   :  { %v380_v62 = vpop.f32.mrf.mxu0  ;;  %v493_v29 = vpop.f32.mrf.mxu1 }
 0x17e   :  { %9748 = vst [vmem:[#allocation65_spill] sm:$0xff] %v7969_v4  ;;  %9749 = vst [vmem:[#allocation66_spill] sm:$0xff] %v7972_v63  ;;  %v7974_v58 = vadd.f32 %v380_v62, %v275_v61  ;;  %v7977_v57 = vadd.f32 %v493_v29, %v7937_v60 }
 0x180   :  { %9750 = vst [vmem:[#allocation67_spill] sm:$0xff] %v7974_v58  ;;  %9751 = vst [vmem:[#allocation68_spill] sm:$0xff] %v7977_v57 }
 0x181   :  { %v384_v55 = vpop.f32.mrf.mxu0  ;;  %v497_v0 = vpop.f32.mrf.mxu1 }
 0x182   :  { %v7979_v51 = vadd.f32 %v384_v55, %v271_v11  ;;  %v7982_v54 = vadd.f32 %v497_v0, %v7932_v52 }
 0x183   :  { %v386_v53 = vpop.f32.mrf.mxu0  ;;  %v499_v20 = vpop.f32.mrf.mxu1 }
 0x184   :  { %9752 = vst [vmem:[#allocation69_spill] sm:$0xff] %v7979_v51  ;;  %9753 = vst [vmem:[#allocation70_spill] sm:$0xff] %v7982_v54  ;;  %v7984_v4 = vadd.f32 %v386_v53, %v275_v61  ;;  %v7987_v1 = vadd.f32 %v499_v20, %v7937_v60 }
 0x186   :  { %9754 = vst [vmem:[#allocation71_spill] sm:$0xff] %v7984_v4  ;;  %9755 = vst [vmem:[#allocation72_spill] sm:$0xff] %v7987_v1 }
 0x187   :  { %v390_v63 = vpop.f32.mrf.mxu0  ;;  %v503_v62 = vpop.f32.mrf.mxu1 }
 0x188   :  { %v7989_v58 = vadd.f32 %v390_v63, %v271_v11  ;;  %v7992_v29 = vadd.f32 %v503_v62, %v7932_v52 }
 0x189   :  { %v392_v57 = vpop.f32.mrf.mxu0  ;;  %v505_v55 = vpop.f32.mrf.mxu1 }
 0x18a   :  { %9756 = vst [vmem:[#allocation73_spill] sm:$0xff] %v7989_v58  ;;  %9757 = vst [vmem:[#allocation74_spill] sm:$0xff] %v7992_v29  ;;  %v7994_v51 = vadd.f32 %v392_v57, %v275_v61  ;;  %v7997_v0 = vadd.f32 %v505_v55, %v7937_v60  ;;  %v355_v57 = vadd.f32 %v7910_v38, %v271_v11 }
 0x18b   :  { %v357_v55 = vadd.f32 %v7921_v2, %v275_v61 }
 0x18c   :  { %9758 = vst [vmem:[#allocation75_spill] sm:$0xff] %v7994_v51  ;;  %9759 = vst [vmem:[#allocation76_spill] sm:$0xff] %v7997_v0 }
 0x18d   :  { %v396_v54 = vpop.f32.mrf.mxu0  ;;  %v509_v53 = vpop.f32.mrf.mxu1 }
 0x18e   :  { %v7999_v4 = vadd.f32 %v396_v54, %v271_v11  ;;  %v8002_v20 = vadd.f32 %v509_v53, %v7932_v52 }
 0x18f   :  { %v398_v1 = vpop.f32.mrf.mxu0  ;;  %v511_v63 = vpop.f32.mrf.mxu1 }
 0x190   :  { %9760 = vst [vmem:[#allocation77_spill] sm:$0xff] %v7999_v4  ;;  %9761 = vst [vmem:[#allocation78_spill] sm:$0xff] %v8002_v20  ;;  %v8004_v58 = vadd.f32 %v398_v1, %v275_v61  ;;  %v8007_v62 = vadd.f32 %v511_v63, %v7937_v60  ;;  %v470_v1 = vadd.f32 %v7923_v3, %v7937_v60 }
 0x191   :  { %v468_v63 = vadd.f32 %v7912_v47, %v7932_v52  ;;  %v9764_v47 = vld [vmem:[#allocation30_spill] sm:$0xff] }
 0x192   :  { %9762 = vst [vmem:[#allocation79_spill] sm:$0xff] %v8004_v58  ;;  %9763 = vst [vmem:[#allocation80_spill] sm:$0xff] %v8007_v62 }
 0x193   :  { %v680_v29 = vpop.f32.mrf.mxu0  ;;  %v751_v4 = vpop.f32.mrf.mxu1 }
 0x194   :  { %v756_v0 = vadd.f32 %v680_v29, %v355_v57  ;;  %v758_v62 = vadd.f32 %v751_v4, %v468_v63  ;;  %v9769_v63 = vld [vmem:[#allocation35_spill] sm:$0xff] }
 0x195   :  { %v682_v51 = vpop.f32.mrf.mxu0  ;;  %v753_v20 = vpop.f32.mrf.mxu1 }
 0x196   :  { %v6466_v56 = vmul.f32 -1.442695, %v756_v0  ;;  %v757_v54 = vadd.f32 %v682_v51, %v357_v55  ;;  %v759_v58 = vadd.f32 %v753_v20, %v470_v1  ;;  %v9768_v1 = vld [vmem:[#allocation34_spill] sm:$0xff] }
 0x198   :  { %6948 = vpow2.f32 %v6466_v56  ;;  %v6467_v53 = vmul.f32 -1.442695, %v757_v54  ;;  %v6468_v11 = vmul.f32 -1.442695, %v759_v58  ;;  %v9766_v54 = vld [vmem:[#allocation32_spill] sm:$0xff] }
 0x19a   :  { %6950 = vpow2.f32 %v6467_v53  ;;  %v9767_v53 = vld [vmem:[#allocation33_spill] sm:$0xff] }
 0x19b   :  { %6952 = vpow2.f32 %v6468_v11  ;;  %v9770_v11 = vld [vmem:[#allocation36_spill] sm:$0xff] }
 0x1a5   :  { %v6949_v38 = vpop.eup %6948 }
 0x1a6   :  { %v769_v61 = vadd.f32 1.0, %v6949_v38  ;;  %v9771_v38 = vld [vmem:[#allocation37_spill] sm:$0xff] }
 0x1a7   :  { %v6951_v2 = vpop.eup %6950 }
 0x1a8   :  { %6954 = vrcp.f32 %v769_v61  ;;  %v770_v51 = vadd.f32 1.0, %v6951_v2  ;;  %v6953_v56 = vpop.eup %6952  ;;  %v9772_v61 = vld [vmem:[#allocation38_spill] sm:$0xff]  ;;  %v9773_v2 = vld [vmem:[#allocation39_spill] sm:$0xff] }
 0x1a9   :  { %6956 = vtanh.f32 %v758_v62  ;;  %v771_v55 = vadd.f32 1.0, %v6953_v56  ;;  %v9765_v62 = vld [vmem:[#allocation31_spill] sm:$0xff]  ;;  %v9775_v56 = vld [vmem:[#allocation41_spill] sm:$0xff] }
 0x1aa   :  { %6958 = vrcp.f32 %v770_v51  ;;  %v9774_v51 = vld [vmem:[#allocation40_spill] sm:$0xff] }
 0x1ab   :  { %6960 = vrcp.f32 %v771_v55  ;;  %v9779_v55 = vld [vmem:[#allocation45_spill] sm:$0xff] }
 0x1b5   :  { %v6955_v29 = vpop.eup %6954 }
 0x1b6   :  { %v6957_v0 = vpop.eup %6956 }
 0x1b7   :  { %v6959_v57 = vpop.eup %6958  ;;  %v780_v60 = vmul.f32 %v6957_v0, %v6955_v29  ;;  %v9776_v29 = vld [vmem:[#allocation42_spill] sm:$0xff]  ;;  %v9777_v0 = vld [vmem:[#allocation43_spill] sm:$0xff] }
 0x1b8   :  { %v779_v3 = vmul.f32 0.0, %v6959_v57  ;;  %v6961_v4 = vpop.eup %6960  ;;  %v9778_v57 = vld [vmem:[#allocation44_spill] sm:$0xff] }
 0x1ba   :  { %v8015_v20 = vadd.f32 %v780_v60, %v779_v3  ;;  %v9780_v3 = vld [vmem:[#allocation46_spill] sm:$0xff]  ;;  %v9781_v60 = vld [vmem:[#allocation47_spill] sm:$0xff] }
 0x1bc   :  { %6962 = vtanh.f32 %v8015_v20 }
 0x1c9   :  { %v6963_v52 = vpop.eup %6962 }
 0x1ca   :  { %v8018_v58 = vmul.f32 %v6963_v52, %v6961_v4  ;;  %v9782_v4 = vld [vmem:[#allocation48_spill] sm:$0xff]  ;;  %v9783_v52 = vld [vmem:[#allocation49_spill] sm:$0xff] }
 0x1cc   :  { %853 = vmatmul.mubr.f32.vlgmr.msra.gmra.mxu0 %v8018_v58  ;;  %924 = vmatmul.mubr.f32.vlgmr.msra.gmra.mxu1 %v8018_v58 }
 0x1cd   :  { %963 = vmatpush1.msra.mxu0 %v7634_v5  ;;  %1034 = vmatpush1.msra.mxu1 %v7636_v6 }
 0x1ce   :  { %964 = vmatprep.subr.mxu0 %v7638_v7  ;;  %1035 = vmatprep.subr.mxu1 %v7640_v8 }
 0x1cf   :  { %965 = vmatpush1.msra.mxu0 %v7646_v9  ;;  %1036 = vmatpush1.msra.mxu1 %v7648_v10 }
 0x1d0   :  { %966 = vmatprep.subr.mxu0 %v7654_v12  ;;  %1037 = vmatprep.subr.mxu1 %v7656_v13 }
 0x1d1   :  { %967 = vmatpush1.msra.mxu0 %v7660_v14  ;;  %1038 = vmatpush1.msra.mxu1 %v7662_v15 }
 0x1d2   :  { %968 = vmatprep.subr.mxu0 %v7664_v16  ;;  %1039 = vmatprep.subr.mxu1 %v7666_v17 }
 0x1d3   :  { %969 = vmatpush1.msra.mxu0 %v7672_v18  ;;  %1040 = vmatpush1.msra.mxu1 %v7674_v19 }
 0x1d4   :  { %970 = vmatprep.subr.mxu0 %v7680_v21  ;;  %1041 = vmatprep.subr.mxu1 %v7682_v22 }
 0x1d5   :  { %971 = vmatpush1.msra.mxu0 %v7686_v23  ;;  %1042 = vmatpush1.msra.mxu1 %v7688_v24 }
 0x1d6   :  { %972 = vmatprep.subr.mxu0 %v7690_v25  ;;  %1043 = vmatprep.subr.mxu1 %v7692_v26 }
 0x1d7   :  { %973 = vmatpush1.msra.mxu0 %v7698_v27  ;;  %1044 = vmatpush1.msra.mxu1 %v7700_v28 }
 0x1d8   :  { %974 = vmatprep.subr.mxu0 %v7706_v30  ;;  %1045 = vmatprep.subr.mxu1 %v7708_v31 }
 0x1d9   :  { %975 = vmatpush1.msra.mxu0 %v7712_v32  ;;  %1046 = vmatpush1.msra.mxu1 %v7714_v33 }
 0x1da   :  { %976 = vmatprep.subr.mxu0 %v7716_v34  ;;  %1047 = vmatprep.subr.mxu1 %v7718_v35 }
 0x1db   :  { %977 = vmatpush1.msra.mxu0 %v7724_v36  ;;  %1048 = vmatpush1.msra.mxu1 %v7726_v37 }
 0x1dc   :  { %978 = vmatprep.subr.mxu0 %v7732_v39  ;;  %1049 = vmatprep.subr.mxu1 %v7734_v40 }
 0x1dd   :  { %979 = vmatpush1.msra.mxu0 %v7738_v41  ;;  %1050 = vmatpush1.msra.mxu1 %v7740_v42 }
 0x1de   :  { %980 = vmatprep.subr.mxu0 %v7742_v43  ;;  %1051 = vmatprep.subr.mxu1 %v7744_v44 }
 0x1df   :  { %981 = vmatpush1.msra.mxu0 %v7750_v45  ;;  %1052 = vmatpush1.msra.mxu1 %v7752_v46 }
 0x1e0   :  { %982 = vmatprep.subr.mxu0 %v7758_v48  ;;  %1053 = vmatprep.subr.mxu1 %v7760_v49 }
 0x1e1   :  { %983 = vmatpush1.msra.mxu0 %v7764_v50  ;;  %1054 = vmatpush1.msra.mxu1 %v9764_v47 }
 0x1e2   :  { %984 = vmatprep.subr.mxu0 %v9765_v62  ;;  %1055 = vmatprep.subr.mxu1 %v9766_v54 }
 0x1e3   :  { %985 = vmatpush1.msra.mxu0 %v9767_v53  ;;  %1056 = vmatpush1.msra.mxu1 %v9768_v1 }
 0x1e4   :  { %986 = vmatprep.subr.mxu0 %v9769_v63  ;;  %1057 = vmatprep.subr.mxu1 %v9770_v11  ;;  %v9789_v11 = vld [vmem:[#allocation56_spill] sm:$0xff]  ;;  %v9790_v63 = vld [vmem:[#allocation54_spill] sm:$0xff] }
 0x1e5   :  { %987 = vmatpush1.msra.mxu0 %v9771_v38  ;;  %1058 = vmatpush1.msra.mxu1 %v9772_v61 }
 0x1e6   :  { %988 = vmatprep.subr.mxu0 %v9773_v2  ;;  %1059 = vmatprep.subr.mxu1 %v9774_v51  ;;  %v9784_v2 = vmov 0.0   ;;  %v9785_v51 = vld [vmem:[#allocation50_spill] sm:$0xff] }
 0x1e7   :  { %989 = vmatpush1.msra.mxu0 %v9775_v56  ;;  %1060 = vmatpush1.msra.mxu1 %v9776_v29  ;;  %v9786_v29 = vld [vmem:[#allocation28_spill] sm:$0xff] }
 0x1e8   :  { %990 = vmatprep.subr.mxu0 %v9777_v0  ;;  %1061 = vmatprep.subr.mxu1 %v9778_v57  ;;  %v9787_v0 = vld [vmem:[#allocation29_spill] sm:$0xff] }
 0x1e9   :  { %991 = vmatpush1.msra.mxu0 %v9779_v55  ;;  %1062 = vmatpush1.msra.mxu1 %v9780_v3 }
 0x1ea   :  { %992 = vmatprep.subr.mxu0 %v9781_v60  ;;  %1063 = vmatprep.subr.mxu1 %v9782_v4  ;;  %v9788_v60 = vld [vmem:[#allocation55_spill] sm:$0xff] }
 0x1eb   :  { %993 = vmatpush1.msra.mxu0 %v9783_v52  ;;  %1026 = vmatprep.mubr.f32.mxu0 %v9784_v2 }
 0x1ec   :  { %1064 = vmatpush1.msra.mxu1 %v9785_v51  ;;  %1097 = vmatprep.mubr.f32.mxu1 %v9784_v2 }
 0x1ed   :  { %1136 = vmatprep.subr.mxu0 %v9786_v29  ;;  %1207 = vmatprep.subr.mxu1 %v9787_v0 }
 0x28c   :  { %v854_v57 = vpop.f32.mrf.mxu0  ;;  %v925_v4 = vpop.f32.mrf.mxu1 }
 0x28d   :  { %v930_v55 = vadd.f32 %v854_v57, %v7939_v59  ;;  %v932_v2 = vadd.f32 %v925_v4, %v9790_v63 }
 0x28e   :  { %v856_v3 = vpop.f32.mrf.mxu0  ;;  %v927_v38 = vpop.f32.mrf.mxu1 }
 0x28f   :  { %v6469_v56 = vmul.f32 -1.442695, %v930_v55  ;;  %v931_v61 = vadd.f32 %v856_v3, %v9788_v60  ;;  %v933_v51 = vadd.f32 %v927_v38, %v9789_v11  ;;  %v7472_v11 = vmov 1966171168  }
 0x290   :  { %v2006_v38 = vunpack.c.l.s4 %v7472_v11 }
 0x291   :  { %6964 = vpow2.f32 %v6469_v56  ;;  %v6470_v52 = vmul.f32 -1.442695, %v931_v61  ;;  %v6471_v1 = vmul.f32 -1.442695, %v933_v51  ;;  %v2004_v51 = vcombine.high %v8018_v58, %v8018_v58 }
 0x293   :  { %6966 = vpow2.f32 %v6470_v52 }
 0x294   :  { %6968 = vtanh.f32 %v932_v2  ;;  %v2007_v2 = vunpack.c.0.s8 %v2006_v38 }
 0x295   :  { %6970 = vpow2.f32 %v6471_v1  ;;  %v9791_v1 = vld [vmem:[#allocation51_spill] sm:$0xff] }
 0x29e   :  { %v6965_v29 = vpop.eup %6964 }
 0x29f   :  { %v943_v53 = vadd.f32 1.0, %v6965_v29 }
 0x2a0   :  { %v6967_v0 = vpop.eup %6966 }
 0x2a1   :  { %6972 = vrcp.f32 %v943_v53  ;;  %v944_v59 = vadd.f32 1.0, %v6967_v0  ;;  %v6969_v57 = vpop.eup %6968  ;;  %v8097_v53 = vsub.s32 %v2007_v2, %v9791_v1  ;;  %v8417_v1 = vld [vmem:[#allocation9 + $0x70] sm:$0xff] }
 0x2a2   :  { %v6971_v55 = vpop.eup %6970 }
 0x2a3   :  { %6974 = vrcp.f32 %v944_v59  ;;  %v945_v60 = vadd.f32 1.0, %v6971_v55  ;;  %v2011_v4 = vrot.slane %v8018_v58, %v8097_v53 }
 0x2a5   :  { %6976 = vrcp.f32 %v945_v60  ;;  %v2019_v59 = vcombine.high %v2011_v4, %v2011_v4  ;;  %v2027_v55 = vrot.slane %v2011_v4, %v8097_v53 }
 0x2a7   :  { %v2041_v58 = vrot.slane %v2019_v59, %v8097_v53  ;;  %v2049_v38 = vcombine.high %v2027_v55, %v2027_v55 }
 0x2ae   :  { %v6973_v56 = vpop.eup %6972 }
 0x2af   :  { %v954_v3 = vmul.f32 %v6973_v56, %v6969_v57 }
 0x2b0   :  { %v6975_v61 = vpop.eup %6974 }
 0x2b1   :  { %v953_v52 = vmul.f32 %v6975_v61, %v8015_v20  ;;  %v2018_v20 = vrot.slane %v2004_v51, %v8097_v53 }
 0x2b2   :  { %v6977_v29 = vpop.eup %6976 }
 0x2b3   :  { %v8093_v63 = vadd.f32 %v954_v3, %v953_v52  ;;  %v2020_v61 = vcombine.high %v2018_v20, %v2018_v20 }
 0x2b5   :  { %6978 = vtanh.f32 %v8093_v63 }
 0x2c2   :  { %v6979_v0 = vpop.eup %6978 }
 0x2c3   :  { %v957_v57 = vmul.f32 %v6979_v0, %v6977_v29 }
 0x2c5   :  { %1027 = vmatmul.mubr.f32.vlgmr.msra.gmra.mxu0 %v957_v57  ;;  %v2062_v56 = vcombine.high %v957_v57, %v957_v57  ;;  %v2069_v3 = vrot.slane %v957_v57, %v8097_v53  ;;  %1098 = vmatmul.mubr.f32.vlgmr.msra.gmra.mxu1 %v957_v57 }
 0x2c6   :  { %1137 = vmatpush1.msra.mxu0 %v7634_v5  ;;  %1208 = vmatpush1.msra.mxu1 %v7636_v6  ;;  %v2034_v5 = vrot.slane %v2018_v20, %v8097_v53 }
 0x2c7   :  { %v2076_v60 = vrot.slane %v2062_v56, %v8097_v53  ;;  %v2077_v52 = vcombine.high %v2069_v3, %v2069_v3  ;;  %v2085_v11 = vrot.slane %v2069_v3, %v8097_v53  ;;  %1138 = vmatprep.subr.mxu0 %v7638_v7  ;;  %1209 = vmatprep.subr.mxu1 %v7640_v8  ;;  %v9792_v7 = vld [vmem:[#allocation52_spill] sm:$0xff] }
 0x2c8   :  { %1139 = vmatpush1.msra.mxu0 %v7646_v9  ;;  %1210 = vmatpush1.msra.mxu1 %v7648_v10  ;;  %v2051_v9 = vcombine.high %v2041_v58, %v2041_v58  ;;  %v2048_v10 = vrot.slane %v2020_v61, %v8097_v53 }
 0x2c9   :  { %v2078_v6 = vcombine.high %v2076_v60, %v2076_v60  ;;  %v2092_v2 = vrot.slane %v2076_v60, %v8097_v53  ;;  %v2099_v51 = vrot.slane %v2077_v52, %v8097_v53  ;;  %v2107_v4 = vcombine.high %v2085_v11, %v2085_v11  ;;  %1140 = vmatprep.subr.mxu0 %v7654_v12 }
 0x2ca   :  { %1211 = vmatprep.subr.mxu1 %v7656_v13  ;;  %1141 = vmatpush1.msra.mxu0 %v7660_v14  ;;  %v2414_v8 = vrot.slane %v2085_v11, %v9792_v7 }
 0x2cb   :  { %1212 = vmatpush1.msra.mxu1 %v7662_v15  ;;  %1142 = vmatprep.subr.mxu0 %v7664_v16  ;;  %v2422_v29 = vrot.slane %v2107_v4, %v9792_v7  ;;  %v2418_v0 = vrot.slane %v2099_v51, %v9792_v7  ;;  %v2109_v20 = vcombine.high %v2099_v51, %v2099_v51 }
 0x2cc   :  { %1213 = vmatprep.subr.mxu1 %v7666_v17  ;;  %1143 = vmatpush1.msra.mxu0 %v7672_v18  ;;  %v8130_v12 = vsel %vm2691_vm0, %v2027_v55, %v2414_v8  ;;  %v2430_v13 = vrot.slane %v2092_v2, %v9792_v7  ;;  %v2106_v14 = vrot.slane %v2078_v6, %v8097_v53 }
 0x2cd   :  { %1214 = vmatpush1.msra.mxu1 %v7674_v19  ;;  %1144 = vmatprep.subr.mxu0 %v7680_v21  ;;  %v8137_v15 = vsel %vm2691_vm0, %v2049_v38, %v2422_v29  ;;  %v8140_v16 = vsel %vm2691_vm0, %v2041_v58, %v2418_v0  ;;  %v2426_v17 = vrot.slane %v2109_v20, %v9792_v7  ;;  %v9815_v58 = vld [vmem:[#allocation59_spill] sm:$0xff] }
 0x2ce   :  { %1215 = vmatprep.subr.mxu1 %v7682_v22  ;;  %1145 = vmatpush1.msra.mxu0 %v7686_v23  ;;  %v8146_v18 = vsel %vm2691_vm0, %v2034_v5, %v2430_v13  ;;  %v2434_v59 = vrot.slane %v2106_v14, %v9792_v7  ;;  %v2108_v19 = vcombine.high %v2092_v2, %v2092_v2  ;;  %v9817_v2 = vld [vmem:[#allocation58_spill] sm:$0xff] }
 0x2cf   :  { %1216 = vmatpush1.msra.mxu1 %v7688_v24  ;;  %1146 = vmatprep.subr.mxu0 %v7690_v25  ;;  %v8152_v21 = vsel %vm2691_vm0, %v2051_v9, %v2426_v17  ;;  %v2110_v57 = vcombine.high %v2106_v14, %v2106_v14  ;;  %v2050_v23 = vcombine.high %v2034_v5, %v2034_v5  ;;  %v9816_v5 = vld [vmem:[#allocation60_spill] sm:$0xff] }
 0x2d0   :  { %1217 = vmatprep.subr.mxu1 %v7692_v26  ;;  %1147 = vmatpush1.msra.mxu0 %v7698_v27  ;;  %v8157_v22 = vsel %vm2691_vm0, %v2048_v10, %v2434_v59  ;;  %v2438_v55 = vrot.slane %v2108_v19, %v9792_v7  ;;  %v2052_v24 = vcombine.high %v2048_v10, %v2048_v10 }
 0x2d1   :  { %1218 = vmatpush1.msra.mxu1 %v7700_v28  ;;  %1148 = vmatprep.subr.mxu0 %v7706_v30  ;;  %v2442_v25 = vrot.slane %v2110_v57, %v9792_v7  ;;  %v9793_v28 = vld [vmem:[#allocation33_spill] sm:$0xff]  ;;  %v9794_v30 = vld [vmem:[#allocation34_spill] sm:$0xff] }
 0x2d2   :  { %1219 = vmatprep.subr.mxu1 %v7708_v31  ;;  %1149 = vmatpush1.msra.mxu0 %v7712_v32  ;;  %v8166_v26 = vsel %vm2691_vm0, %v2050_v23, %v2438_v55  ;;  %v9795_v31 = vld [vmem:[#allocation35_spill] sm:$0xff]  ;;  %v9796_v32 = vld [vmem:[#allocation36_spill] sm:$0xff] }
 0x2d3   :  { %1220 = vmatpush1.msra.mxu1 %v7714_v33  ;;  %1150 = vmatprep.subr.mxu0 %v7716_v34  ;;  %v8171_v27 = vsel %vm2691_vm0, %v2052_v24, %v2442_v25  ;;  %v9797_v33 = vld [vmem:[#allocation37_spill] sm:$0xff]  ;;  %v9798_v34 = vld [vmem:[#allocation38_spill] sm:$0xff] }
 0x2d4   :  { %1221 = vmatprep.subr.mxu1 %v7718_v35  ;;  %1151 = vmatpush1.msra.mxu0 %v7724_v36  ;;  %v9799_v35 = vld [vmem:[#allocation39_spill] sm:$0xff]  ;;  %v9800_v36 = vld [vmem:[#allocation40_spill] sm:$0xff] }
 0x2d5   :  { %1222 = vmatpush1.msra.mxu1 %v7726_v37  ;;  %1152 = vmatprep.subr.mxu0 %v7732_v39  ;;  %v9801_v37 = vld [vmem:[#allocation41_spill] sm:$0xff]  ;;  %v9802_v39 = vld [vmem:[#allocation42_spill] sm:$0xff]  ;;  %9832 = vst [vmem:[#allocation40_spill] sm:$0xff] %v8417_v1 }
 0x2d6   :  { %1223 = vmatprep.subr.mxu1 %v7734_v40  ;;  %1153 = vmatpush1.msra.mxu0 %v7738_v41  ;;  %v9803_v40 = vld [vmem:[#allocation43_spill] sm:$0xff]  ;;  %v9804_v41 = vld [vmem:[#allocation44_spill] sm:$0xff] }
 0x2d7   :  { %1224 = vmatpush1.msra.mxu1 %v7740_v42  ;;  %1154 = vmatprep.subr.mxu0 %v7742_v43  ;;  %v9805_v42 = vld [vmem:[#allocation45_spill] sm:$0xff]  ;;  %v9806_v43 = vld [vmem:[#allocation46_spill] sm:$0xff] }
 0x2d8   :  { %1225 = vmatprep.subr.mxu1 %v7744_v44  ;;  %1155 = vmatpush1.msra.mxu0 %v7750_v45  ;;  %v9807_v44 = vld [vmem:[#allocation47_spill] sm:$0xff]  ;;  %v9808_v45 = vld [vmem:[#allocation48_spill] sm:$0xff] }
 0x2d9   :  { %1226 = vmatpush1.msra.mxu1 %v7752_v46  ;;  %1156 = vmatprep.subr.mxu0 %v7758_v48  ;;  %v9809_v46 = vld [vmem:[#allocation49_spill] sm:$0xff]  ;;  %v9810_v48 = vmov 0.0  }
 0x2da   :  { %1227 = vmatprep.subr.mxu1 %v7760_v49  ;;  %1157 = vmatpush1.msra.mxu0 %v7764_v50  ;;  %v9811_v49 = vld [vmem:[#allocation50_spill] sm:$0xff]  ;;  %v8210_v50 = vld [vmem:[#allocation9 + $0x1e8] sm:$0xff] }
 0x2db   :  { %1228 = vmatpush1.msra.mxu1 %v9764_v47  ;;  %1158 = vmatprep.subr.mxu0 %v9765_v62  ;;  %9812 = vst [vmem:[#allocation30_spill] sm:$0xff] %v8210_v50  ;;  %v8213_v47 = vld [vmem:[#allocation9 + $0x1f8] sm:$0xff] }
 0x2dc   :  { %1229 = vmatprep.subr.mxu1 %v9766_v54  ;;  %1159 = vmatpush1.msra.mxu0 %v9793_v28  ;;  %9813 = vst [vmem:[#allocation31_spill] sm:$0xff] %v8213_v47  ;;  %v9814_v54 = vld [vmem:[#allocation57_spill] sm:$0xff] }
 0x2dd   :  { %1230 = vmatpush1.msra.mxu1 %v9794_v30  ;;  %1160 = vmatprep.subr.mxu0 %v9795_v31  ;;  %v8225_v30 = vld [vmem:[#allocation9 + $0x1e0] sm:$0xff]  ;;  %v8228_v31 = vld [vmem:[#allocation9 + $0x1f0] sm:$0xff] }
 0x2de   :  { %1231 = vmatprep.subr.mxu1 %v9796_v32  ;;  %1161 = vmatpush1.msra.mxu0 %v9797_v33 }
 0x2df   :  { %1232 = vmatpush1.msra.mxu1 %v9798_v34  ;;  %1162 = vmatprep.subr.mxu0 %v9799_v35  ;;  %v8233_v34 = vld [vmem:[#allocation9 + $0x1c8] sm:$0xff]  ;;  %v8236_v35 = vld [vmem:[#allocation9 + $0x1d8] sm:$0xff] }
 0x2e0   :  { %1233 = vmatprep.subr.mxu1 %v9800_v36  ;;  %1163 = vmatpush1.msra.mxu0 %v9801_v37  ;;  %v8239_v36 = vld [vmem:[#allocation9 + $0x1c0] sm:$0xff]  ;;  %v8242_v37 = vld [vmem:[#allocation9 + $0x1d0] sm:$0xff] }
 0x2e1   :  { %1234 = vmatpush1.msra.mxu1 %v9802_v39  ;;  %1164 = vmatprep.subr.mxu0 %v9803_v40  ;;  %v8245_v40 = vld [vmem:[#allocation9 + $0x1a8] sm:$0xff] }
 0x2e2   :  { %1235 = vmatprep.subr.mxu1 %v9804_v41  ;;  %1165 = vmatpush1.msra.mxu0 %v9805_v42  ;;  %v8248_v41 = vld [vmem:[#allocation9 + $0x1b8] sm:$0xff] }
 0x2e3   :  { %1236 = vmatpush1.msra.mxu1 %v9806_v43  ;;  %1166 = vmatprep.subr.mxu0 %v9807_v44  ;;  %v8252_v44 = vld [vmem:[#allocation9 + $0x1a0] sm:$0xff] }
 0x2e4   :  { %1237 = vmatprep.subr.mxu1 %v9808_v45  ;;  %1167 = vmatpush1.msra.mxu0 %v9809_v46  ;;  %v8255_v45 = vld [vmem:[#allocation9 + $0x1b0] sm:$0xff] }
 0x2e5   :  { %1200 = vmatprep.mubr.f32.mxu0 %v9810_v48  ;;  %1238 = vmatpush1.msra.mxu1 %v9811_v49 }
 0x2e6   :  { %1271 = vmatprep.mubr.f32.mxu1 %v9810_v48  ;;  %1310 = vmatprep.subr.mxu0 %v8210_v50 }
 0x2e7   :  { %1381 = vmatprep.subr.mxu1 %v8213_v47 }
 0x385   :  { %v1028_v62 = vpop.f32.mrf.mxu0  ;;  %v1099_v52 = vpop.f32.mrf.mxu1 }
 0x386   :  { %v1104_v56 = vadd.f32 %v1028_v62, %v9814_v54  ;;  %v1106_v51 = vadd.f32 %v1099_v52, %v9817_v2  ;;  %v8260_v62 = vld [vmem:[#allocation9 + $0x188] sm:$0xff]  ;;  %v8263_v54 = vld [vmem:[#allocation9 + $0x198] sm:$0xff] }
 0x387   :  { %v1030_v3 = vpop.f32.mrf.mxu0  ;;  %v1101_v38 = vpop.f32.mrf.mxu1 }
 0x388   :  { %v6472_v61 = vmul.f32 -1.442695, %v1104_v56  ;;  %v1105_v60 = vadd.f32 %v1030_v3, %v9815_v58  ;;  %v1107_v6 = vadd.f32 %v1101_v38, %v9816_v5  ;;  %v8272_v58 = vld [vmem:[#allocation9 + $0x180] sm:$0xff]  ;;  %v8280_v5 = vld [vmem:[#allocation9 + $0x168] sm:$0xff] }
 0x38a   :  { %6980 = vpow2.f32 %v6472_v61  ;;  %v6473_v11 = vmul.f32 -1.442695, %v1105_v60  ;;  %v6474_v4 = vmul.f32 -1.442695, %v1107_v6  ;;  %v8275_v60 = vld [vmem:[#allocation9 + $0x190] sm:$0xff] }
 0x38c   :  { %6982 = vpow2.f32 %v6473_v11 }
 0x38d   :  { %6984 = vtanh.f32 %v1106_v51 }
 0x38e   :  { %6986 = vpow2.f32 %v6474_v4  ;;  %v8291_v4 = vld [vmem:[#allocation9 + $0x160] sm:$0xff] }
 0x397   :  { %v6981_v8 = vpop.eup %6980 }
 0x398   :  { %v1117_v9 = vadd.f32 1.0, %v6981_v8  ;;  %v8294_v8 = vld [vmem:[#allocation9 + $0x170] sm:$0xff] }
 0x399   :  { %v6983_v10 = vpop.eup %6982 }
 0x39a   :  { %6988 = vrcp.f32 %v1117_v9  ;;  %v1118_v29 = vadd.f32 1.0, %v6983_v10  ;;  %v6985_v0 = vpop.eup %6984 }
 0x39b   :  { %v6987_v20 = vpop.eup %6986 }
 0x39c   :  { %6990 = vrcp.f32 %v1118_v29  ;;  %v1119_v59 = vadd.f32 1.0, %v6987_v20  ;;  %v8306_v29 = vld [vmem:[#allocation9 + $0x148] sm:$0xff] }
 0x39e   :  { %6992 = vrcp.f32 %v1119_v59  ;;  %v8327_v59 = vld [vmem:[#allocation9 + $0x128] sm:$0xff] }
 0x3a7   :  { %v6989_v13 = vpop.eup %6988 }
 0x3a8   :  { %v1128_v14 = vmul.f32 %v6989_v13, %v6985_v0  ;;  %v8309_v0 = vld [vmem:[#allocation9 + $0x158] sm:$0xff] }
 0x3a9   :  { %v6991_v17 = vpop.eup %6990 }
 0x3aa   :  { %v1127_v19 = vmul.f32 %v6991_v17, %v8093_v63 }
 0x3ab   :  { %v6993_v23 = vpop.eup %6992 }
 0x3ac   :  { %v8221_v57 = vadd.f32 %v1128_v14, %v1127_v19  ;;  %v8317_v14 = vld [vmem:[#allocation9 + $0x140] sm:$0xff] }
 0x3ae   :  { %6994 = vtanh.f32 %v8221_v57 }
 0x3bb   :  { %v6995_v55 = vpop.eup %6994 }
 0x3bc   :  { %v1131_v24 = vmul.f32 %v6995_v55, %v6993_v23  ;;  %v8338_v55 = vld [vmem:[#allocation9 + $0x120] sm:$0xff] }
 0x3be   :  { %1201 = vmatmul.mubr.f32.vlgmr.msra.gmra.mxu0 %v1131_v24  ;;  %v2112_v25 = vcombine.high %v1131_v24, %v1131_v24  ;;  %v2119_v28 = vrot.slane %v1131_v24, %v8097_v53  ;;  %1272 = vmatmul.mubr.f32.vlgmr.msra.gmra.mxu1 %v1131_v24  ;;  %v8344_v24 = vld [vmem:[#allocation9 + $0x108] sm:$0xff] }
 0x3bf   :  { %1311 = vmatpush1.msra.mxu0 %v8225_v30  ;;  %1382 = vmatpush1.msra.mxu1 %v8228_v31 }
 0x3c0   :  { %v2126_v63 = vrot.slane %v2112_v25, %v8097_v53  ;;  %v2127_v32 = vcombine.high %v2119_v28, %v2119_v28  ;;  %v2135_v33 = vrot.slane %v2119_v28, %v8097_v53  ;;  %1312 = vmatprep.subr.mxu0 %v8233_v34  ;;  %1383 = vmatprep.subr.mxu1 %v8236_v35  ;;  %v8347_v25 = vld [vmem:[#allocation9 + $0x118] sm:$0xff]  ;;  %v8354_v28 = vld [vmem:[#allocation9 + $0x100] sm:$0xff] }
 0x3c1   :  { %1313 = vmatpush1.msra.mxu0 %v8239_v36  ;;  %1384 = vmatpush1.msra.mxu1 %v8242_v37 }
 0x3c2   :  { %v2128_v39 = vcombine.high %v2126_v63, %v2126_v63  ;;  %1314 = vmatprep.subr.mxu0 %v8245_v40  ;;  %1385 = vmatprep.subr.mxu1 %v8248_v41  ;;  %v2454_v42 = vrot.slane %v2135_v33, %v9792_v7  ;;  %v2157_v43 = vcombine.high %v2135_v33, %v2135_v33  ;;  %v8363_v33 = vld [vmem:[#allocation9 + $0xf8] sm:$0xff] }
 0x3c3   :  { %1315 = vmatpush1.msra.mxu0 %v8252_v44  ;;  %1386 = vmatpush1.msra.mxu1 %v8255_v45  ;;  %v2149_v46 = vrot.slane %v2127_v32, %v8097_v53  ;;  %v2142_v49 = vrot.slane %v2126_v63, %v8097_v53  ;;  %v8357_v63 = vld [vmem:[#allocation9 + $0x110] sm:$0xff]  ;;  %v8360_v32 = vld [vmem:[#allocation9 + $0xe8] sm:$0xff] }
 0x3c4   :  { %1316 = vmatprep.subr.mxu0 %v8260_v62  ;;  %1387 = vmatprep.subr.mxu1 %v8263_v54  ;;  %v8268_v56 = vsel %vm2700_vm1, %v8130_v12, %v2454_v42  ;;  %v2462_v3 = vrot.slane %v2157_v43, %v9792_v7  ;;  %v2156_v61 = vrot.slane %v2128_v39, %v8097_v53  ;;  %v8283_v12 = vld [vmem:[#allocation9 + $0x178] sm:$0xff]  ;;  %v8366_v39 = vld [vmem:[#allocation9 + $0xe0] sm:$0xff]  ;;  %v8372_v42 = vld [vmem:[#allocation9 + $0xc8] sm:$0xff] }
 0x3c5   :  { %1317 = vmatpush1.msra.mxu0 %v8272_v58  ;;  %1388 = vmatpush1.msra.mxu1 %v8275_v60  ;;  %v2458_v52 = vrot.slane %v2149_v46, %v9792_v7  ;;  %v2159_v11 = vcombine.high %v2149_v46, %v2149_v46  ;;  %v2470_v38 = vrot.slane %v2142_v49, %v9792_v7  ;;  %v8375_v43 = vld [vmem:[#allocation9 + $0xd8] sm:$0xff]  ;;  %v8378_v46 = vld [vmem:[#allocation9 + $0xc0] sm:$0xff] }
 0x3c6   :  { %1318 = vmatprep.subr.mxu0 %v8280_v5  ;;  %1389 = vmatprep.subr.mxu1 %v8283_v12  ;;  %v8288_v6 = vsel %vm2700_vm1, %v8137_v15, %v2462_v3  ;;  %v2474_v2 = vrot.slane %v2156_v61, %v9792_v7  ;;  %v2158_v51 = vcombine.high %v2142_v49, %v2142_v49  ;;  %v8381_v49 = vld [vmem:[#allocation9 + $0xd0] sm:$0xff]  ;;  %v8384_v3 = vld [vmem:[#allocation9 + $0xa8] sm:$0xff] }
 0x3c7   :  { %1319 = vmatpush1.msra.mxu0 %v8291_v4  ;;  %1390 = vmatpush1.msra.mxu1 %v8294_v8  ;;  %v8299_v9 = vsel %vm2700_vm1, %v8140_v16, %v2458_v52  ;;  %v2466_v10 = vrot.slane %v2159_v11, %v9792_v7  ;;  %v8304_v15 = vsel %vm2700_vm1, %v8146_v18, %v2470_v38  ;;  %v8320_v18 = vld [vmem:[#allocation9 + $0x150] sm:$0xff]  ;;  %v8390_v52 = vld [vmem:[#allocation9 + $0xa0] sm:$0xff]  ;;  %v8396_v38 = vld [vmem:[#allocation9 + $0x88] sm:$0xff] }
 0x3c8   :  { %1320 = vmatprep.subr.mxu0 %v8306_v29  ;;  %1391 = vmatprep.subr.mxu1 %v8309_v0  ;;  %v8314_v20 = vsel %vm2700_vm1, %v8157_v22, %v2474_v2  ;;  %v2478_v16 = vrot.slane %v2158_v51, %v9792_v7  ;;  %v2160_v13 = vcombine.high %v2156_v61, %v2156_v61  ;;  %v8330_v22 = vld [vmem:[#allocation9 + $0x138] sm:$0xff]  ;;  %v8393_v11 = vld [vmem:[#allocation9 + $0xb0] sm:$0xff]  ;;  %v8402_v51 = vld [vmem:[#allocation9 + $0x80] sm:$0xff] }
 0x3c9   :  { %1321 = vmatpush1.msra.mxu0 %v8317_v14  ;;  %1392 = vmatpush1.msra.mxu1 %v8320_v18  ;;  %v8325_v17 = vsel %vm2700_vm1, %v8152_v21, %v2466_v10  ;;  %v8341_v21 = vld [vmem:[#allocation9 + $0x130] sm:$0xff]  ;;  %9818 = vst [vmem:[#allocation32_spill] sm:$0xff] %v8375_v43  ;;  %9819 = vst [vmem:[#allocation28_spill] sm:$0xff] %v8378_v46  ;;  %v8387_v61 = vld [vmem:[#allocation9 + $0xb8] sm:$0xff] }
 0x3ca   :  { %1322 = vmatprep.subr.mxu0 %v8327_v59  ;;  %1393 = vmatprep.subr.mxu1 %v8330_v22  ;;  %v8335_v19 = vsel %vm2700_vm1, %v8166_v26, %v2478_v16  ;;  %v2482_v23 = vrot.slane %v2160_v13, %v9792_v7  ;;  %9820 = vst [vmem:[#allocation29_spill] sm:$0xff] %v8381_v49  ;;  %9821 = vst [vmem:[#allocation55_spill] sm:$0xff] %v8384_v3  ;;  %v8399_v2 = vld [vmem:[#allocation9 + $0x98] sm:$0xff]  ;;  %v8405_v10 = vld [vmem:[#allocation9 + $0x90] sm:$0xff] }
 0x3cb   :  { %1323 = vmatpush1.msra.mxu0 %v8338_v55  ;;  %1394 = vmatpush1.msra.mxu1 %v8341_v21  ;;  %9822 = vst [vmem:[#allocation56_spill] sm:$0xff] %v8387_v61  ;;  %9823 = vst [vmem:[#allocation54_spill] sm:$0xff] %v8390_v52  ;;  %v8408_v16 = vld [vmem:[#allocation9 + $0x68] sm:$0xff]  ;;  %v8411_v13 = vld [vmem:[#allocation9 + $0x78] sm:$0xff] }
 0x3cc   :  { %1324 = vmatprep.subr.mxu0 %v8344_v24  ;;  %1395 = vmatprep.subr.mxu1 %v8347_v25  ;;  %v8352_v26 = vsel %vm2700_vm1, %v8171_v27, %v2482_v23  ;;  %v8369_v27 = vld [vmem:[#allocation9 + $0xf0] sm:$0xff]  ;;  %9824 = vst [vmem:[#allocation52_spill] sm:$0xff] %v8393_v11  ;;  %9825 = vst [vmem:[#allocation33_spill] sm:$0xff] %v8396_v38  ;;  %v8414_v23 = vld [vmem:[#allocation9 + $0x60] sm:$0xff] }
 0x3cd   :  { %1325 = vmatpush1.msra.mxu0 %v8354_v28  ;;  %1396 = vmatpush1.msra.mxu1 %v8357_v63  ;;  %9826 = vst [vmem:[#allocation34_spill] sm:$0xff] %v8399_v2  ;;  %9827 = vst [vmem:[#allocation35_spill] sm:$0xff] %v8402_v51 }
 0x3ce   :  { %1326 = vmatprep.subr.mxu0 %v8360_v32  ;;  %1397 = vmatprep.subr.mxu1 %v8363_v33  ;;  %9828 = vst [vmem:[#allocation36_spill] sm:$0xff] %v8405_v10  ;;  %9829 = vst [vmem:[#allocation37_spill] sm:$0xff] %v8408_v16 }
 0x3cf   :  { %1327 = vmatpush1.msra.mxu0 %v8366_v39  ;;  %1398 = vmatpush1.msra.mxu1 %v8369_v27  ;;  %9830 = vst [vmem:[#allocation38_spill] sm:$0xff] %v8411_v13  ;;  %9831 = vst [vmem:[#allocation39_spill] sm:$0xff] %v8414_v23 }
 0x3d0   :  { %1328 = vmatprep.subr.mxu0 %v8372_v42  ;;  %1399 = vmatprep.subr.mxu1 %v8375_v43 }
 0x3d1   :  { %1329 = vmatpush1.msra.mxu0 %v8378_v46  ;;  %1400 = vmatpush1.msra.mxu1 %v8381_v49  ;;  %v9848_v49 = vld [vmem:[#allocation62_spill] sm:$0xff] }
 0x3d2   :  { %1330 = vmatprep.subr.mxu0 %v8384_v3  ;;  %1401 = vmatprep.subr.mxu1 %v8387_v61  ;;  %v9847_v3 = vld [vmem:[#allocation64_spill] sm:$0xff] }
 0x3d3   :  { %1331 = vmatpush1.msra.mxu0 %v8390_v52  ;;  %1402 = vmatpush1.msra.mxu1 %v8393_v11 }
 0x3d4   :  { %1332 = vmatprep.subr.mxu0 %v8396_v38  ;;  %1403 = vmatprep.subr.mxu1 %v8399_v2  ;;  %v9846_v38 = vld [vmem:[#allocation63_spill] sm:$0xff] }
 0x3d5   :  { %1333 = vmatpush1.msra.mxu0 %v8402_v51  ;;  %1404 = vmatpush1.msra.mxu1 %v8405_v10  ;;  %v8420_v51 = vld [vmem:[#allocation9 + $0x48] sm:$0xff]  ;;  %v8423_v10 = vld [vmem:[#allocation9 + $0x58] sm:$0xff] }
 0x3d6   :  { %1334 = vmatprep.subr.mxu0 %v8408_v16  ;;  %1405 = vmatprep.subr.mxu1 %v8411_v13  ;;  %9833 = vst [vmem:[#allocation41_spill] sm:$0xff] %v8420_v51  ;;  %9834 = vst [vmem:[#allocation42_spill] sm:$0xff] %v8423_v10  ;;  %v8426_v16 = vld [vmem:[#allocation9 + $0x40] sm:$0xff]  ;;  %v8429_v13 = vld [vmem:[#allocation9 + $0x50] sm:$0xff] }
 0x3d7   :  { %1335 = vmatpush1.msra.mxu0 %v8414_v23  ;;  %1406 = vmatpush1.msra.mxu1 %v8417_v1  ;;  %9835 = vst [vmem:[#allocation43_spill] sm:$0xff] %v8426_v16  ;;  %9836 = vst [vmem:[#allocation44_spill] sm:$0xff] %v8429_v13  ;;  %v8432_v23 = vld [vmem:[#allocation9 + $0x28] sm:$0xff]  ;;  %v8435_v1 = vld [vmem:[#allocation9 + $0x38] sm:$0xff] }
 0x3d8   :  { %1336 = vmatprep.subr.mxu0 %v8420_v51  ;;  %1407 = vmatprep.subr.mxu1 %v8423_v10  ;;  %9837 = vst [vmem:[#allocation45_spill] sm:$0xff] %v8432_v23  ;;  %9838 = vst [vmem:[#allocation46_spill] sm:$0xff] %v8435_v1  ;;  %v8438_v51 = vld [vmem:[#allocation9 + $0x20] sm:$0xff]  ;;  %v8441_v10 = vld [vmem:[#allocation9 + $0x30] sm:$0xff] }
 0x3d9   :  { %1337 = vmatpush1.msra.mxu0 %v8426_v16  ;;  %1408 = vmatpush1.msra.mxu1 %v8429_v13  ;;  %9839 = vst [vmem:[#allocation47_spill] sm:$0xff] %v8438_v51  ;;  %9840 = vst [vmem:[#allocation48_spill] sm:$0xff] %v8441_v10  ;;  %v8444_v16 = vld [vmem:[#allocation9 + $0x8] sm:$0xff]  ;;  %v8447_v13 = vld [vmem:[#allocation9 + $0x18] sm:$0xff] }
 0x3da   :  { %1338 = vmatprep.subr.mxu0 %v8432_v23  ;;  %1409 = vmatprep.subr.mxu1 %v8435_v1  ;;  %9841 = vst [vmem:[#allocation49_spill] sm:$0xff] %v8444_v16  ;;  %9842 = vst [vmem:[#allocation50_spill] sm:$0xff] %v8447_v13  ;;  %v8450_v23 = vld [vmem:[#allocation9] sm:$0xff]  ;;  %v8454_v1 = vld [vmem:[#allocation9 + $0x10] sm:$0xff] }
 0x3db   :  { %1339 = vmatpush1.msra.mxu0 %v8438_v51  ;;  %1410 = vmatpush1.msra.mxu1 %v8441_v10  ;;  %9843 = vst [vmem:[#allocation57_spill] sm:$0xff] %v8450_v23  ;;  %9844 = vst [vmem:[#allocation59_spill] sm:$0xff] %v8454_v1  ;;  %v9845_v10 = vld [vmem:[#allocation61_spill] sm:$0xff] }
 0x3dc   :  { %1340 = vmatprep.subr.mxu0 %v8444_v16  ;;  %1411 = vmatprep.subr.mxu1 %v8447_v13 }
 0x3dd   :  { %1341 = vmatpush1.msra.mxu0 %v8450_v23  ;;  %1374 = vmatprep.mubr.f32.mxu0 %v9810_v48 }
 0x3de   :  { %1412 = vmatpush1.msra.mxu1 %v8454_v1  ;;  %1445 = vmatprep.mubr.f32.mxu1 %v9810_v48 }
 0x3df   :  { %1484 = vmatprep.subr.mxu0 %v8210_v50  ;;  %1555 = vmatprep.subr.mxu1 %v8213_v47 }
 0x47e   :  { %v1202_v16 = vpop.f32.mrf.mxu0  ;;  %v1273_v23 = vpop.f32.mrf.mxu1 }
 0x47f   :  { %v1278_v51 = vadd.f32 %v1202_v16, %v9845_v10  ;;  %v1280_v48 = vadd.f32 %v1273_v23, %v9848_v49 }
 0x480   :  { %v1204_v13 = vpop.f32.mrf.mxu0  ;;  %v1275_v61 = vpop.f32.mrf.mxu1 }
 0x481   :  { %v6475_v2 = vmul.f32 -1.442695, %v1278_v51  ;;  %v1279_v11 = vadd.f32 %v1204_v13, %v9846_v38  ;;  %v1281_v1 = vadd.f32 %v1275_v61, %v9847_v3 }
 0x483   :  { %6996 = vpow2.f32 %v6475_v2  ;;  %v6476_v52 = vmul.f32 -1.442695, %v1279_v11  ;;  %v6477_v46 = vmul.f32 -1.442695, %v1281_v1 }
 0x485   :  { %6998 = vpow2.f32 %v6476_v52 }
 0x486   :  { %7000 = vtanh.f32 %v1280_v48 }
 0x487   :  { %7002 = vpow2.f32 %v6477_v46 }
 0x490   :  { %v6997_v50 = vpop.eup %6996 }
 0x491   :  { %v1291_v43 = vadd.f32 1.0, %v6997_v50 }
 0x492   :  { %v6999_v47 = vpop.eup %6998 }
 0x493   :  { %7004 = vrcp.f32 %v1291_v43  ;;  %v1292_v10 = vadd.f32 1.0, %v6999_v47  ;;  %v7001_v51 = vpop.eup %7000 }
 0x494   :  { %v7003_v38 = vpop.eup %7002 }
 0x495   :  { %7006 = vrcp.f32 %v1292_v10  ;;  %v1293_v52 = vadd.f32 1.0, %v7003_v38 }
 0x497   :  { %7008 = vrcp.f32 %v1293_v52 }
 0x4a0   :  { %v7005_v2 = vpop.eup %7004 }
 0x4a1   :  { %v1302_v16 = vmul.f32 %v7005_v2, %v7001_v51 }
 0x4a2   :  { %v7007_v11 = vpop.eup %7006 }
 0x4a3   :  { %v1301_v13 = vmul.f32 %v7007_v11, %v8221_v57 }
 0x4a4   :  { %v7009_v1 = vpop.eup %7008 }
 0x4a5   :  { %v8465_v3 = vadd.f32 %v1302_v16, %v1301_v13 }
 0x4a7   :  { %7010 = vtanh.f32 %v8465_v3 }
 0x4b4   :  { %v7011_v48 = vpop.eup %7010 }
 0x4b5   :  { %v1305_v50 = vmul.f32 %v7011_v48, %v7009_v1 }
 0x4b7   :  { %1375 = vmatmul.mubr.f32.vlgmr.msra.gmra.mxu0 %v1305_v50  ;;  %v2162_v43 = vcombine.high %v1305_v50, %v1305_v50  ;;  %v2169_v47 = vrot.slane %v1305_v50, %v8097_v53  ;;  %1446 = vmatmul.mubr.f32.vlgmr.msra.gmra.mxu1 %v1305_v50 }
 0x4b8   :  { %1485 = vmatpush1.msra.mxu0 %v8225_v30  ;;  %1556 = vmatpush1.msra.mxu1 %v8228_v31 }
 0x4b9   :  { %v2176_v46 = vrot.slane %v2162_v43, %v8097_v53  ;;  %v2177_v57 = vcombine.high %v2169_v47, %v2169_v47  ;;  %1486 = vmatprep.subr.mxu0 %v8233_v34  ;;  %1557 = vmatprep.subr.mxu1 %v8236_v35  ;;  %v2185_v49 = vrot.slane %v2169_v47, %v8097_v53 }
 0x4ba   :  { %1487 = vmatpush1.msra.mxu0 %v8239_v36  ;;  %1558 = vmatpush1.msra.mxu1 %v8242_v37 }
 0x4bb   :  { %1488 = vmatprep.subr.mxu0 %v8245_v40  ;;  %1559 = vmatprep.subr.mxu1 %v8248_v41  ;;  %v2494_v61 = vrot.slane %v2185_v49, %v9792_v7  ;;  %v2207_v23 = vcombine.high %v2185_v49, %v2185_v49  ;;  %v2199_v10 = vrot.slane %v2177_v57, %v8097_v53 }
 0x4bc   :  { %1489 = vmatpush1.msra.mxu0 %v8252_v44  ;;  %1560 = vmatpush1.msra.mxu1 %v8255_v45  ;;  %v2192_v51 = vrot.slane %v2176_v46, %v8097_v53  ;;  %v2178_v38 = vcombine.high %v2176_v46, %v2176_v46 }
 0x4bd   :  { %1490 = vmatprep.subr.mxu0 %v8260_v62  ;;  %1561 = vmatprep.subr.mxu1 %v8263_v54  ;;  %v8488_v2 = vsel %vm2709_vm2, %v8268_v56, %v2494_v61  ;;  %v2502_v16 = vrot.slane %v2207_v23, %v9792_v7  ;;  %v2498_v11 = vrot.slane %v2199_v10, %v9792_v7  ;;  %v9852_v23 = vld [vmem:[#allocation55_spill] sm:$0xff] }
 0x4be   :  { %1491 = vmatpush1.msra.mxu0 %v8272_v58  ;;  %1562 = vmatpush1.msra.mxu1 %v8275_v60  ;;  %v2209_v52 = vcombine.high %v2199_v10, %v2199_v10  ;;  %v2510_v13 = vrot.slane %v2192_v51, %v9792_v7  ;;  %v2206_v1 = vrot.slane %v2178_v38, %v8097_v53  ;;  %v9853_v10 = vld [vmem:[#allocation56_spill] sm:$0xff] }
 0x4bf   :  { %1492 = vmatprep.subr.mxu0 %v8280_v5  ;;  %1563 = vmatprep.subr.mxu1 %v8283_v12  ;;  %v8500_v56 = vsel %vm2709_vm2, %v8288_v6, %v2502_v16  ;;  %v8504_v48 = vsel %vm2709_vm2, %v8299_v9, %v2498_v11  ;;  %v2208_v50 = vcombine.high %v2192_v51, %v2192_v51  ;;  %v9854_v51 = vld [vmem:[#allocation54_spill] sm:$0xff]  ;;  %v9855_v38 = vld [vmem:[#allocation52_spill] sm:$0xff]  ;;  %v9856_v16 = vld [vmem:[#allocation33_spill] sm:$0xff] }
 0x4c0   :  { %1493 = vmatpush1.msra.mxu0 %v8291_v4  ;;  %1564 = vmatpush1.msra.mxu1 %v8294_v8  ;;  %v2506_v43 = vrot.slane %v2209_v52, %v9792_v7  ;;  %v8511_v47 = vsel %vm2709_vm2, %v8304_v15, %v2510_v13  ;;  %v2514_v46 = vrot.slane %v2206_v1, %v9792_v7  ;;  %v9857_v11 = vld [vmem:[#allocation34_spill] sm:$0xff]  ;;  %v9858_v52 = vld [vmem:[#allocation35_spill] sm:$0xff]  ;;  %v9859_v13 = vld [vmem:[#allocation36_spill] sm:$0xff] }
 0x4c1   :  { %1494 = vmatprep.subr.mxu0 %v8306_v29  ;;  %1565 = vmatprep.subr.mxu1 %v8309_v0  ;;  %v2518_v6 = vrot.slane %v2208_v50, %v9792_v7  ;;  %v2210_v9 = vcombine.high %v2206_v1, %v2206_v1  ;;  %v9860_v1 = vld [vmem:[#allocation37_spill] sm:$0xff]  ;;  %v9861_v50 = vld [vmem:[#allocation38_spill] sm:$0xff] }
 0x4c2   :  { %1495 = vmatpush1.msra.mxu0 %v8317_v14  ;;  %1566 = vmatpush1.msra.mxu1 %v8320_v18  ;;  %v8521_v57 = vsel %vm2709_vm2, %v8325_v17, %v2506_v43  ;;  %v8525_v15 = vsel %vm2709_vm2, %v8314_v20, %v2514_v46  ;;  %v9849_v17 = vld [vmem:[#allocation32_spill] sm:$0xff]  ;;  %v9862_v43 = vld [vmem:[#allocation39_spill] sm:$0xff] }
 0x4c3   :  { %1496 = vmatprep.subr.mxu0 %v8327_v59  ;;  %1567 = vmatprep.subr.mxu1 %v8330_v22  ;;  %v8531_v49 = vsel %vm2709_vm2, %v8335_v19, %v2518_v6  ;;  %v2522_v61 = vrot.slane %v2210_v9, %v9792_v7  ;;  %v9850_v19 = vld [vmem:[#allocation28_spill] sm:$0xff]  ;;  %v9864_v6 = vld [vmem:[#allocation41_spill] sm:$0xff]  ;;  %v9865_v9 = vld [vmem:[#allocation42_spill] sm:$0xff] }
 0x4c4   :  { %1497 = vmatpush1.msra.mxu0 %v8338_v55  ;;  %1568 = vmatpush1.msra.mxu1 %v8341_v21  ;;  %v9863_v46 = vld [vmem:[#allocation40_spill] sm:$0xff] }
 0x4c5   :  { %1498 = vmatprep.subr.mxu0 %v8344_v24  ;;  %1569 = vmatprep.subr.mxu1 %v8347_v25  ;;  %v8540_v20 = vsel %vm2709_vm2, %v8352_v26, %v2522_v61  ;;  %v9851_v26 = vld [vmem:[#allocation29_spill] sm:$0xff]  ;;  %v9866_v61 = vld [vmem:[#allocation43_spill] sm:$0xff] }
 0x4c6   :  { %1499 = vmatpush1.msra.mxu0 %v8354_v28  ;;  %1570 = vmatpush1.msra.mxu1 %v8357_v63 }
 0x4c7   :  { %1500 = vmatprep.subr.mxu0 %v8360_v32  ;;  %1571 = vmatprep.subr.mxu1 %v8363_v33 }
 0x4c8   :  { %1501 = vmatpush1.msra.mxu0 %v8366_v39  ;;  %1572 = vmatpush1.msra.mxu1 %v8369_v27 }
 0x4c9   :  { %1502 = vmatprep.subr.mxu0 %v8372_v42  ;;  %1573 = vmatprep.subr.mxu1 %v9849_v17 }
 0x4ca   :  { %1503 = vmatpush1.msra.mxu0 %v9850_v19  ;;  %1574 = vmatpush1.msra.mxu1 %v9851_v26  ;;  %v9882_v26 = vld [vmem:[#allocation66_spill] sm:$0xff] }
 0x4cb   :  { %1504 = vmatprep.subr.mxu0 %v9852_v23  ;;  %1575 = vmatprep.subr.mxu1 %v9853_v10  ;;  %v9881_v23 = vld [vmem:[#allocation68_spill] sm:$0xff] }
 0x4cc   :  { %1505 = vmatpush1.msra.mxu0 %v9854_v51  ;;  %1576 = vmatpush1.msra.mxu1 %v9855_v38 }
 0x4cd   :  { %1506 = vmatprep.subr.mxu0 %v9856_v16  ;;  %1577 = vmatprep.subr.mxu1 %v9857_v11  ;;  %v9867_v16 = vld [vmem:[#allocation44_spill] sm:$0xff]  ;;  %v9868_v11 = vld [vmem:[#allocation45_spill] sm:$0xff] }
 0x4ce   :  { %1507 = vmatpush1.msra.mxu0 %v9858_v52  ;;  %1578 = vmatpush1.msra.mxu1 %v9859_v13  ;;  %v9869_v52 = vld [vmem:[#allocation46_spill] sm:$0xff]  ;;  %v9870_v13 = vld [vmem:[#allocation47_spill] sm:$0xff] }
 0x4cf   :  { %1508 = vmatprep.subr.mxu0 %v9860_v1  ;;  %1579 = vmatprep.subr.mxu1 %v9861_v50  ;;  %v9871_v1 = vld [vmem:[#allocation48_spill] sm:$0xff]  ;;  %v9872_v50 = vld [vmem:[#allocation49_spill] sm:$0xff] }
 0x4d0   :  { %1509 = vmatpush1.msra.mxu0 %v9862_v43  ;;  %1580 = vmatpush1.msra.mxu1 %v9863_v46  ;;  %v9873_v43 = vld [vmem:[#allocation50_spill] sm:$0xff]  ;;  %v9874_v46 = vld [vmem:[#allocation57_spill] sm:$0xff] }
 0x4d1   :  { %1510 = vmatprep.subr.mxu0 %v9864_v6  ;;  %1581 = vmatprep.subr.mxu1 %v9865_v9  ;;  %v9875_v6 = vmov 0.0   ;;  %v9876_v9 = vld [vmem:[#allocation59_spill] sm:$0xff] }
 0x4d2   :  { %1511 = vmatpush1.msra.mxu0 %v9866_v61  ;;  %1582 = vmatpush1.msra.mxu1 %v9867_v16  ;;  %v9877_v16 = vld [vmem:[#allocation30_spill] sm:$0xff] }
 0x4d3   :  { %1512 = vmatprep.subr.mxu0 %v9868_v11  ;;  %1583 = vmatprep.subr.mxu1 %v9869_v52  ;;  %v9878_v11 = vld [vmem:[#allocation31_spill] sm:$0xff] }
 0x4d4   :  { %1513 = vmatpush1.msra.mxu0 %v9870_v13  ;;  %1584 = vmatpush1.msra.mxu1 %v9871_v1  ;;  %v9879_v13 = vld [vmem:[#allocation65_spill] sm:$0xff] }
 0x4d5   :  { %1514 = vmatprep.subr.mxu0 %v9872_v50  ;;  %1585 = vmatprep.subr.mxu1 %v9873_v43  ;;  %v9880_v50 = vld [vmem:[#allocation67_spill] sm:$0xff] }
 0x4d6   :  { %1515 = vmatpush1.msra.mxu0 %v9874_v46  ;;  %1548 = vmatprep.mubr.f32.mxu0 %v9875_v6 }
 0x4d7   :  { %1586 = vmatpush1.msra.mxu1 %v9876_v9  ;;  %1619 = vmatprep.mubr.f32.mxu1 %v9875_v6 }
 0x4d8   :  { %1658 = vmatprep.subr.mxu0 %v9877_v16  ;;  %1729 = vmatprep.subr.mxu1 %v9878_v11 }
 0x577   :  { %v1376_v52 = vpop.f32.mrf.mxu0  ;;  %v1447_v43 = vpop.f32.mrf.mxu1 }
 0x578   :  { %v1452_v61 = vadd.f32 %v1376_v52, %v9879_v13  ;;  %v1454_v6 = vadd.f32 %v1447_v43, %v9882_v26 }
 0x579   :  { %v1378_v1 = vpop.f32.mrf.mxu0  ;;  %v1449_v10 = vpop.f32.mrf.mxu1 }
 0x57a   :  { %v6478_v38 = vmul.f32 -1.442695, %v1452_v61  ;;  %v1453_v51 = vadd.f32 %v1378_v1, %v9880_v50  ;;  %v1455_v9 = vadd.f32 %v1449_v10, %v9881_v23 }
 0x57c   :  { %7012 = vpow2.f32 %v6478_v38  ;;  %v6479_v46 = vmul.f32 -1.442695, %v1453_v51  ;;  %v6480_v19 = vmul.f32 -1.442695, %v1455_v9 }
 0x57e   :  { %7014 = vpow2.f32 %v6479_v46 }
 0x57f   :  { %7016 = vtanh.f32 %v1454_v6 }
 0x580   :  { %7018 = vpow2.f32 %v6480_v19 }
 0x589   :  { %v7013_v16 = vpop.eup %7012 }
 0x58a   :  { %v1465_v17 = vadd.f32 1.0, %v7013_v16 }
 0x58b   :  { %v7015_v11 = vpop.eup %7014 }
 0x58c   :  { %7020 = vrcp.f32 %v1465_v17  ;;  %v1466_v52 = vadd.f32 1.0, %v7015_v11  ;;  %v7017_v13 = vpop.eup %7016 }
 0x58d   :  { %v7019_v1 = vpop.eup %7018 }
 0x58e   :  { %7022 = vrcp.f32 %v1466_v52  ;;  %v1467_v46 = vadd.f32 1.0, %v7019_v1 }
 0x590   :  { %7024 = vrcp.f32 %v1467_v46 }
 0x599   :  { %v7021_v38 = vpop.eup %7020 }
 0x59a   :  { %v1476_v50 = vmul.f32 %v7021_v38, %v7017_v13 }
 0x59b   :  { %v7023_v51 = vpop.eup %7022 }
 0x59c   :  { %v1475_v61 = vmul.f32 %v7023_v51, %v8465_v3 }
 0x59d   :  { %v7025_v26 = vpop.eup %7024 }
 0x59e   :  { %v8585_v23 = vadd.f32 %v1476_v50, %v1475_v61 }
 0x5a0   :  { %7026 = vtanh.f32 %v8585_v23 }
 0x5ad   :  { %v7027_v10 = vpop.eup %7026 }
 0x5ae   :  { %v1479_v16 = vmul.f32 %v7027_v10, %v7025_v26 }
 0x5b0   :  { %1549 = vmatmul.mubr.f32.vlgmr.msra.gmra.mxu0 %v1479_v16  ;;  %v2212_v17 = vcombine.high %v1479_v16, %v1479_v16  ;;  %v2219_v19 = vrot.slane %v1479_v16, %v8097_v53  ;;  %1620 = vmatmul.mubr.f32.vlgmr.msra.gmra.mxu1 %v1479_v16 }
 0x5b1   :  { %1659 = vmatpush1.msra.mxu0 %v8225_v30  ;;  %1730 = vmatpush1.msra.mxu1 %v8228_v31 }
 0x5b2   :  { %1660 = vmatprep.subr.mxu0 %v8233_v34  ;;  %1731 = vmatprep.subr.mxu1 %v8236_v35  ;;  %v2235_v3 = vrot.slane %v2219_v19, %v8097_v53  ;;  %v2227_v11 = vcombine.high %v2219_v19, %v2219_v19  ;;  %v2226_v43 = vrot.slane %v2212_v17, %v8097_v53 }
 0x5b3   :  { %1661 = vmatpush1.msra.mxu0 %v8239_v36  ;;  %1732 = vmatpush1.msra.mxu1 %v8242_v37 }
 0x5b4   :  { %1662 = vmatprep.subr.mxu0 %v8245_v40  ;;  %1733 = vmatprep.subr.mxu1 %v8248_v41  ;;  %v2534_v6 = vrot.slane %v2235_v3, %v9792_v7  ;;  %v2257_v9 = vcombine.high %v2235_v3, %v2235_v3  ;;  %v2249_v52 = vrot.slane %v2227_v11, %v8097_v53 }
 0x5b5   :  { %1663 = vmatpush1.msra.mxu0 %v8252_v44  ;;  %1734 = vmatpush1.msra.mxu1 %v8255_v45  ;;  %v2242_v13 = vrot.slane %v2226_v43, %v8097_v53  ;;  %v2228_v1 = vcombine.high %v2226_v43, %v2226_v43 }
 0x5b6   :  { %1664 = vmatprep.subr.mxu0 %v8260_v62  ;;  %1735 = vmatprep.subr.mxu1 %v8263_v54  ;;  %v8608_v38 = vsel %vm2718_vm3, %v8488_v2, %v2534_v6  ;;  %v2542_v50 = vrot.slane %v2257_v9, %v9792_v7  ;;  %v2538_v51 = vrot.slane %v2249_v52, %v9792_v7  ;;  %v9886_v9 = vld [vmem:[#allocation55_spill] sm:$0xff] }
 0x5b7   :  { %1665 = vmatpush1.msra.mxu0 %v8272_v58  ;;  %1736 = vmatpush1.msra.mxu1 %v8275_v60  ;;  %v2259_v46 = vcombine.high %v2249_v52, %v2249_v52  ;;  %v2550_v61 = vrot.slane %v2242_v13, %v9792_v7  ;;  %v2256_v26 = vrot.slane %v2228_v1, %v8097_v53  ;;  %v9887_v52 = vld [vmem:[#allocation56_spill] sm:$0xff] }
 0x5b8   :  { %1666 = vmatprep.subr.mxu0 %v8280_v5  ;;  %1737 = vmatprep.subr.mxu1 %v8283_v12  ;;  %v8620_v2 = vsel %vm2718_vm3, %v8500_v56, %v2542_v50  ;;  %v8624_v10 = vsel %vm2718_vm3, %v8504_v48, %v2538_v51  ;;  %v2258_v16 = vcombine.high %v2242_v13, %v2242_v13  ;;  %v9888_v13 = vld [vmem:[#allocation54_spill] sm:$0xff]  ;;  %v9889_v1 = vld [vmem:[#allocation52_spill] sm:$0xff]  ;;  %v9890_v50 = vld [vmem:[#allocation33_spill] sm:$0xff] }
 0x5b9   :  { %1667 = vmatpush1.msra.mxu0 %v8291_v4  ;;  %1738 = vmatpush1.msra.mxu1 %v8294_v8  ;;  %v2546_v17 = vrot.slane %v2259_v46, %v9792_v7  ;;  %v8631_v19 = vsel %vm2718_vm3, %v8511_v47, %v2550_v61  ;;  %v2554_v3 = vrot.slane %v2256_v26, %v9792_v7  ;;  %v9891_v51 = vld [vmem:[#allocation34_spill] sm:$0xff]  ;;  %v9892_v46 = vld [vmem:[#allocation35_spill] sm:$0xff]  ;;  %v9893_v61 = vld [vmem:[#allocation36_spill] sm:$0xff] }
 0x5ba   :  { %1668 = vmatprep.subr.mxu0 %v8306_v29  ;;  %1739 = vmatprep.subr.mxu1 %v8309_v0  ;;  %v2558_v56 = vrot.slane %v2258_v16, %v9792_v7  ;;  %v2260_v48 = vcombine.high %v2256_v26, %v2256_v26  ;;  %v9894_v26 = vld [vmem:[#allocation37_spill] sm:$0xff]  ;;  %v9895_v16 = vld [vmem:[#allocation38_spill] sm:$0xff] }
 0x5bb   :  { %1669 = vmatpush1.msra.mxu0 %v8317_v14  ;;  %1740 = vmatpush1.msra.mxu1 %v8320_v18  ;;  %v8641_v11 = vsel %vm2718_vm3, %v8521_v57, %v2546_v17  ;;  %v8645_v47 = vsel %vm2718_vm3, %v8525_v15, %v2554_v3  ;;  %v9883_v15 = vld [vmem:[#allocation32_spill] sm:$0xff]  ;;  %v9896_v17 = vld [vmem:[#allocation39_spill] sm:$0xff] }
 0x5bc   :  { %1670 = vmatprep.subr.mxu0 %v8327_v59  ;;  %1741 = vmatprep.subr.mxu1 %v8330_v22  ;;  %v8651_v43 = vsel %vm2718_vm3, %v8531_v49, %v2558_v56  ;;  %v2562_v6 = vrot.slane %v2260_v48, %v9792_v7  ;;  %v9884_v49 = vld [vmem:[#allocation28_spill] sm:$0xff]  ;;  %v9898_v56 = vld [vmem:[#allocation41_spill] sm:$0xff]  ;;  %v9899_v48 = vld [vmem:[#allocation42_spill] sm:$0xff] }
 0x5bd   :  { %1671 = vmatpush1.msra.mxu0 %v8338_v55  ;;  %1742 = vmatpush1.msra.mxu1 %v8341_v21  ;;  %v9897_v3 = vld [vmem:[#allocation40_spill] sm:$0xff] }
 0x5be   :  { %1672 = vmatprep.subr.mxu0 %v8344_v24  ;;  %1743 = vmatprep.subr.mxu1 %v8347_v25  ;;  %v8660_v57 = vsel %vm2718_vm3, %v8540_v20, %v2562_v6  ;;  %v9885_v20 = vld [vmem:[#allocation29_spill] sm:$0xff]  ;;  %v9900_v6 = vld [vmem:[#allocation43_spill] sm:$0xff] }
 0x5bf   :  { %1673 = vmatpush1.msra.mxu0 %v8354_v28  ;;  %1744 = vmatpush1.msra.mxu1 %v8357_v63 }
 0x5c0   :  { %1674 = vmatprep.subr.mxu0 %v8360_v32  ;;  %1745 = vmatprep.subr.mxu1 %v8363_v33 }
 0x5c1   :  { %1675 = vmatpush1.msra.mxu0 %v8366_v39  ;;  %1746 = vmatpush1.msra.mxu1 %v8369_v27 }
 0x5c2   :  { %1676 = vmatprep.subr.mxu0 %v8372_v42  ;;  %1747 = vmatprep.subr.mxu1 %v9883_v15 }
 0x5c3   :  { %1677 = vmatpush1.msra.mxu0 %v9884_v49  ;;  %1748 = vmatpush1.msra.mxu1 %v9885_v20  ;;  %v9916_v20 = vld [vmem:[#allocation70_spill] sm:$0xff] }
 0x5c4   :  { %1678 = vmatprep.subr.mxu0 %v9886_v9  ;;  %1749 = vmatprep.subr.mxu1 %v9887_v52  ;;  %v9915_v9 = vld [vmem:[#allocation72_spill] sm:$0xff] }
 0x5c5   :  { %1679 = vmatpush1.msra.mxu0 %v9888_v13  ;;  %1750 = vmatpush1.msra.mxu1 %v9889_v1 }
 0x5c6   :  { %1680 = vmatprep.subr.mxu0 %v9890_v50  ;;  %1751 = vmatprep.subr.mxu1 %v9891_v51  ;;  %v9901_v50 = vld [vmem:[#allocation44_spill] sm:$0xff]  ;;  %v9902_v51 = vld [vmem:[#allocation45_spill] sm:$0xff] }
 0x5c7   :  { %1681 = vmatpush1.msra.mxu0 %v9892_v46  ;;  %1752 = vmatpush1.msra.mxu1 %v9893_v61  ;;  %v9903_v46 = vld [vmem:[#allocation46_spill] sm:$0xff]  ;;  %v9904_v61 = vld [vmem:[#allocation47_spill] sm:$0xff] }
 0x5c8   :  { %1682 = vmatprep.subr.mxu0 %v9894_v26  ;;  %1753 = vmatprep.subr.mxu1 %v9895_v16  ;;  %v9905_v26 = vld [vmem:[#allocation48_spill] sm:$0xff]  ;;  %v9906_v16 = vld [vmem:[#allocation49_spill] sm:$0xff] }
 0x5c9   :  { %1683 = vmatpush1.msra.mxu0 %v9896_v17  ;;  %1754 = vmatpush1.msra.mxu1 %v9897_v3  ;;  %v9907_v17 = vld [vmem:[#allocation50_spill] sm:$0xff]  ;;  %v9908_v3 = vld [vmem:[#allocation57_spill] sm:$0xff] }
 0x5ca   :  { %1684 = vmatprep.subr.mxu0 %v9898_v56  ;;  %1755 = vmatprep.subr.mxu1 %v9899_v48  ;;  %v9909_v56 = vmov 0.0   ;;  %v9910_v48 = vld [vmem:[#allocation59_spill] sm:$0xff] }
 0x5cb   :  { %1685 = vmatpush1.msra.mxu0 %v9900_v6  ;;  %1756 = vmatpush1.msra.mxu1 %v9901_v50  ;;  %v9911_v50 = vld [vmem:[#allocation30_spill] sm:$0xff] }
 0x5cc   :  { %1686 = vmatprep.subr.mxu0 %v9902_v51  ;;  %1757 = vmatprep.subr.mxu1 %v9903_v46  ;;  %v9912_v51 = vld [vmem:[#allocation31_spill] sm:$0xff] }
 0x5cd   :  { %1687 = vmatpush1.msra.mxu0 %v9904_v61  ;;  %1758 = vmatpush1.msra.mxu1 %v9905_v26  ;;  %v9913_v61 = vld [vmem:[#allocation69_spill] sm:$0xff] }
 0x5ce   :  { %1688 = vmatprep.subr.mxu0 %v9906_v16  ;;  %1759 = vmatprep.subr.mxu1 %v9907_v17  ;;  %v9914_v16 = vld [vmem:[#allocation71_spill] sm:$0xff] }
 0x5cf   :  { %1689 = vmatpush1.msra.mxu0 %v9908_v3  ;;  %1722 = vmatprep.mubr.f32.mxu0 %v9909_v56 }
 0x5d0   :  { %1760 = vmatpush1.msra.mxu1 %v9910_v48  ;;  %1793 = vmatprep.mubr.f32.mxu1 %v9909_v56 }
 0x5d1   :  { %1832 = vmatprep.subr.mxu0 %v9911_v50  ;;  %1903 = vmatprep.subr.mxu1 %v9912_v51 }
 0x670   :  { %v1550_v46 = vpop.f32.mrf.mxu0  ;;  %v1621_v17 = vpop.f32.mrf.mxu1 }
 0x671   :  { %v1626_v6 = vadd.f32 %v1550_v46, %v9913_v61  ;;  %v1628_v56 = vadd.f32 %v1621_v17, %v9916_v20 }
 0x672   :  { %v1552_v26 = vpop.f32.mrf.mxu0  ;;  %v1623_v52 = vpop.f32.mrf.mxu1 }
 0x673   :  { %v6481_v1 = vmul.f32 -1.442695, %v1626_v6  ;;  %v1627_v13 = vadd.f32 %v1552_v26, %v9914_v16  ;;  %v1629_v48 = vadd.f32 %v1623_v52, %v9915_v9 }
 0x675   :  { %7028 = vpow2.f32 %v6481_v1  ;;  %v6482_v3 = vmul.f32 -1.442695, %v1627_v13  ;;  %v6483_v49 = vmul.f32 -1.442695, %v1629_v48 }
 0x677   :  { %7030 = vpow2.f32 %v6482_v3 }
 0x678   :  { %7032 = vtanh.f32 %v1628_v56 }
 0x679   :  { %7034 = vpow2.f32 %v6483_v49 }
 0x682   :  { %v7029_v50 = vpop.eup %7028 }
 0x683   :  { %v1639_v15 = vadd.f32 1.0, %v7029_v50 }
 0x684   :  { %v7031_v51 = vpop.eup %7030 }
 0x685   :  { %7036 = vrcp.f32 %v1639_v15  ;;  %v1640_v46 = vadd.f32 1.0, %v7031_v51  ;;  %v7033_v61 = vpop.eup %7032  ;;  %v9937_v51 = vld [vmem:[#allocation46_spill] sm:$0xff] }
 0x686   :  { %v7035_v26 = vpop.eup %7034 }
 0x687   :  { %7038 = vrcp.f32 %v1640_v46  ;;  %v1641_v3 = vadd.f32 1.0, %v7035_v26  ;;  %v9938_v46 = vld [vmem:[#allocation47_spill] sm:$0xff]  ;;  %v9940_v26 = vld [vmem:[#allocation49_spill] sm:$0xff] }
 0x689   :  { %7040 = vrcp.f32 %v1641_v3  ;;  %v9944_v3 = vld [vmem:[#allocation59_spill] sm:$0xff] }
 0x692   :  { %v7037_v1 = vpop.eup %7036 }
 0x693   :  { %v1650_v16 = vmul.f32 %v7037_v1, %v7033_v61  ;;  %v9939_v61 = vld [vmem:[#allocation48_spill] sm:$0xff]  ;;  %v9941_v1 = vld [vmem:[#allocation50_spill] sm:$0xff] }
 0x694   :  { %v7039_v13 = vpop.eup %7038 }
 0x695   :  { %v1649_v6 = vmul.f32 %v7039_v13, %v8585_v23  ;;  %v9943_v13 = vmov 0.0  }
 0x696   :  { %v7041_v20 = vpop.eup %7040 }
 0x697   :  { %v8705_v9 = vadd.f32 %v1650_v16, %v1649_v6  ;;  %v9942_v16 = vld [vmem:[#allocation57_spill] sm:$0xff]  ;;  %v2002_v6 = vld [vmem:[#allocation6] sm:$0xff] }
 0x699   :  { %7042 = vtanh.f32 %v8705_v9 }
 0x6a6   :  { %v7043_v52 = vpop.eup %7042 }
 0x6a7   :  { %v1653_v17 = vmul.f32 %v7043_v52, %v7041_v20  ;;  %v2757_v20 = vrot.slane %v2002_v6, %v9792_v7  ;;  %v9945_v52 = vld [vmem:[#allocation51_spill] sm:$0xff] }
 0x6a9   :  { %1723 = vmatmul.mubr.f32.vlgmr.msra.gmra.mxu0 %v1653_v17  ;;  %v2262_v15 = vcombine.high %v1653_v17, %v1653_v17  ;;  %1794 = vmatmul.mubr.f32.vlgmr.msra.gmra.mxu1 %v1653_v17  ;;  %v2269_v49 = vrot.slane %v1653_v17, %v8097_v53  ;;  %v9946_v17 = vsub.s32 2, %v9945_v52 }
 0x6aa   :  { %1833 = vmatpush1.msra.mxu0 %v8225_v30  ;;  %1904 = vmatpush1.msra.mxu1 %v8228_v31 }
 0x6ab   :  { %1834 = vmatprep.subr.mxu0 %v8233_v34  ;;  %1905 = vmatprep.subr.mxu1 %v8236_v35  ;;  %v2285_v23 = vrot.slane %v2269_v49, %v8097_v53  ;;  %v2277_v56 = vcombine.high %v2269_v49, %v2269_v49  ;;  %v2276_v48 = vrot.slane %v2262_v15, %v8097_v53  ;;  %v9947_v49 = vld [vmem:[#allocation53_spill] sm:$0xff] }
 0x6ac   :  { %1835 = vmatpush1.msra.mxu0 %v8239_v36  ;;  %1906 = vmatpush1.msra.mxu1 %v8242_v37  ;;  %v2771_v15 = vrot.slane %v2002_v6, %v9946_v17 }
 0x6ad   :  { %1836 = vmatprep.subr.mxu0 %v8245_v40  ;;  %1907 = vmatprep.subr.mxu1 %v8248_v41  ;;  %v2574_v30 = vrot.slane %v2285_v23, %v9792_v7  ;;  %v2307_v31 = vcombine.high %v2285_v23, %v2285_v23  ;;  %v2299_v34 = vrot.slane %v2277_v56, %v8097_v53  ;;  %v9948_v56 = vsub.s32 3, %v9945_v52 }
 0x6ae   :  { %1837 = vmatpush1.msra.mxu0 %v8252_v44  ;;  %1908 = vmatpush1.msra.mxu1 %v8255_v45  ;;  %v2292_v35 = vrot.slane %v2276_v48, %v8097_v53  ;;  %v2278_v50 = vcombine.high %v2276_v48, %v2276_v48  ;;  %v2764_v23 = vrot.slane %v2002_v6, %v9947_v49 }
 0x6af   :  { %1838 = vmatprep.subr.mxu0 %v8260_v62  ;;  %1909 = vmatprep.subr.mxu1 %v8263_v54  ;;  %v8728_v36 = vsel %vm2727_vm4, %v8608_v38, %v2574_v30  ;;  %v2582_v37 = vrot.slane %v2307_v31, %v9792_v7  ;;  %v2578_v40 = vrot.slane %v2299_v34, %v9792_v7  ;;  %v2784_v30 = vsub.s32 4, %v9945_v52 }
 0x6b0   :  { %1839 = vmatpush1.msra.mxu0 %v8272_v58  ;;  %1910 = vmatpush1.msra.mxu1 %v8275_v60  ;;  %v2309_v41 = vcombine.high %v2299_v34, %v2299_v34  ;;  %v2590_v44 = vrot.slane %v2292_v35, %v9792_v7  ;;  %v2306_v45 = vrot.slane %v2278_v50, %v8097_v53  ;;  %v2791_v31 = vsub.s32 5, %v9945_v52 }
 0x6b1   :  { %1840 = vmatprep.subr.mxu0 %v8280_v5  ;;  %1911 = vmatprep.subr.mxu1 %v8283_v12  ;;  %v8740_v62 = vsel %vm2727_vm4, %v8620_v2, %v2582_v37  ;;  %v8744_v54 = vsel %vm2727_vm4, %v8624_v10, %v2578_v40  ;;  %v2308_v58 = vcombine.high %v2292_v35, %v2292_v35  ;;  %v9931_v10 = vld [vmem:[#allocation40_spill] sm:$0xff]  ;;  %v2798_v50 = vsub.s32 6, %v9945_v52 }
 0x6b2   :  { %1841 = vmatpush1.msra.mxu0 %v8291_v4  ;;  %1912 = vmatpush1.msra.mxu1 %v8294_v8  ;;  %v2586_v60 = vrot.slane %v2309_v41, %v9792_v7  ;;  %v8751_v5 = vsel %vm2727_vm4, %v8631_v19, %v2590_v44  ;;  %v2594_v12 = vrot.slane %v2306_v45, %v9792_v7  ;;  %v9932_v19 = vld [vmem:[#allocation41_spill] sm:$0xff]  ;;  %v2805_v37 = vsub.s32 7, %v9945_v52 }
 0x6b3   :  { %1842 = vmatprep.subr.mxu0 %v8306_v29  ;;  %1913 = vmatprep.subr.mxu1 %v8309_v0  ;;  %v2598_v38 = vrot.slane %v2308_v58, %v9792_v7  ;;  %v2310_v2 = vcombine.high %v2306_v45, %v2306_v45  ;;  %v2778_v48 = vrot.slane %v2002_v6, %v9948_v56  ;;  %v9949_v45 = vld [vmem:[#allocation73_spill] sm:$0xff] }
 0x6b4   :  { %1843 = vmatpush1.msra.mxu0 %v8317_v14  ;;  %1914 = vmatpush1.msra.mxu1 %v8320_v18  ;;  %v8761_v4 = vsel %vm2727_vm4, %v8641_v11, %v2586_v60  ;;  %v8765_v8 = vsel %vm2727_vm4, %v8645_v47, %v2594_v12  ;;  %v9917_v18 = vld [vmem:[#allocation32_spill] sm:$0xff]  ;;  %v9933_v11 = vld [vmem:[#allocation42_spill] sm:$0xff]  ;;  %v9934_v47 = vld [vmem:[#allocation43_spill] sm:$0xff]  ;;  %v2785_v34 = vrot.slane %v2002_v6, %v2784_v30 }
 0x6b5   :  { %1844 = vmatprep.subr.mxu0 %v8327_v59  ;;  %1915 = vmatprep.subr.mxu1 %v8330_v22  ;;  %v8771_v29 = vsel %vm2727_vm4, %v8651_v43, %v2598_v38  ;;  %v2602_v0 = vrot.slane %v2310_v2, %v9792_v7  ;;  %v9918_v59 = vld [vmem:[#allocation28_spill] sm:$0xff]  ;;  %v9919_v22 = vld [vmem:[#allocation29_spill] sm:$0xff]  ;;  %v2792_v35 = vrot.slane %v2002_v6, %v2791_v31  ;;  %v9950_v38 = vld [vmem:[#allocation75_spill] sm:$0xff] }
 0x6b6   :  { %1845 = vmatpush1.msra.mxu0 %v8338_v55  ;;  %1916 = vmatpush1.msra.mxu1 %v8341_v21  ;;  %v9920_v55 = vld [vmem:[#allocation55_spill] sm:$0xff]  ;;  %v9921_v21 = vld [vmem:[#allocation56_spill] sm:$0xff]  ;;  %v2799_v40 = vrot.slane %v2002_v6, %v2798_v50  ;;  %v2806_v41 = vrot.slane %v2002_v6, %v2805_v37 }
 0x6b7   :  { %1846 = vmatprep.subr.mxu0 %v8344_v24  ;;  %1917 = vmatprep.subr.mxu1 %v8347_v25  ;;  %v8780_v14 = vsel %vm2727_vm4, %v8660_v57, %v2602_v0  ;;  %v9922_v24 = vld [vmem:[#allocation54_spill] sm:$0xff]  ;;  %v9923_v25 = vld [vmem:[#allocation52_spill] sm:$0xff]  ;;  %v9936_v57 = vld [vmem:[#allocation45_spill] sm:$0xff] }
 0x6b8   :  { %1847 = vmatpush1.msra.mxu0 %v8354_v28  ;;  %1918 = vmatpush1.msra.mxu1 %v8357_v63  ;;  %v9924_v28 = vld [vmem:[#allocation33_spill] sm:$0xff]  ;;  %v9925_v63 = vld [vmem:[#allocation34_spill] sm:$0xff]  ;;  %v9935_v43 = vld [vmem:[#allocation44_spill] sm:$0xff] }
 0x6b9   :  { %1848 = vmatprep.subr.mxu0 %v8360_v32  ;;  %1919 = vmatprep.subr.mxu1 %v8363_v33  ;;  %v9926_v32 = vld [vmem:[#allocation35_spill] sm:$0xff]  ;;  %v9927_v33 = vld [vmem:[#allocation36_spill] sm:$0xff] }
 0x6ba   :  { %1849 = vmatpush1.msra.mxu0 %v8366_v39  ;;  %1920 = vmatpush1.msra.mxu1 %v8369_v27  ;;  %v9928_v39 = vld [vmem:[#allocation37_spill] sm:$0xff]  ;;  %v9929_v27 = vld [vmem:[#allocation38_spill] sm:$0xff] }
 0x6bb   :  { %1850 = vmatprep.subr.mxu0 %v8372_v42  ;;  %1921 = vmatprep.subr.mxu1 %v9917_v18  ;;  %v9930_v42 = vld [vmem:[#allocation39_spill] sm:$0xff] }
 0x6bc   :  { %1851 = vmatpush1.msra.mxu0 %v9918_v59  ;;  %1922 = vmatpush1.msra.mxu1 %v9919_v22  ;;  %v9951_v22 = vld [vmem:[#allocation76_spill] sm:$0xff] }
 0x6bd   :  { %1852 = vmatprep.subr.mxu0 %v9920_v55  ;;  %1923 = vmatprep.subr.mxu1 %v9921_v21  ;;  %v9952_v21 = vld [vmem:[#allocation74_spill] sm:$0xff] }
 0x6be   :  { %1853 = vmatpush1.msra.mxu0 %v9922_v24  ;;  %1924 = vmatpush1.msra.mxu1 %v9923_v25 }
 0x6bf   :  { %1854 = vmatprep.subr.mxu0 %v9924_v28  ;;  %1925 = vmatprep.subr.mxu1 %v9925_v63 }
 0x6c0   :  { %1855 = vmatpush1.msra.mxu0 %v9926_v32  ;;  %1926 = vmatpush1.msra.mxu1 %v9927_v33 }
 0x6c1   :  { %1856 = vmatprep.subr.mxu0 %v9928_v39  ;;  %1927 = vmatprep.subr.mxu1 %v9929_v27 }
 0x6c2   :  { %1857 = vmatpush1.msra.mxu0 %v9930_v42  ;;  %1928 = vmatpush1.msra.mxu1 %v9931_v10 }
 0x6c3   :  { %1858 = vmatprep.subr.mxu0 %v9932_v19  ;;  %1929 = vmatprep.subr.mxu1 %v9933_v11 }
 0x6c4   :  { %1859 = vmatpush1.msra.mxu0 %v9934_v47  ;;  %1930 = vmatpush1.msra.mxu1 %v9935_v43 }
 0x6c5   :  { %1860 = vmatprep.subr.mxu0 %v9936_v57  ;;  %1931 = vmatprep.subr.mxu1 %v9937_v51 }
 0x6c6   :  { %1861 = vmatpush1.msra.mxu0 %v9938_v46  ;;  %1932 = vmatpush1.msra.mxu1 %v9939_v61 }
 0x6c7   :  { %1862 = vmatprep.subr.mxu0 %v9940_v26  ;;  %1933 = vmatprep.subr.mxu1 %v9941_v1 }
 0x6c8   :  { %1863 = vmatpush1.msra.mxu0 %v9942_v16  ;;  %1896 = vmatprep.mubr.f32.mxu0 %v9943_v13 }
 0x6c9   :  { %1934 = vmatpush1.msra.mxu1 %v9944_v3  ;;  %1967 = vmatprep.mubr.f32.mxu1 %v9943_v13 }
 0x6ca   :  { %2759 = vbcast.lane.b32.xlu0 %v2757_v20, 256  ;;  %2773 = vbcast.lane.b32.xlu1 %v2771_v15, 256 }
 0x6ce   :  { %2766 = vbcast.lane.b32.xlu0 %v2764_v23, 256  ;;  %2780 = vbcast.lane.b32.xlu1 %v2778_v48, 256 }
 0x6d2   :  { %2787 = vbcast.lane.b32.xlu0 %v2785_v34, 256  ;;  %2794 = vbcast.lane.b32.xlu1 %v2792_v35, 256 }
 0x6d6   :  { %2801 = vbcast.lane.b32.xlu0 %v2799_v40, 256  ;;  %2808 = vbcast.lane.b32.xlu1 %v2806_v41, 256 }
 0x769   :  { %v1724_v44 = vpop.f32.mrf.mxu0  ;;  %v1795_v0 = vpop.f32.mrf.mxu1 }
 0x76a   :  { %v1800_v58 = vadd.f32 %v1724_v44, %v9949_v45  ;;  %v1802_v24 = vadd.f32 %v1795_v0, %v9952_v21  ;;  %v3003_v0 = vld [vmem:[#allocation12 + $0xe0] sm:$0xff]  ;;  %v3000_v21 = vld [vmem:[#allocation12 + $0xc8] sm:$0xff] }
 0x76b   :  { %v1726_v60 = vpop.f32.mrf.mxu0  ;;  %v1797_v59 = vpop.f32.mrf.mxu1 }
 0x76c   :  { %v6484_v12 = vmul.f32 -1.442695, %v1800_v58  ;;  %v1801_v2 = vadd.f32 %v1726_v60, %v9950_v38  ;;  %v1803_v55 = vadd.f32 %v1797_v59, %v9951_v22  ;;  %v2849_v60 = vld [vmem:[#allocation11 + $0xf8] sm:$0xff]  ;;  %v3005_v38 = vld [vmem:[#allocation12 + $0xf0] sm:$0xff] }
 0x76d   :  { %2862 = vmatprep.subr.mxu0 %v2849_v60  ;;  %v3002_v59 = vld [vmem:[#allocation12 + $0xd8] sm:$0xff]  ;;  %v3001_v22 = vld [vmem:[#allocation12 + $0xd0] sm:$0xff] }
 0x76e   :  { %7044 = vpow2.f32 %v6484_v12  ;;  %v6485_v18 = vmul.f32 -1.442695, %v1801_v2  ;;  %v6486_v25 = vmul.f32 -1.442695, %v1803_v55  ;;  %v3006_v12 = vld [vmem:[#allocation12 + $0xf8] sm:$0xff]  ;;  %v3004_v2 = vld [vmem:[#allocation12 + $0xe8] sm:$0xff] }
 0x76f   :  { %3019 = vmatprep.subr.mxu1 %v3006_v12  ;;  %v2843_v55 = vld [vmem:[#allocation11 + $0xc8] sm:$0xff]  ;;  %v2981_v60 = vld [vmem:[#allocation12 + $0x30] sm:$0xff] }
 0x770   :  { %7046 = vpow2.f32 %v6485_v18  ;;  %v2845_v18 = vld [vmem:[#allocation11 + $0xd8] sm:$0xff]  ;;  %v2823_v12 = vld [vmem:[#allocation11 + $0x28] sm:$0xff] }
 0x771   :  { %7048 = vtanh.f32 %v1802_v24  ;;  %v2842_v24 = vld [vmem:[#allocation11 + $0xc0] sm:$0xff] }
 0x772   :  { %7050 = vpow2.f32 %v6486_v25  ;;  %v2999_v25 = vld [vmem:[#allocation12 + $0xc0] sm:$0xff] }
 0x77b   :  { %v7045_v28 = vpop.eup %7044 }
 0x77c   :  { %v1813_v63 = vadd.f32 1.0, %v7045_v28  ;;  %v2841_v28 = vld [vmem:[#allocation11 + $0xb8] sm:$0xff] }
 0x77d   :  { %v7047_v32 = vpop.eup %7046 }
 0x77e   :  { %7052 = vrcp.f32 %v1813_v63  ;;  %v1814_v33 = vadd.f32 1.0, %v7047_v32  ;;  %v7049_v39 = vpop.eup %7048  ;;  %v2998_v63 = vld [vmem:[#allocation12 + $0xb8] sm:$0xff]  ;;  %v2840_v32 = vld [vmem:[#allocation11 + $0xb0] sm:$0xff] }
 0x77f   :  { %v7051_v27 = vpop.eup %7050 }
 0x780   :  { %7054 = vrcp.f32 %v1814_v33  ;;  %v1815_v11 = vadd.f32 1.0, %v7051_v27  ;;  %v2997_v33 = vld [vmem:[#allocation12 + $0xb0] sm:$0xff]  ;;  %v2996_v27 = vld [vmem:[#allocation12 + $0xa8] sm:$0xff] }
 0x782   :  { %7056 = vrcp.f32 %v1815_v11  ;;  %v2994_v11 = vld [vmem:[#allocation12 + $0x98] sm:$0xff] }
 0x78b   :  { %v7053_v42 = vpop.eup %7052 }
 0x78c   :  { %v1824_v10 = vmul.f32 %v7053_v42, %v7049_v39  ;;  %v2839_v39 = vld [vmem:[#allocation11 + $0xa8] sm:$0xff]  ;;  %v2838_v42 = vld [vmem:[#allocation11 + $0xa0] sm:$0xff] }
 0x78d   :  { %v7055_v19 = vpop.eup %7054 }
 0x78e   :  { %v1823_v47 = vmul.f32 %v7055_v19, %v8705_v9  ;;  %v2837_v19 = vld [vmem:[#allocation11 + $0x98] sm:$0xff] }
 0x78f   :  { %v7057_v57 = vpop.eup %7056 }
 0x790   :  { %v8833_v43 = vadd.f32 %v1824_v10, %v1823_v47  ;;  %v2995_v10 = vld [vmem:[#allocation12 + $0xa0] sm:$0xff]  ;;  %v2836_v47 = vld [vmem:[#allocation11 + $0x90] sm:$0xff] }
 0x792   :  { %7058 = vtanh.f32 %v8833_v43 }
 0x79f   :  { %v7059_v51 = vpop.eup %7058 }
 0x7a0   :  { %v1827_v46 = vmul.f32 %v7059_v51, %v7057_v57  ;;  %v2993_v57 = vld [vmem:[#allocation12 + $0x90] sm:$0xff]  ;;  %v2835_v51 = vld [vmem:[#allocation11 + $0x88] sm:$0xff] }
 0x7a2   :  { %1897 = vmatmul.mubr.f32.vlgmr.msra.gmra.mxu0 %v1827_v46  ;;  %1968 = vmatmul.mubr.f32.vlgmr.msra.gmra.mxu1 %v1827_v46  ;;  %v2319_v61 = vrot.slane %v1827_v46, %v8097_v53  ;;  %v2312_v26 = vcombine.high %v1827_v46, %v1827_v46  ;;  %v2992_v46 = vld [vmem:[#allocation12 + $0x88] sm:$0xff] }
 0x7a3   :  { %2926 = vmatprep.mubr.f32.mxu0 %v9943_v13  ;;  %3083 = vmatprep.mubr.f32.mxu1 %v9943_v13 }
 0x7a4   :  { %v2335_v1 = vrot.slane %v2319_v61, %v8097_v53  ;;  %v2327_v9 = vcombine.high %v2319_v61, %v2319_v61  ;;  %v2326_v16 = vrot.slane %v2312_v26, %v8097_v53  ;;  %3020 = vmatpush1.msra.mxu1 %v3005_v38  ;;  %v2834_v61 = vld [vmem:[#allocation11 + $0x80] sm:$0xff] }
 0x7a5   :  { %3021 = vmatprep.subr.mxu1 %v3004_v2  ;;  %v2991_v26 = vld [vmem:[#allocation12 + $0x80] sm:$0xff]  ;;  %v2821_v2 = vld [vmem:[#allocation11 + $0x18] sm:$0xff] }
 0x7a6   :  { %v2614_v3 = vrot.slane %v2335_v1, %v9792_v7  ;;  %v2357_v6 = vcombine.high %v2335_v1, %v2335_v1  ;;  %v2349_v20 = vrot.slane %v2327_v9, %v8097_v53  ;;  %v2342_v52 = vrot.slane %v2326_v16, %v8097_v53  ;;  %3022 = vmatpush1.msra.mxu1 %v3003_v0  ;;  %v2833_v1 = vld [vmem:[#allocation11 + $0x78] sm:$0xff]  ;;  %v2822_v38 = vld [vmem:[#allocation11 + $0x20] sm:$0xff]  ;;  %v2820_v0 = vld [vmem:[#allocation11 + $0x10] sm:$0xff] }
 0x7a7   :  { %v2328_v17 = vcombine.high %v2326_v16, %v2326_v16  ;;  %3023 = vmatprep.subr.mxu1 %v3002_v59  ;;  %v2990_v9 = vld [vmem:[#allocation12 + $0x78] sm:$0xff]  ;;  %v2832_v16 = vld [vmem:[#allocation11 + $0x70] sm:$0xff]  ;;  %v2819_v59 = vld [vmem:[#allocation11 + $0x8] sm:$0xff] }
 0x7a8   :  { %v8846_v15 = vsel %vm2736_vm5, %v8728_v36, %v2614_v3  ;;  %v2622_v23 = vrot.slane %v2357_v6, %v9792_v7  ;;  %v2618_v56 = vrot.slane %v2349_v20, %v9792_v7  ;;  %v2359_v48 = vcombine.high %v2349_v20, %v2349_v20  ;;  %3024 = vmatpush1.msra.mxu1 %v3001_v22  ;;  %v2989_v3 = vld [vmem:[#allocation12 + $0x70] sm:$0xff]  ;;  %v2831_v6 = vld [vmem:[#allocation11 + $0x68] sm:$0xff]  ;;  %v2818_v22 = vld [vmem:[#allocation11] sm:$0xff] }
 0x7a9   :  { %v2630_v30 = vrot.slane %v2342_v52, %v9792_v7  ;;  %v2356_v31 = vrot.slane %v2328_v17, %v8097_v53  ;;  %v2358_v34 = vcombine.high %v2342_v52, %v2342_v52  ;;  %3025 = vmatprep.subr.mxu1 %v3000_v21  ;;  %v2988_v20 = vld [vmem:[#allocation12 + $0x68] sm:$0xff]  ;;  %v2830_v52 = vld [vmem:[#allocation11 + $0x60] sm:$0xff]  ;;  %v3163_v21 = vld [vmem:[#allocation14 + $0xf8] sm:$0xff] }
 0x7aa   :  { %v8854_v35 = vsel %vm2736_vm5, %v8740_v62, %v2622_v23  ;;  %v8858_v50 = vsel %vm2736_vm5, %v8744_v54, %v2618_v56  ;;  %v2626_v36 = vrot.slane %v2359_v48, %v9792_v7  ;;  %3026 = vmatpush1.msra.mxu1 %v2999_v25  ;;  %v2987_v17 = vld [vmem:[#allocation12 + $0x60] sm:$0xff]  ;;  %v2829_v23 = vld [vmem:[#allocation11 + $0x58] sm:$0xff]  ;;  %v2828_v48 = vld [vmem:[#allocation11 + $0x50] sm:$0xff] }
 0x7ab   :  { %v8863_v37 = vsel %vm2736_vm5, %v8751_v5, %v2630_v30  ;;  %v2634_v40 = vrot.slane %v2356_v31, %v9792_v7  ;;  %v2638_v41 = vrot.slane %v2358_v34, %v9792_v7  ;;  %v2360_v44 = vcombine.high %v2356_v31, %v2356_v31  ;;  %3027 = vmatprep.subr.mxu1 %v2998_v63  ;;  %v2986_v56 = vld [vmem:[#allocation12 + $0x58] sm:$0xff]  ;;  %v2985_v30 = vld [vmem:[#allocation12 + $0x50] sm:$0xff]  ;;  %v2827_v31 = vld [vmem:[#allocation11 + $0x48] sm:$0xff] }
 0x7ac   :  { %v8869_v45 = vsel %vm2736_vm5, %v8761_v4, %v2626_v36  ;;  %v2848_v4 = vld [vmem:[#allocation11 + $0xf0] sm:$0xff]  ;;  %3028 = vmatpush1.msra.mxu1 %v2997_v33  ;;  %v2984_v34 = vld [vmem:[#allocation12 + $0x48] sm:$0xff]  ;;  %v2826_v36 = vld [vmem:[#allocation11 + $0x40] sm:$0xff] }
 0x7ad   :  { %v8873_v62 = vsel %vm2736_vm5, %v8765_v8, %v2634_v40  ;;  %v8877_v54 = vsel %vm2736_vm5, %v8771_v29, %v2638_v41  ;;  %v2642_v5 = vrot.slane %v2360_v44, %v9792_v7  ;;  %2863 = vmatpush1.msra.mxu0 %v2848_v4  ;;  %v2847_v8 = vld [vmem:[#allocation11 + $0xe8] sm:$0xff]  ;;  %v2846_v29 = vld [vmem:[#allocation11 + $0xe0] sm:$0xff]  ;;  %3029 = vmatprep.subr.mxu1 %v2996_v27  ;;  %v2825_v41 = vld [vmem:[#allocation11 + $0x38] sm:$0xff] }
 0x7ae   :  { %2864 = vmatprep.subr.mxu0 %v2847_v8  ;;  %3030 = vmatpush1.msra.mxu1 %v2995_v10  ;;  %v2983_v40 = vld [vmem:[#allocation12 + $0x40] sm:$0xff]  ;;  %v2982_v44 = vld [vmem:[#allocation12 + $0x38] sm:$0xff]  ;;  %v2980_v4 = vld [vmem:[#allocation12 + $0x28] sm:$0xff] }
 0x7af   :  { %v8882_v58 = vsel %vm2736_vm5, %v8780_v14, %v2642_v5  ;;  %2865 = vmatpush1.msra.mxu0 %v2846_v29  ;;  %v2844_v14 = vld [vmem:[#allocation11 + $0xd0] sm:$0xff]  ;;  %3031 = vmatprep.subr.mxu1 %v2994_v11  ;;  %v2979_v8 = vld [vmem:[#allocation12 + $0x20] sm:$0xff]  ;;  %v2978_v29 = vld [vmem:[#allocation12 + $0x18] sm:$0xff] }
 0x7b0   :  { %2866 = vmatprep.subr.mxu0 %v2845_v18  ;;  %3032 = vmatpush1.msra.mxu1 %v2993_v57  ;;  %v2824_v5 = vld [vmem:[#allocation11 + $0x30] sm:$0xff]  ;;  %v9954_v33 = vld [vmem:[#allocation79_spill] sm:$0xff] }
 0x7b1   :  { %2867 = vmatpush1.msra.mxu0 %v2844_v14  ;;  %3033 = vmatprep.subr.mxu1 %v2992_v46  ;;  %v2977_v18 = vld [vmem:[#allocation12 + $0x10] sm:$0xff]  ;;  %v2976_v14 = vld [vmem:[#allocation12 + $0x8] sm:$0xff] }
 0x7b2   :  { %2868 = vmatprep.subr.mxu0 %v2843_v55  ;;  %3034 = vmatpush1.msra.mxu1 %v2991_v26  ;;  %v2975_v55 = vld [vmem:[#allocation12] sm:$0xff]  ;;  %v9953_v25 = vld [vmem:[#allocation77_spill] sm:$0xff] }
 0x7b3   :  { %2869 = vmatpush1.msra.mxu0 %v2842_v24  ;;  %3035 = vmatprep.subr.mxu1 %v2990_v9 }
 0x7b4   :  { %2870 = vmatprep.subr.mxu0 %v2841_v28  ;;  %3036 = vmatpush1.msra.mxu1 %v2989_v3 }
 0x7b5   :  { %2871 = vmatpush1.msra.mxu0 %v2840_v32  ;;  %3037 = vmatprep.subr.mxu1 %v2988_v20 }
 0x7b6   :  { %2872 = vmatprep.subr.mxu0 %v2839_v39  ;;  %3038 = vmatpush1.msra.mxu1 %v2987_v17 }
 0x7b7   :  { %2873 = vmatpush1.msra.mxu0 %v2838_v42  ;;  %3039 = vmatprep.subr.mxu1 %v2986_v56 }
 0x7b8   :  { %2874 = vmatprep.subr.mxu0 %v2837_v19  ;;  %3040 = vmatpush1.msra.mxu1 %v2985_v30  ;;  %v9955_v19 = vld [vmem:[#allocation80_spill] sm:$0xff] }
 0x7b9   :  { %2875 = vmatpush1.msra.mxu0 %v2836_v47  ;;  %3041 = vmatprep.subr.mxu1 %v2984_v34  ;;  %v9956_v47 = vld [vmem:[#allocation78_spill] sm:$0xff] }
 0x7ba   :  { %2876 = vmatprep.subr.mxu0 %v2835_v51  ;;  %3042 = vmatpush1.msra.mxu1 %v2983_v40 }
 0x7bb   :  { %2877 = vmatpush1.msra.mxu0 %v2834_v61  ;;  %3043 = vmatprep.subr.mxu1 %v2982_v44 }
 0x7bc   :  { %2878 = vmatprep.subr.mxu0 %v2833_v1  ;;  %3044 = vmatpush1.msra.mxu1 %v2981_v60 }
 0x7bd   :  { %2879 = vmatpush1.msra.mxu0 %v2832_v16  ;;  %3045 = vmatprep.subr.mxu1 %v2980_v4 }
 0x7be   :  { %2880 = vmatprep.subr.mxu0 %v2831_v6  ;;  %3046 = vmatpush1.msra.mxu1 %v2979_v8 }
 0x7bf   :  { %2881 = vmatpush1.msra.mxu0 %v2830_v52  ;;  %3047 = vmatprep.subr.mxu1 %v2978_v29 }
 0x7c0   :  { %2882 = vmatprep.subr.mxu0 %v2829_v23  ;;  %3048 = vmatpush1.msra.mxu1 %v2977_v18 }
 0x7c1   :  { %2883 = vmatpush1.msra.mxu0 %v2828_v48  ;;  %3049 = vmatprep.subr.mxu1 %v2976_v14 }
 0x7c2   :  { %2884 = vmatprep.subr.mxu0 %v2827_v31  ;;  %3050 = vmatpush1.msra.mxu1 %v2975_v55 }
 0x7c3   :  { %2885 = vmatpush1.msra.mxu0 %v2826_v36  ;;  %6894 = vmatprep.subr.mxu1 %v3163_v21 }
 0x7c4   :  { %2886 = vmatprep.subr.mxu0 %v2825_v41 }
 0x7c5   :  { %2887 = vmatpush1.msra.mxu0 %v2824_v5 }
 0x7c6   :  { %2888 = vmatprep.subr.mxu0 %v2823_v12  ;;  %v2760_v12 = vpop.permute.xlu0 %2759 }
 0x7c7   :  { %2889 = vmatpush1.msra.mxu0 %v2822_v38 }
 0x7c8   :  { %2890 = vmatprep.subr.mxu0 %v2821_v2 }
 0x7c9   :  { %2891 = vmatpush1.msra.mxu0 %v2820_v0 }
 0x7ca   :  { %2892 = vmatprep.subr.mxu0 %v2819_v59 }
 0x7cb   :  { %2893 = vmatpush1.msra.mxu0 %v2818_v22  ;;  %v3162_v22 = vld [vmem:[#allocation14 + $0xf0] sm:$0xff] }
 0x7cc   :  { %3176 = vmatprep.subr.mxu0 %v3163_v21 }
 0x862   :  { %v1898_v24 = vpop.f32.mrf.mxu0  ;;  %v1969_v27 = vpop.f32.mrf.mxu1 }
 0x863   :  { %v1974_v28 = vadd.f32 %v1898_v24, %v9953_v25  ;;  %v1976_v57 = vadd.f32 %v1969_v27, %v9956_v47  ;;  %v3161_v24 = vld [vmem:[#allocation14 + $0xe8] sm:$0xff] }
 0x864   :  { %v1900_v63 = vpop.f32.mrf.mxu0  ;;  %v1971_v10 = vpop.f32.mrf.mxu1 }
 0x865   :  { %v6487_v32 = vmul.f32 -1.442695, %v1974_v28  ;;  %v1975_v39 = vadd.f32 %v1900_v63, %v9954_v33  ;;  %v1977_v11 = vadd.f32 %v1971_v10, %v9955_v19  ;;  %v3157_v10 = vld [vmem:[#allocation14 + $0xc8] sm:$0xff] }
 0x867   :  { %7060 = vpow2.f32 %v6487_v32  ;;  %v6488_v42 = vmul.f32 -1.442695, %v1975_v39  ;;  %v6489_v51 = vmul.f32 -1.442695, %v1977_v11  ;;  %v2767_v32 = vpop.permute.xlu0 %2766  ;;  %v2774_v11 = vpop.permute.xlu1 %2773 }
 0x869   :  { %7062 = vpow2.f32 %v6488_v42 }
 0x86a   :  { %7064 = vtanh.f32 %v1976_v57  ;;  %v3155_v57 = vld [vmem:[#allocation14 + $0xb8] sm:$0xff] }
 0x86b   :  { %7066 = vpow2.f32 %v6489_v51  ;;  %v3153_v51 = vld [vmem:[#allocation14 + $0xa8] sm:$0xff] }
 0x874   :  { %v7061_v46 = vpop.eup %7060 }
 0x875   :  { %v1987_v61 = vadd.f32 1.0, %v7061_v46  ;;  %v3152_v46 = vld [vmem:[#allocation14 + $0xa0] sm:$0xff] }
 0x876   :  { %v7063_v26 = vpop.eup %7062 }
 0x877   :  { %7068 = vrcp.f32 %v1987_v61  ;;  %v1988_v1 = vadd.f32 1.0, %v7063_v26  ;;  %v7065_v9 = vpop.eup %7064  ;;  %v2781_v61 = vpop.permute.xlu1 %2780 }
 0x878   :  { %v7067_v16 = vpop.eup %7066 }
 0x879   :  { %7070 = vrcp.f32 %v1988_v1  ;;  %v1989_v52 = vadd.f32 1.0, %v7067_v16  ;;  %v3151_v1 = vld [vmem:[#allocation14 + $0x98] sm:$0xff]  ;;  %v3149_v16 = vld [vmem:[#allocation14 + $0x88] sm:$0xff] }
 0x87b   :  { %7072 = vrcp.f32 %v1989_v52  ;;  %v3147_v52 = vld [vmem:[#allocation14 + $0x78] sm:$0xff] }
 0x884   :  { %v7069_v3 = vpop.eup %7068 }
 0x885   :  { %v1998_v6 = vmul.f32 %v7069_v3, %v7065_v9  ;;  %v3150_v9 = vld [vmem:[#allocation14 + $0x90] sm:$0xff]  ;;  %v3148_v3 = vld [vmem:[#allocation14 + $0x80] sm:$0xff] }
 0x886   :  { %v7071_v20 = vpop.eup %7070 }
 0x887   :  { %v1997_v17 = vmul.f32 %v7071_v20, %v8833_v43 }
 0x888   :  { %v7073_v56 = vpop.eup %7072 }
 0x889   :  { %v1999_v23 = vadd.f32 %v1998_v6, %v1997_v17  ;;  %v2788_v6 = vpop.permute.xlu0 %2787  ;;  %v3146_v17 = vld [vmem:[#allocation14 + $0x70] sm:$0xff] }
 0x88b   :  { %7074 = vtanh.f32 %v1999_v23  ;;  %v3145_v23 = vld [vmem:[#allocation14 + $0x68] sm:$0xff] }
 0x898   :  { %v7075_v48 = vpop.eup %7074 }
 0x899   :  { %v2001_v30 = vmul.f32 %v7075_v48, %v7073_v56  ;;  %v3144_v56 = vld [vmem:[#allocation14 + $0x60] sm:$0xff]  ;;  %v2795_v48 = vpop.permute.xlu1 %2794 }
 0x89b   :  { %v2369_v31 = vrot.slane %v2001_v30, %v8097_v53  ;;  %v2362_v34 = vcombine.high %v2001_v30, %v2001_v30 }
 0x89d   :  { %v2385_v36 = vrot.slane %v2369_v31, %v8097_v53  ;;  %v2377_v40 = vcombine.high %v2369_v31, %v2369_v31  ;;  %v2376_v41 = vrot.slane %v2362_v34, %v8097_v53  ;;  %v3143_v31 = vld [vmem:[#allocation14 + $0x58] sm:$0xff]  ;;  %v3142_v34 = vld [vmem:[#allocation14 + $0x50] sm:$0xff] }
 0x89f   :  { %v2654_v44 = vrot.slane %v2385_v36, %v9792_v7  ;;  %v2407_v5 = vcombine.high %v2385_v36, %v2385_v36  ;;  %v2399_v43 = vrot.slane %v2377_v40, %v8097_v53  ;;  %v2392_v60 = vrot.slane %v2376_v41, %v8097_v53  ;;  %v3141_v36 = vld [vmem:[#allocation14 + $0x48] sm:$0xff]  ;;  %v2802_v40 = vpop.permute.xlu0 %2801 }
 0x8a0   :  { %v2378_v4 = vcombine.high %v2376_v41, %v2376_v41  ;;  %v3140_v41 = vld [vmem:[#allocation14 + $0x40] sm:$0xff] }
 0x8a1   :  { %v2746_v38 = vsel %vm2745_vm6, %v8846_v15, %v2654_v44  ;;  %v2662_v8 = vrot.slane %v2407_v5, %v9792_v7  ;;  %v2658_v2 = vrot.slane %v2399_v43, %v9792_v7  ;;  %v2409_v29 = vcombine.high %v2399_v43, %v2399_v43  ;;  %v3139_v5 = vld [vmem:[#allocation14 + $0x38] sm:$0xff]  ;;  %v3138_v43 = vld [vmem:[#allocation14 + $0x30] sm:$0xff] }
 0x8a2   :  { %v8899_v0 = vmul.f32 %v2760_v12, %v2746_v38  ;;  %v2670_v18 = vrot.slane %v2392_v60, %v9792_v7  ;;  %v2406_v59 = vrot.slane %v2378_v4, %v8097_v53  ;;  %v2408_v14 = vcombine.high %v2392_v60, %v2392_v60  ;;  %v3137_v60 = vld [vmem:[#allocation14 + $0x28] sm:$0xff]  ;;  %v2809_v12 = vpop.permute.xlu1 %2808  ;;  %v3136_v4 = vld [vmem:[#allocation14 + $0x20] sm:$0xff] }
 0x8a3   :  { %v2748_v55 = vsel %vm2745_vm6, %v8854_v35, %v2662_v8  ;;  %v2747_v21 = vsel %vm2745_vm6, %v8858_v50, %v2658_v2  ;;  %v2666_v15 = vrot.slane %v2409_v29, %v9792_v7  ;;  %v3160_v50 = vld [vmem:[#allocation14 + $0xe0] sm:$0xff]  ;;  %v3135_v8 = vld [vmem:[#allocation14 + $0x18] sm:$0xff]  ;;  %v3134_v2 = vld [vmem:[#allocation14 + $0x10] sm:$0xff] }
 0x8a4   :  { %v8910_v25 = vsel %vm2745_vm6, %v8863_v37, %v2670_v18  ;;  %v2674_v28 = vrot.slane %v2406_v59, %v9792_v7  ;;  %2927 = vmatmul.mubr.f32.vlgmr.msra.gmra.mxu0 %v8899_v0  ;;  %3084 = vmatmul.mubr.f32.vlgmr.msra.gmra.mxu1 %v8899_v0  ;;  %v2678_v35 = vrot.slane %v2408_v14, %v9792_v7  ;;  %v3133_v29 = vld [vmem:[#allocation14 + $0x8] sm:$0xff]  ;;  %v3132_v18 = vld [vmem:[#allocation14] sm:$0xff]  ;;  %v9005_v14 = vld [vmem:[%s9566_s6] sm:$0x3] }
 0x8a5   :  { %v2749_v63 = vsel %vm2745_vm6, %v8869_v45, %v2666_v15  ;;  %3177 = vmatpush1.msra.mxu0 %v3162_v22  ;;  %6910 = vmatpush1.msra.mxu1 %v3162_v22  ;;  %v2410_v37 = vcombine.high %v2406_v59, %v2406_v59  ;;  %v8922_v39 = vmul.f32 %v2767_v32, %v2747_v21  ;;  %v3159_v45 = vld [vmem:[#allocation14 + $0xd8] sm:$0xff] }
 0x8a6   :  { %v8920_v33 = vsel %vm2745_vm6, %v8873_v62, %v2674_v28  ;;  %3178 = vmatprep.subr.mxu0 %v3161_v24  ;;  %v8926_v27 = vsel %vm2745_vm6, %v8877_v54, %v2678_v35  ;;  %6895 = vmatprep.subr.mxu1 %v3161_v24  ;;  %v3158_v62 = vld [vmem:[#allocation14 + $0xd0] sm:$0xff]  ;;  %v3156_v54 = vld [vmem:[#allocation14 + $0xc0] sm:$0xff]  ;;  %v8937_v47 = vmul.f32 %v2774_v11, %v2748_v55  ;;  %v3007_v59 = vld [vmem:[%s9568_s8] sm:$0x3] }
 0x8a7   :  { %9957 = vst [vmem:[#allocation60_spill] sm:$0xff] %v8922_v39  ;;  %2932 = vmatprep.mubr.f32.mxu0 %v9943_v13  ;;  %v2682_v42 = vrot.slane %v2410_v37, %v9792_v7  ;;  %3089 = vmatprep.mubr.f32.mxu1 %v9943_v13  ;;  %v8943_v26 = vmul.f32 %v2781_v61, %v2749_v63 }
 0x8a8   :  { %3179 = vmatpush1.msra.mxu0 %v3160_v50  ;;  %6911 = vmatpush1.msra.mxu1 %v3160_v50  ;;  %9958 = vst [vmem:[#allocation58_spill] sm:$0xff] %v8937_v47  ;;  %v8950_v20 = vmul.f32 %v2788_v6, %v8910_v25  ;;  %v8957_v30 = vmul.f32 %v2795_v48, %v8920_v33 }
 0x8a9   :  { %2933 = vmatmul.mubr.f32.gmra.mxu0 %v8922_v39  ;;  %v8934_v19 = vsel %vm2745_vm6, %v8882_v58, %v2682_v42  ;;  %3090 = vmatmul.mubr.f32.gmra.mxu1 %v8922_v39  ;;  %v3154_v58 = vld [vmem:[#allocation14 + $0xb0] sm:$0xff]  ;;  %9959 = vst [vmem:[#allocation61_spill] sm:$0xff] %v8943_v26  ;;  %v8964_v44 = vmul.f32 %v2802_v40, %v8926_v27 }
 0x8aa   :  { %3180 = vmatprep.subr.mxu0 %v3159_v45  ;;  %6896 = vmatprep.subr.mxu1 %v3159_v45  ;;  %9960 = vst [vmem:[#allocation63_spill] sm:$0xff] %v8950_v20  ;;  %9961 = vst [vmem:[#allocation64_spill] sm:$0xff] %v8957_v30  ;;  %v8971_v38 = vmul.f32 %v2809_v12, %v8934_v19  ;;  %v9008_v22 = vrot.slane %v3007_v59, %v9792_v7 }
 0x8ab   :  { %3181 = vmatpush1.msra.mxu0 %v3158_v62  ;;  %6912 = vmatpush1.msra.mxu1 %v3158_v62  ;;  %9962 = vst [vmem:[#allocation62_spill] sm:$0xff] %v8964_v44  ;;  %v9011_v21 = vrot.slane %v3007_v59, %v9947_v49  ;;  %v9015_v15 = vrot.slane %v9005_v14, %v9792_v7 }
 0x8ac   :  { %3182 = vmatprep.subr.mxu0 %v3157_v10  ;;  %6897 = vmatprep.subr.mxu1 %v3157_v10  ;;  %9963 = vst [vmem:[#allocation65_spill] sm:$0xff] %v8971_v38 }
 0x8ad   :  { %2938 = vmatprep.mubr.f32.mxu0 %v9943_v13  ;;  %3095 = vmatprep.mubr.f32.mxu1 %v9943_v13 }
 0x8ae   :  { %3183 = vmatpush1.msra.mxu0 %v3156_v54  ;;  %6913 = vmatpush1.msra.mxu1 %v3156_v54 }
 0x8af   :  { %2939 = vmatmul.mubr.f32.gmra.mxu0 %v8937_v47  ;;  %3096 = vmatmul.mubr.f32.gmra.mxu1 %v8937_v47 }
 0x8b0   :  { %3184 = vmatprep.subr.mxu0 %v3155_v57  ;;  %6898 = vmatprep.subr.mxu1 %v3155_v57 }
 0x8b1   :  { %3185 = vmatpush1.msra.mxu0 %v3154_v58  ;;  %6914 = vmatpush1.msra.mxu1 %v3154_v58 }
 0x8b2   :  { %3186 = vmatprep.subr.mxu0 %v3153_v51  ;;  %6899 = vmatprep.subr.mxu1 %v3153_v51 }
 0x8b3   :  { %2944 = vmatprep.mubr.f32.mxu0 %v9943_v13  ;;  %3101 = vmatprep.mubr.f32.mxu1 %v9943_v13 }
 0x8b4   :  { %3187 = vmatpush1.msra.mxu0 %v3152_v46  ;;  %6915 = vmatpush1.msra.mxu1 %v3152_v46 }
 0x8b5   :  { %2945 = vmatmul.mubr.f32.gmra.mxu0 %v8943_v26  ;;  %3102 = vmatmul.mubr.f32.gmra.mxu1 %v8943_v26 }
 0x8b6   :  { %3188 = vmatprep.subr.mxu0 %v3151_v1  ;;  %6900 = vmatprep.subr.mxu1 %v3151_v1 }
 0x8b7   :  { %3189 = vmatpush1.msra.mxu0 %v3150_v9  ;;  %6916 = vmatpush1.msra.mxu1 %v3150_v9 }
 0x8b8   :  { %3190 = vmatprep.subr.mxu0 %v3149_v16  ;;  %6901 = vmatprep.subr.mxu1 %v3149_v16 }
 0x8b9   :  { %2950 = vmatprep.mubr.f32.mxu0 %v9943_v13  ;;  %3107 = vmatprep.mubr.f32.mxu1 %v9943_v13 }
 0x8ba   :  { %3191 = vmatpush1.msra.mxu0 %v3148_v3  ;;  %6917 = vmatpush1.msra.mxu1 %v3148_v3 }
 0x8bb   :  { %2951 = vmatmul.mubr.f32.gmra.mxu0 %v8950_v20  ;;  %3108 = vmatmul.mubr.f32.gmra.mxu1 %v8950_v20 }
 0x8bc   :  { %3192 = vmatprep.subr.mxu0 %v3147_v52  ;;  %6902 = vmatprep.subr.mxu1 %v3147_v52 }
 0x8bd   :  { %3193 = vmatpush1.msra.mxu0 %v3146_v17  ;;  %6918 = vmatpush1.msra.mxu1 %v3146_v17 }
 0x8be   :  { %3194 = vmatprep.subr.mxu0 %v3145_v23  ;;  %6903 = vmatprep.subr.mxu1 %v3145_v23 }
 0x8bf   :  { %2956 = vmatprep.mubr.f32.mxu0 %v9943_v13  ;;  %3113 = vmatprep.mubr.f32.mxu1 %v9943_v13 }
 0x8c0   :  { %3195 = vmatpush1.msra.mxu0 %v3144_v56  ;;  %6919 = vmatpush1.msra.mxu1 %v3144_v56 }
 0x8c1   :  { %2957 = vmatmul.mubr.f32.gmra.mxu0 %v8957_v30  ;;  %3114 = vmatmul.mubr.f32.gmra.mxu1 %v8957_v30 }
 0x8c2   :  { %3196 = vmatprep.subr.mxu0 %v3143_v31  ;;  %6904 = vmatprep.subr.mxu1 %v3143_v31 }
 0x8c3   :  { %3197 = vmatpush1.msra.mxu0 %v3142_v34  ;;  %6920 = vmatpush1.msra.mxu1 %v3142_v34 }
 0x8c4   :  { %3198 = vmatprep.subr.mxu0 %v3141_v36  ;;  %6905 = vmatprep.subr.mxu1 %v3141_v36 }
 0x8c5   :  { %2962 = vmatprep.mubr.f32.mxu0 %v9943_v13  ;;  %3119 = vmatprep.mubr.f32.mxu1 %v9943_v13 }
 0x8c6   :  { %3199 = vmatpush1.msra.mxu0 %v3140_v41  ;;  %6921 = vmatpush1.msra.mxu1 %v3140_v41 }
 0x8c7   :  { %2963 = vmatmul.mubr.f32.gmra.mxu0 %v8964_v44  ;;  %3120 = vmatmul.mubr.f32.gmra.mxu1 %v8964_v44 }
 0x8c8   :  { %3200 = vmatprep.subr.mxu0 %v3139_v5  ;;  %6906 = vmatprep.subr.mxu1 %v3139_v5 }
 0x8c9   :  { %3201 = vmatpush1.msra.mxu0 %v3138_v43  ;;  %6922 = vmatpush1.msra.mxu1 %v3138_v43 }
 0x8ca   :  { %3202 = vmatprep.subr.mxu0 %v3137_v60  ;;  %6907 = vmatprep.subr.mxu1 %v3137_v60 }
 0x8cb   :  { %2968 = vmatprep.mubr.f32.mxu0 %v9943_v13  ;;  %3125 = vmatprep.mubr.f32.mxu1 %v9943_v13 }
 0x8cc   :  { %3203 = vmatpush1.msra.mxu0 %v3136_v4  ;;  %6923 = vmatpush1.msra.mxu1 %v3136_v4 }
 0x8cd   :  { %2969 = vmatmul.mubr.f32.gmra.mxu0 %v8971_v38  ;;  %3126 = vmatmul.mubr.f32.gmra.mxu1 %v8971_v38 }
 0x8ce   :  { %3204 = vmatprep.subr.mxu0 %v3135_v8  ;;  %6908 = vmatprep.subr.mxu1 %v3135_v8 }
 0x8cf   :  { %3205 = vmatpush1.msra.mxu0 %v3134_v2  ;;  %6924 = vmatpush1.msra.mxu1 %v3134_v2 }
 0x8d0   :  { %3206 = vmatprep.subr.mxu0 %v3133_v29  ;;  %6909 = vmatprep.subr.mxu1 %v3133_v29 }
 0x8d1   :  { %3207 = vmatpush1.msra.mxu0 %v3132_v18  ;;  %6925 = vmatpush1.msra.mxu1 %v3132_v18 }
 0x8d2   :  { %3240 = vmatprep.mubr.f32.mxu0 %v9943_v13  ;;  %3264 = vmatprep.mubr.f32.mxu1 %v9943_v13 }
 0x8d3   :  { %3241 = vmatmul.mubr.f32.vlgmr.msra.gmra.mxu0 %v8899_v0  ;;  %3265 = vmatmul.mubr.f32.vlgmr.msra.gmra.mxu1 %v8950_v20 }
 0x8d4   :  { %3246 = vmatprep.mubr.f32.mxu0 %v9943_v13  ;;  %3270 = vmatprep.mubr.f32.mxu1 %v9943_v13 }
 0x8d5   :  { %6664 = vmatprep.subr.mxu1 %v9943_v13  ;;  %6704 = vmatprep.subr.mxu0 %v9943_v13 }
 0x8d7   :  { %3247 = vmatmul.mubr.f32.gmra.mxu0 %v8922_v39  ;;  %3271 = vmatmul.mubr.f32.gmra.mxu1 %v8957_v30 }
 0x8d8   :  { %3252 = vmatprep.mubr.f32.mxu0 %v9943_v13  ;;  %3276 = vmatprep.mubr.f32.mxu1 %v9943_v13 }
 0x8db   :  { %3253 = vmatmul.mubr.f32.gmra.mxu0 %v8937_v47  ;;  %3277 = vmatmul.mubr.f32.gmra.mxu1 %v8964_v44 }
 0x8dc   :  { %3258 = vmatprep.mubr.f32.mxu0 %v9943_v13  ;;  %3282 = vmatprep.mubr.f32.mxu1 %v9943_v13 }
 0x8df   :  { %3259 = vmatmul.mubr.f32.gmra.mxu0 %v8943_v26  ;;  %3283 = vmatmul.mubr.f32.gmra.mxu1 %v8971_v38 }
 0x8e0   :  { %6666 = vmatprep.mubr.msk.f32.mxu1 %vm7473_vm7, %v9943_v13  ;;  %6706 = vmatprep.mubr.msk.f32.mxu0 %vm7473_vm7, %v9943_v13 }
 0x964   :  { %v2928_v55 = vpop.f32.mrf.mxu0  ;;  %v3085_v24 = vpop.f32.mrf.mxu1 }
 0x965   :  { %v3086_v25 = vadd.f32 %v3085_v24, %v9008_v22  ;;  %v2929_v50 = vadd.f32 %v2928_v55, %v9015_v15 }
 0x966   :  { %v9018_v28 = vpop.f32.mrf.mxu0  ;;  %v3087_v63 = vpop.f32.mrf.mxu1 }
 0x967   :  { %v9021_v35 = vadd.f32 %v3087_v63, %v9011_v21  ;;  %6665 = vmatpush3.xpose.msra.mxu1 %v3086_v25  ;;  %v3164_v25 = vld [vmem:[%s9570_s10] sm:$0x3] }
 0x968   :  { %6669 = vmatprep.subr.mxu1 %v9943_v13 }
 0x969   :  { %v2934_v32 = vpop.f32.mrf.mxu0  ;;  %v3091_v33 = vpop.f32.mrf.mxu1 }
 0x96a   :  { %v3092_v37 = vadd.f32 %v3091_v33, %v9008_v22  ;;  %6667 = vmatmul.mubr.f32.vlgmr.msra.gmra.mxu1 %v2929_v50  ;;  %v2935_v62 = vadd.f32 %v2934_v32, %v9015_v15 }
 0x96b   :  { %v9026_v27 = vpop.f32.mrf.mxu0  ;;  %v3093_v45 = vpop.f32.mrf.mxu1  ;;  %6671 = vmatprep.mubr.msk.f32.mxu1 %vm7473_vm7, %v9943_v13 }
 0x96c   :  { %v9031_v42 = vadd.f32 %v3093_v45, %v9011_v21  ;;  %6670 = vmatpush3.xpose.msra.mxu1 %v3092_v37  ;;  %v9094_v37 = vrot.slane %v3164_v25, %v9792_v7 }
 0x96d   :  { %6674 = vmatprep.subr.mxu1 %v9943_v13 }
 0x96f   :  { %v2940_v10 = vpop.f32.mrf.mxu0  ;;  %v3097_v19 = vpop.f32.mrf.mxu1  ;;  %6672 = vmatmul.mubr.f32.vlgmr.msra.gmra.mxu1 %v2935_v62 }
 0x970   :  { %v3098_v54 = vadd.f32 %v3097_v19, %v9008_v22  ;;  %6676 = vmatprep.mubr.msk.f32.mxu1 %vm7473_vm7, %v9943_v13  ;;  %v2941_v51 = vadd.f32 %v2940_v10, %v9015_v15  ;;  %v9101_v10 = vrot.slane %v3164_v25, %v9947_v49 }
 0x971   :  { %v9036_v11 = vpop.f32.mrf.mxu0  ;;  %v3099_v57 = vpop.f32.mrf.mxu1 }
 0x972   :  { %v9041_v58 = vadd.f32 %v3099_v57, %v9011_v21  ;;  %6675 = vmatpush3.xpose.msra.mxu1 %v3098_v54 }
 0x973   :  { %6679 = vmatprep.subr.mxu1 %v9943_v13 }
 0x975   :  { %v2946_v46 = vpop.f32.mrf.mxu0  ;;  %v3103_v61 = vpop.f32.mrf.mxu1  ;;  %6677 = vmatmul.mubr.f32.vlgmr.msra.gmra.mxu1 %v2941_v51 }
 0x976   :  { %v3104_v1 = vadd.f32 %v3103_v61, %v9008_v22  ;;  %6681 = vmatprep.mubr.msk.f32.mxu1 %vm7473_vm7, %v9943_v13  ;;  %v2947_v6 = vadd.f32 %v2946_v46, %v9015_v15 }
 0x977   :  { %v9046_v9 = vpop.f32.mrf.mxu0  ;;  %v3105_v16 = vpop.f32.mrf.mxu1 }
 0x978   :  { %v9051_v3 = vadd.f32 %v3105_v16, %v9011_v21  ;;  %6680 = vmatpush3.xpose.msra.mxu1 %v3104_v1 }
 0x979   :  { %6684 = vmatprep.subr.mxu1 %v9943_v13 }
 0x97b   :  { %v2952_v52 = vpop.f32.mrf.mxu0  ;;  %v3109_v17 = vpop.f32.mrf.mxu1  ;;  %6682 = vmatmul.mubr.f32.vlgmr.msra.gmra.mxu1 %v2947_v6 }
 0x97c   :  { %v3110_v23 = vadd.f32 %v3109_v17, %v9008_v22  ;;  %6686 = vmatprep.mubr.msk.f32.mxu1 %vm7473_vm7, %v9943_v13  ;;  %v2953_v34 = vadd.f32 %v2952_v52, %v9015_v15 }
 0x97d   :  { %v9056_v56 = vpop.f32.mrf.mxu0  ;;  %v3111_v48 = vpop.f32.mrf.mxu1 }
 0x97e   :  { %v9061_v31 = vadd.f32 %v3111_v48, %v9011_v21  ;;  %6685 = vmatpush3.xpose.msra.mxu1 %v3110_v23 }
 0x97f   :  { %6689 = vmatprep.subr.mxu1 %v9943_v13 }
 0x981   :  { %v2958_v36 = vpop.f32.mrf.mxu0  ;;  %v3115_v40 = vpop.f32.mrf.mxu1  ;;  %6687 = vmatmul.mubr.f32.vlgmr.msra.gmra.mxu1 %v2953_v34 }
 0x982   :  { %v3116_v41 = vadd.f32 %v3115_v40, %v9008_v22  ;;  %6691 = vmatprep.mubr.msk.f32.mxu1 %vm7473_vm7, %v9943_v13  ;;  %v2959_v12 = vadd.f32 %v2958_v36, %v9015_v15 }
 0x983   :  { %v9066_v5 = vpop.f32.mrf.mxu0  ;;  %v3117_v43 = vpop.f32.mrf.mxu1 }
 0x984   :  { %v9071_v60 = vadd.f32 %v3117_v43, %v9011_v21  ;;  %6690 = vmatpush3.xpose.msra.mxu1 %v3116_v41 }
 0x985   :  { %6694 = vmatprep.subr.mxu1 %v9943_v13 }
 0x987   :  { %v2964_v4 = vpop.f32.mrf.mxu0  ;;  %v3121_v8 = vpop.f32.mrf.mxu1  ;;  %6692 = vmatmul.mubr.f32.vlgmr.msra.gmra.mxu1 %v2959_v12 }
 0x988   :  { %v3122_v2 = vadd.f32 %v3121_v8, %v9008_v22  ;;  %6696 = vmatprep.mubr.msk.f32.mxu1 %vm7473_vm7, %v9943_v13  ;;  %v2965_v55 = vadd.f32 %v2964_v4, %v9015_v15 }
 0x989   :  { %v9076_v29 = vpop.f32.mrf.mxu0  ;;  %v3123_v18 = vpop.f32.mrf.mxu1 }
 0x98a   :  { %v9081_v59 = vadd.f32 %v3123_v18, %v9011_v21  ;;  %6695 = vmatpush3.xpose.msra.mxu1 %v3122_v2  ;;  %v7220_v2 = vld [vmem:[#allocation6] sm:$0xff] }
 0x98b   :  { %6699 = vmatprep.subr.mxu1 %v9943_v13  ;;  %v3297_v18 = vrot.slane %v7220_v2, %v8097_v53 }
 0x98d   :  { %v2970_v24 = vpop.f32.mrf.mxu0  ;;  %v3127_v63 = vpop.f32.mrf.mxu1  ;;  %6697 = vmatmul.mubr.f32.vlgmr.msra.gmra.mxu1 %v2965_v55  ;;  %v3313_v55 = vrot.slane %v3297_v18, %v8097_v53 }
 0x98e   :  { %v3128_v50 = vadd.f32 %v3127_v63, %v9008_v22  ;;  %6701 = vmatprep.mubr.msk.f32.mxu1 %vm7473_vm7, %v9943_v13  ;;  %v2971_v62 = vadd.f32 %v2970_v24, %v9015_v15  ;;  %v3305_v24 = vcombine.high %v3297_v18, %v3297_v18  ;;  %v7474_v63 = vmov 0  }
 0x98f   :  { %v9089_v32 = vpop.f32.mrf.mxu0  ;;  %v3129_v33 = vpop.f32.mrf.mxu1  ;;  %vm3347_vm8 = vcmp.gt.f32.partialorder %v3313_v55, 0.0 }
 0x990   :  { %v9097_v45 = vadd.f32 %v3129_v33, %v9011_v21  ;;  %6700 = vmatpush3.xpose.msra.mxu1 %v3128_v50  ;;  %v3327_v25 = vrot.slane %v3305_v24, %v8097_v53  ;;  %v3923_v50 = vsel %vm3347_vm8, 1, %v7474_v63 }
 0x991   :  { %6709 = vmatprep.subr.mxu1 %v9943_v13  ;;  %v3934_v33 = vrot.slane %v3923_v50, %v9792_v7 }
 0x992   :  { %vm3348_vm9 = vcmp.gt.f32.partialorder %v3327_v25, 0.0 }
 0x993   :  { %v3242_v22 = vpop.f32.mrf.mxu0  ;;  %v3266_v54 = vpop.f32.mrf.mxu1  ;;  %6702 = vmatmul.mubr.f32.vlgmr.msra.gmra.mxu1 %v2971_v62  ;;  %v3335_v62 = vcombine.high %v3313_v55, %v3313_v55  ;;  %vm9149_vm10 = vcmp.eq.s32.totalorder %v3934_v33, 1 }
 0x994   :  { %v3243_v19 = vadd.f32 %v3242_v22, %v9094_v37  ;;  %v9106_v57 = vadd.f32 %v3266_v54, %v9094_v37  ;;  %6711 = vmatprep.mubr.msk.f32.mxu1 %vm7473_vm7, %v9943_v13 }
 0x995   :  { %v3244_v51 = vpop.f32.mrf.mxu0  ;;  %v3268_v15 = vpop.f32.mrf.mxu1  ;;  %vm3349_vm12 = vcmp.gt.f32.partialorder %v3335_v62, 0.0 }
 0x996   :  { %v9111_v21 = vadd.f32 %v3244_v51, %v9101_v10  ;;  %6705 = vmatpush3.msra.mxu0 %v3243_v19  ;;  %v9114_v46 = vadd.f32 %v3268_v15, %v9101_v10  ;;  %v3924_v19 = vsel %vm3348_vm9, 1, %v7474_v63 }
 0x997   :  { %v3248_v61 = vpop.f32.mrf.mxu0  ;;  %6714 = vmatprep.subr.mxu0 %v9943_v13  ;;  %v3272_v16 = vpop.f32.mrf.mxu1 }
 0x998   :  { %v3249_v1 = vadd.f32 %v3248_v61, %v9094_v37  ;;  %v9119_v6 = vadd.f32 %v3272_v16, %v9094_v37  ;;  %v3938_v61 = vrot.slane %v3924_v19, %v9792_v7 }
 0x999   :  { %v9121_v52 = vpop.f32.mrf.mxu0  ;;  %v3274_v17 = vpop.f32.mrf.mxu1 }
 0x99a   :  { %6710 = vmatpush3.msra.mxu1 %v3249_v1  ;;  %v9124_v23 = vadd.f32 %v3274_v17, %v9101_v10  ;;  %v3290_v1 = vcombine.high %v7220_v2, %v7220_v2  ;;  %vm9161_vm13 = vcmp.eq.s32.totalorder %v3938_v61, 1 }
 0x99b   :  { %v9126_v48 = vpop.f32.mrf.mxu0  ;;  %6719 = vmatprep.subr.mxu1 %v9943_v13  ;;  %v3278_v34 = vpop.f32.mrf.mxu1 }
 0x99c   :  { %v9130_v36 = vadd.f32 %v3278_v34, %v9094_v37  ;;  %v3337_v34 = vcombine.high %v3327_v25, %v3327_v25  ;;  %v3304_v55 = vrot.slane %v3290_v1, %v8097_v53 }
 0x99d   :  { %v3256_v40 = vpop.f32.mrf.mxu0  ;;  %v3280_v43 = vpop.f32.mrf.mxu1 }
 0x99e   :  { %v9133_v41 = vadd.f32 %v3256_v40, %v9101_v10  ;;  %v9136_v12 = vadd.f32 %v3280_v43, %v9101_v10  ;;  %v3925_v43 = vsel %vm3349_vm12, 1, %v7474_v63  ;;  %vm3350_vm14 = vcmp.gt.f32.partialorder %v3337_v34, 0.0 }
 0x99f   :  { %v3284_v4 = vpop.f32.mrf.mxu1  ;;  %v3942_v50 = vrot.slane %v3925_v43, %v9792_v7  ;;  %v3320_v62 = vrot.slane %v3304_v55, %v8097_v53  ;;  %v3926_v19 = vsel %vm3350_vm14, 1, %v7474_v63  ;;  %v3306_v61 = vcombine.high %v3304_v55, %v3304_v55 }
 0x9a0   :  { %v9139_v8 = vadd.f32 %v3284_v4, %v9094_v37  ;;  %v3946_v34 = vrot.slane %v3926_v19, %v9792_v7  ;;  %vm6280_vm12 = vcmask 1044484   ;;  %vm6284_vm14 = vcmask 1046534  }
 0x9a1   :  { %v9146_v22 = vpop.f32.mrf.mxu1  ;;  %vm9175_vm15 = vcmp.eq.s32.totalorder %v3942_v50, 1  ;;  %vm3351_vm0 = vcmp.gt.f32.partialorder %v3320_v62, 0.0 }
 0x9a2   :  { %vm9185_vm1 = vcmp.eq.s32.totalorder %v3946_v34, 1 }
 0xa2a   :  { %v3421_v54 = vpop.f32.mrf.mxu1 }
 0xa2b   :  { %v3915_v15 = vmul.f32 0.25, %v3421_v54 }
 0xa2c   :  { %v6668_v16 = vpop.f32.mrf.mxu1 }
 0xa2d   :  { %v9156_v17 = vsel %vm9149_vm10, %v3915_v15, -1e+30 }
 0xa2e   :  { %v3980_v40 = vsel %vm3979_vm11, %v9156_v17, -inf }
 0xa2f   :  { %v3491_v4 = vpop.f32.mrf.mxu1  ;;  %3981 = vmax.xlane.f32.xlu0 %v3980_v40 }
 0xa30   :  { %v3916_v2 = vmul.f32 0.25, %v3491_v4  ;;  %v3334_v4 = vrot.slane %v3306_v61, %v8097_v53 }
 0xa31   :  { %v6673_v24 = vpop.f32.mrf.mxu1 }
 0xa32   :  { %v9169_v25 = vsel %vm9161_vm13, %v3916_v2, -1e+30  ;;  %v3927_v2 = vsel %vm3351_vm0, 1, %v7474_v63  ;;  %vm3352_vm2 = vcmp.gt.f32.partialorder %v3334_v4, 0.0  ;;  %v3338_v38 = vcombine.high %v3334_v4, %v3334_v4 }
 0xa33   :  { %v3983_v33 = vsel %vm3979_vm11, %v9169_v25, -inf  ;;  %v3950_v19 = vrot.slane %v3927_v2, %v9792_v7  ;;  %v3928_v53 = vsel %vm3352_vm2, 1, %v7474_v63 }
 0xa34   :  { %3984 = vmax.xlane.f32.xlu1 %v3983_v33  ;;  %vm3354_vm6 = vcmp.gt.f32.partialorder %v3338_v38, 0.0 }
 0xa35   :  { %v3561_v54 = vpop.f32.mrf.mxu1  ;;  %vm9194_vm3 = vcmp.eq.s32.totalorder %v3950_v19, 1  ;;  %v3930_v4 = vsel %vm3354_vm6, 1, %v7474_v63 }
 0xa36   :  { %v3917_v1 = vmul.f32 0.25, %v3561_v54 }
 0xa37   :  { %v6678_v16 = vpop.f32.mrf.mxu1 }
 0xa38   :  { %v3973_v40 = vsel %vm9175_vm15, %v3917_v1, -1e+30  ;;  %v3336_v16 = vcombine.high %v3320_v62, %v3320_v62 }
 0xa39   :  { %v3986_v43 = vsel %vm3979_vm11, %v3973_v40, -inf }
 0xa3a   :  { %3987 = vmax.xlane.f32.xlu0 %v3986_v43  ;;  %vm3353_vm4 = vcmp.gt.f32.partialorder %v3336_v16, 0.0 }
 0xa3b   :  { %v3631_v24 = vpop.f32.mrf.mxu1  ;;  %v3929_v62 = vsel %vm3353_vm4, 1, %v7474_v63 }
 0xa3c   :  { %v3918_v55 = vmul.f32 0.25, %v3631_v24 }
 0xa3d   :  { %v6683_v33 = vpop.f32.mrf.mxu1 }
 0xa3e   :  { %v3974_v54 = vsel %vm9185_vm1, %v3918_v55, -1e+30  ;;  %v3954_v33 = vrot.slane %v3928_v53, %v9792_v7 }
 0xa3f   :  { %v3989_v1 = vsel %vm3979_vm11, %v3974_v54, -inf }
 0xa40   :  { %3990 = vmax.xlane.f32.xlu0 %v3989_v1  ;;  %vm9203_vm5 = vcmp.eq.s32.totalorder %v3954_v33, 1 }
 0xa41   :  { %v3701_v61 = vpop.f32.mrf.mxu1 }
 0xa42   :  { %v3919_v43 = vmul.f32 0.25, %v3701_v61 }
 0xa43   :  { %v6688_v24 = vpop.f32.mrf.mxu1 }
 0xa44   :  { %v3975_v2 = vsel %vm9194_vm3, %v3919_v43, -1e+30  ;;  %v3958_v24 = vrot.slane %v3929_v62, %v9792_v7 }
 0xa45   :  { %v3992_v55 = vsel %vm3979_vm11, %v3975_v2, -inf }
 0xa46   :  { %3993 = vmax.xlane.f32.xlu1 %v3992_v55  ;;  %vm9212_vm8 = vcmp.eq.s32.totalorder %v3958_v24, 1 }
 0xa47   :  { %v3771_v1 = vpop.f32.mrf.mxu1 }
 0xa48   :  { %v3920_v44 = vmul.f32 0.25, %v3771_v1  ;;  %v3962_v1 = vrot.slane %v3930_v4, %v9792_v7 }
 0xa49   :  { %v6693_v61 = vpop.f32.mrf.mxu1 }
 0xa4a   :  { %v3976_v16 = vsel %vm9203_vm5, %v3920_v44, -1e+30  ;;  %vm9220_vm9 = vcmp.eq.s32.totalorder %v3962_v1, 1 }
 0xa4b   :  { %v3995_v53 = vsel %vm3979_vm11, %v3976_v16, -inf }
 0xa4c   :  { %3996 = vmax.xlane.f32.xlu0 %v3995_v53 }
 0xa4d   :  { %v3841_v43 = vpop.f32.mrf.mxu1 }
 0xa4e   :  { %v3921_v33 = vmul.f32 0.25, %v3841_v43 }
 0xa4f   :  { %v6698_v30 = vpop.f32.mrf.mxu1 }
 0xa50   :  { %v3977_v38 = vsel %vm9212_vm8, %v3921_v33, -1e+30 }
 0xa51   :  { %v3998_v62 = vsel %vm3979_vm11, %v3977_v38, -inf }
 0xa52   :  { %3999 = vmax.xlane.f32.xlu1 %v3998_v62 }
 0xa53   :  { %v3911_v44 = vpop.f32.mrf.mxu1 }
 0xa54   :  { %v3922_v63 = vmul.f32 0.25, %v3911_v44 }
 0xa55   :  { %v6703_v24 = vpop.f32.mrf.mxu1 }
 0xa56   :  { %v3978_v53 = vsel %vm9220_vm9, %v3922_v63, -1e+30 }
 0xa57   :  { %v4001_v30 = vsel %vm3979_vm11, %v3978_v53, -inf }
 0xa58   :  { %4002 = vmax.xlane.f32.xlu0 %v4001_v30 }
 0xab8   :  { %v3982_v7 = vpop.xlane.xlu0 %3981 }
 0xab9   :  { %v4004_v4 = vsub.f32 %v9156_v17, %v3982_v7 }
 0xabb   :  { %v4012_v43 = vmul.f32 1.442695, %v4004_v4 }
 0xabd   :  { %7076 = vpow2.f32 %v4012_v43  ;;  %v3985_v33 = vpop.xlane.xlu1 %3984 }
 0xabe   :  { %v4005_v62 = vsub.f32 %v9169_v25, %v3985_v33 }
 0xac0   :  { %v4014_v1 = vmul.f32 1.442695, %v4005_v62 }
 0xac2   :  { %7078 = vpow2.f32 %v4014_v1 }
 0xac3   :  { %v3988_v26 = vpop.xlane.xlu0 %3987 }
 0xac4   :  { %v4006_v20 = vsub.f32 %v3973_v40, %v3988_v26 }
 0xac6   :  { %v4016_v44 = vmul.f32 1.442695, %v4006_v20 }
 0xac8   :  { %7080 = vpow2.f32 %v4016_v44 }
 0xac9   :  { %v3991_v24 = vpop.xlane.xlu0 %3990 }
 0xaca   :  { %v7077_v47 = vpop.eup %7076  ;;  %v4007_v63 = vsub.f32 %v3974_v54, %v3991_v24 }
 0xacb   :  { %v4028_v39 = vsel %vm3979_vm11, %v7077_v47, 0.0 }
 0xacc   :  { %v4018_v30 = vmul.f32 1.442695, %v4007_v63  ;;  %4029 = vadd.xlane.f32.xlu1 %v4028_v39 }
 0xace   :  { %7082 = vpow2.f32 %v4018_v30 }
 0xacf   :  { %v7079_v17 = vpop.eup %7078  ;;  %v3994_v7 = vpop.xlane.xlu1 %3993 }
 0xad0   :  { %v4008_v4 = vsub.f32 %v3975_v2, %v3994_v7  ;;  %v4031_v43 = vsel %vm3979_vm11, %v7079_v17, 0.0 }
 0xad1   :  { %4032 = vadd.xlane.f32.xlu0 %v4031_v43 }
 0xad2   :  { %v4020_v25 = vmul.f32 1.442695, %v4008_v4 }
 0xad4   :  { %7084 = vpow2.f32 %v4020_v25 }
 0xad5   :  { %v7081_v33 = vpop.eup %7080  ;;  %v3997_v26 = vpop.xlane.xlu0 %3996 }
 0xad6   :  { %v4009_v20 = vsub.f32 %v3976_v16, %v3997_v26  ;;  %v4034_v40 = vsel %vm3979_vm11, %v7081_v33, 0.0 }
 0xad7   :  { %4035 = vadd.xlane.f32.xlu1 %v4034_v40 }
 0xad8   :  { %v4022_v54 = vmul.f32 1.442695, %v4009_v20 }
 0xada   :  { %7086 = vpow2.f32 %v4022_v54 }
 0xadb   :  { %v7083_v62 = vpop.eup %7082  ;;  %v4000_v1 = vpop.xlane.xlu1 %3999 }
 0xadc   :  { %v4010_v39 = vsub.f32 %v3977_v38, %v4000_v1  ;;  %v4037_v44 = vsel %vm3979_vm11, %v7083_v62, 0.0 }
 0xadd   :  { %4038 = vadd.xlane.f32.xlu0 %v4037_v44  ;;  %v3255_v44 = vadd.f32 %v9126_v48, %v9094_v37 }
 0xade   :  { %v4024_v2 = vmul.f32 1.442695, %v4010_v39 }
 0xae0   :  { %7088 = vpow2.f32 %v4024_v2 }
 0xae1   :  { %v7085_v24 = vpop.eup %7084  ;;  %v4003_v63 = vpop.xlane.xlu0 %4002 }
 0xae2   :  { %v4011_v30 = vsub.f32 %v3978_v53, %v4003_v63  ;;  %v4040_v7 = vsel %vm3979_vm11, %v7085_v24, 0.0  ;;  %v3260_v63 = vpop.f32.mrf.mxu0 }
 0xae3   :  { %4041 = vadd.xlane.f32.xlu1 %v4040_v7 }
 0xae4   :  { %v4026_v16 = vmul.f32 1.442695, %v4011_v30 }
 0xae6   :  { %7090 = vpow2.f32 %v4026_v16  ;;  %v3261_v16 = vadd.f32 %v3260_v63, %v9094_v37 }
 0xae7   :  { %v7087_v4 = vpop.eup %7086 }
 0xae8   :  { %v4043_v43 = vsel %vm3979_vm11, %v7087_v4, 0.0 }
 0xae9   :  { %4044 = vadd.xlane.f32.xlu0 %v4043_v43 }
 0xaed   :  { %v9235_v25 = vpop.eup %7088 }
 0xaee   :  { %v4046_v38 = vsel %vm3979_vm11, %v9235_v25, 0.0 }
 0xaef   :  { %4047 = vadd.xlane.f32.xlu1 %v4046_v38 }
 0xaf3   :  { %v9239_v26 = vpop.eup %7090 }
 0xaf4   :  { %v4049_v53 = vsel %vm3979_vm11, %v9239_v26, 0.0 }
 0xaf5   :  { %4050 = vadd.xlane.f32.xlu0 %v4049_v53 }
 0xb55   :  { %v4030_v20 = vpop.xlane.xlu1 %4029 }
 0xb56   :  { %7092 = vrcp.f32 %v4030_v20 }
 0xb5a   :  { %v4033_v40 = vpop.xlane.xlu0 %4032 }
 0xb5b   :  { %7094 = vrcp.f32 %v4033_v40 }
 0xb60   :  { %v4036_v54 = vpop.xlane.xlu1 %4035 }
 0xb61   :  { %7096 = vrcp.f32 %v4036_v54 }
 0xb63   :  { %v7093_v1 = vpop.eup %7092 }
 0xb64   :  { %v4053_v39 = vmul.f32 %v7093_v1, %v7077_v47 }
 0xb66   :  { %v4039_v2 = vpop.xlane.xlu0 %4038  ;;  %6707 = vmatmul.mubr.msk.f32.vlgmr.msra.gmra.mxu0 %vm3979_vm11, %v4053_v39 }
 0xb67   :  { %7098 = vrcp.f32 %v4039_v2  ;;  %6715 = vmatpush3.msra.mxu0 %v3255_v44  ;;  %6716 = vmatprep.mubr.msk.f32.mxu0 %vm7473_vm7, %v9943_v13 }
 0xb68   :  { %v7095_v30 = vpop.eup %7094  ;;  %6724 = vmatprep.subr.mxu0 %v9943_v13 }
 0xb69   :  { %v4055_v7 = vmul.f32 %v7095_v30, %v7079_v17 }
 0xb6b   :  { %6712 = vmatmul.mubr.msk.f32.vlgmr.msra.gmra.mxu1 %vm3979_vm11, %v4055_v7 }
 0xb6c   :  { %v4042_v47 = vpop.xlane.xlu1 %4041  ;;  %6720 = vmatpush3.msra.mxu1 %v3261_v16  ;;  %6721 = vmatprep.mubr.msk.f32.mxu1 %vm7473_vm7, %v9943_v13 }
 0xb6d   :  { %7100 = vrcp.f32 %v4042_v47  ;;  %6729 = vmatprep.subr.mxu1 %v9943_v13 }
 0xb6e   :  { %v7097_v48 = vpop.eup %7096 }
 0xb6f   :  { %v4057_v43 = vmul.f32 %v7097_v48, %v7081_v33 }
 0xb71   :  { %6717 = vmatmul.mubr.msk.f32.vlgmr.msra.gmra.mxu0 %vm3979_vm11, %v4057_v43 }
 0xb72   :  { %v4045_v38 = vpop.xlane.xlu0 %4044  ;;  %6725 = vmatpush3.msra.mxu0 %v9106_v57  ;;  %6726 = vmatprep.mubr.msk.f32.mxu0 %vm7473_vm7, %v9943_v13 }
 0xb73   :  { %7102 = vrcp.f32 %v4045_v38  ;;  %6734 = vmatprep.subr.mxu0 %v9943_v13 }
 0xb74   :  { %v7099_v37 = vpop.eup %7098 }
 0xb75   :  { %v4059_v17 = vmul.f32 %v7099_v37, %v7083_v62 }
 0xb77   :  { %6722 = vmatmul.mubr.msk.f32.vlgmr.msra.gmra.mxu1 %vm3979_vm11, %v4059_v17 }
 0xb78   :  { %v4048_v53 = vpop.xlane.xlu1 %4047  ;;  %6730 = vmatpush3.msra.mxu1 %v9119_v6  ;;  %6731 = vmatprep.mubr.msk.f32.mxu1 %vm7473_vm7, %v9943_v13 }
 0xb79   :  { %7104 = vrcp.f32 %v4048_v53  ;;  %6739 = vmatprep.subr.mxu1 %v9943_v13 }
 0xb7a   :  { %v7101_v57 = vpop.eup %7100 }
 0xb7b   :  { %v4061_v33 = vmul.f32 %v7101_v57, %v7085_v24 }
 0xb7d   :  { %6727 = vmatmul.mubr.msk.f32.vlgmr.msra.gmra.mxu0 %vm3979_vm11, %v4061_v33 }
 0xb7e   :  { %v4051_v20 = vpop.xlane.xlu0 %4050  ;;  %6735 = vmatpush3.msra.mxu0 %v9130_v36  ;;  %6736 = vmatprep.mubr.msk.f32.mxu0 %vm7473_vm7, %v9943_v13  ;;  %v2859_v36 = vrot.slane %v9005_v14, %v9947_v49 }
 0xb7f   :  { %7106 = vrcp.f32 %v4051_v20  ;;  %6744 = vmatprep.subr.mxu0 %v9943_v13 }
 0xb80   :  { %v7103_v6 = vpop.eup %7102  ;;  %v2943_v49 = vadd.f32 %v9036_v11, %v2859_v36  ;;  %v2937_v14 = vadd.f32 %v9026_v27, %v2859_v36  ;;  %v2967_v27 = vadd.f32 %v9076_v29, %v2859_v36  ;;  %v2973_v11 = vadd.f32 %v9089_v32, %v2859_v36 }
 0xb81   :  { %v4063_v62 = vmul.f32 %v7103_v6, %v7087_v4 }
 0xb83   :  { %6732 = vmatmul.mubr.msk.f32.vlgmr.msra.gmra.mxu1 %vm3979_vm11, %v4063_v62 }
 0xb84   :  { %6740 = vmatpush3.msra.mxu1 %v9139_v8  ;;  %6741 = vmatprep.mubr.msk.f32.mxu1 %vm7473_vm7, %v9943_v13  ;;  %v2931_v8 = vadd.f32 %v9018_v28, %v2859_v36  ;;  %v2955_v28 = vadd.f32 %v9056_v56, %v2859_v36 }
 0xb85   :  { %6749 = vmatprep.subr.mxu1 %v9943_v13 }
 0xb86   :  { %v7105_v24 = vpop.eup %7104 }
 0xb87   :  { %v4065_v40 = vmul.f32 %v7105_v24, %v9235_v25 }
 0xb89   :  { %6737 = vmatmul.mubr.msk.f32.vlgmr.msra.gmra.mxu0 %vm3979_vm11, %v4065_v40 }
 0xb8a   :  { %6745 = vmatpush3.xpose.msra.mxu0 %v9021_v35  ;;  %6746 = vmatprep.mubr.msk.f32.mxu0 %vm7473_vm7, %v9943_v13  ;;  %v2949_v35 = vadd.f32 %v9046_v9, %v2859_v36  ;;  %v9329_v9 = vpop.f32.mrf.mxu0 }
 0xb8b   :  { %6754 = vmatprep.subr.mxu0 %v9943_v13 }
 0xb8c   :  { %v7107_v4 = vpop.eup %7106 }
 0xb8d   :  { %v4067_v54 = vmul.f32 %v7107_v4, %v9239_v26  ;;  %6747 = vmatmul.mubr.f32.vlgmr.msra.gmra.mxu0 %v2931_v8 }
 0xb8e   :  { %6755 = vmatpush3.xpose.msra.mxu0 %v9041_v58  ;;  %6756 = vmatprep.mubr.msk.f32.mxu0 %vm7473_vm7, %v9943_v13  ;;  %v3251_v58 = vadd.f32 %v9121_v52, %v9101_v10 }
 0xb8f   :  { %6742 = vmatmul.mubr.msk.f32.vlgmr.msra.gmra.mxu1 %vm3979_vm11, %v4067_v54  ;;  %6764 = vmatprep.subr.mxu0 %v9943_v13 }
 0xb90   :  { %6750 = vmatpush3.xpose.msra.mxu1 %v9031_v42  ;;  %6751 = vmatprep.mubr.msk.f32.mxu1 %vm7473_vm7, %v9943_v13  ;;  %v2961_v42 = vadd.f32 %v9066_v5, %v2859_v36 }
 0xb91   :  { %6759 = vmatprep.subr.mxu1 %v9943_v13  ;;  %6757 = vmatmul.mubr.f32.vlgmr.msra.gmra.mxu0 %v2943_v49 }
 0xb92   :  { %6765 = vmatpush3.xpose.msra.mxu0 %v9061_v31  ;;  %6766 = vmatprep.mubr.msk.f32.mxu0 %vm7473_vm7, %v9943_v13 }
 0xb93   :  { %6752 = vmatmul.mubr.f32.vlgmr.msra.gmra.mxu1 %v2937_v14  ;;  %6774 = vmatprep.subr.mxu0 %v9943_v13 }
 0xb94   :  { %6760 = vmatpush3.xpose.msra.mxu1 %v9051_v3  ;;  %6761 = vmatprep.mubr.msk.f32.mxu1 %vm7473_vm7, %v9943_v13 }
 0xb95   :  { %6769 = vmatprep.subr.mxu1 %v9943_v13  ;;  %6767 = vmatmul.mubr.f32.vlgmr.msra.gmra.mxu0 %v2955_v28 }
 0xb96   :  { %6775 = vmatpush3.xpose.msra.mxu0 %v9081_v59  ;;  %6776 = vmatprep.mubr.msk.f32.mxu0 %vm7473_vm7, %v9943_v13 }
 0xb97   :  { %6762 = vmatmul.mubr.f32.vlgmr.msra.gmra.mxu1 %v2949_v35  ;;  %6784 = vmatprep.subr.mxu0 %v9943_v13 }
 0xb98   :  { %6770 = vmatpush3.xpose.msra.mxu1 %v9071_v60  ;;  %6771 = vmatprep.mubr.msk.f32.mxu1 %vm7473_vm7, %v9943_v13 }
 0xb99   :  { %6779 = vmatprep.subr.mxu1 %v9943_v13  ;;  %6777 = vmatmul.mubr.f32.vlgmr.msra.gmra.mxu0 %v2967_v27 }
 0xb9a   :  { %6785 = vmatpush3.msra.mxu0 %v9111_v21  ;;  %6786 = vmatprep.mubr.msk.f32.mxu0 %vm7473_vm7, %v9943_v13 }
 0xb9b   :  { %6772 = vmatmul.mubr.f32.vlgmr.msra.gmra.mxu1 %v2961_v42  ;;  %6794 = vmatprep.subr.mxu0 %v9943_v13 }
 0xb9c   :  { %6780 = vmatpush3.xpose.msra.mxu1 %v9097_v45  ;;  %6781 = vmatprep.mubr.msk.f32.mxu1 %vm7473_vm7, %v9943_v13 }
 0xb9d   :  { %6789 = vmatprep.subr.mxu1 %v9943_v13 }
 0xb9f   :  { %6782 = vmatmul.mubr.f32.vlgmr.msra.gmra.mxu1 %v2973_v11 }
 0xba0   :  { %6790 = vmatpush3.msra.mxu1 %v3251_v58  ;;  %6791 = vmatprep.mubr.msk.f32.mxu1 %vm7473_vm7, %v9943_v13 }
 0xba1   :  { %6799 = vmatprep.subr.mxu1 %v9943_v13 }
 0xc26   :  { %v9331_v3 = vpop.f32.mrf.mxu0 }
 0xc28   :  { %v6708_v56 = vpop.f32.mrf.mxu0 }
 0xc2b   :  { %v9333_v31 = vpop.f32.mrf.mxu1 }
 0xc2d   :  { %v6713_v5 = vpop.f32.mrf.mxu1 }
 0xc31   :  { %v9335_v60 = vpop.f32.mrf.mxu0 }
 0xc33   :  { %v6718_v29 = vpop.f32.mrf.mxu0 }
 0xc37   :  { %v9337_v59 = vpop.f32.mrf.mxu1 }
 0xc39   :  { %v6723_v32 = vpop.f32.mrf.mxu1 }
 0xc3d   :  { %v9339_v45 = vpop.f32.mrf.mxu0 }
 0xc3f   :  { %v6728_v21 = vpop.f32.mrf.mxu0 }
 0xc43   :  { %v9341_v52 = vpop.f32.mrf.mxu1 }
 0xc45   :  { %v6733_v25 = vpop.f32.mrf.mxu1 }
 0xc49   :  { %v9343_v26 = vpop.f32.mrf.mxu0 }
 0xc4b   :  { %v6738_v1 = vpop.f32.mrf.mxu0 }
 0xc4d   :  { %v4718_v39 = vpop.f32.mrf.mxu0 }
 0xc4e   :  { %v5212_v44 = vmul.f32 0.25, %v4718_v39 }
 0xc4f   :  { %v9345_v2 = vpop.f32.mrf.mxu1  ;;  %v6748_v63 = vpop.f32.mrf.mxu0 }
 0xc50   :  { %v5220_v30 = vsel %vm9149_vm10, %v5212_v44, -1e+30  ;;  %vm6276_vm10 = vcmask 1042434  }
 0xc51   :  { %v6743_v7 = vpop.f32.mrf.mxu1  ;;  %v4858_v16 = vpop.f32.mrf.mxu0  ;;  %v5228_v47 = vsel %vm3979_vm11, %v5220_v30, -inf }
 0xc52   :  { %v5214_v48 = vmul.f32 0.25, %v4858_v16  ;;  %5229 = vmax.xlane.f32.xlu1 %v5228_v47 }
 0xc53   :  { %v4788_v43 = vpop.f32.mrf.mxu1  ;;  %v6758_v38 = vpop.f32.mrf.mxu0 }
 0xc54   :  { %v5213_v37 = vmul.f32 0.25, %v4788_v43  ;;  %v5222_v17 = vsel %vm9175_vm15, %v5214_v48, -1e+30  ;;  %vm6286_vm15 = vcmask 1047559  }
 0xc55   :  { %v6753_v53 = vpop.f32.mrf.mxu1  ;;  %v4998_v57 = vpop.f32.mrf.mxu0  ;;  %v5234_v33 = vsel %vm3979_vm11, %v5222_v17, -inf }
 0xc56   :  { %v5216_v20 = vmul.f32 0.25, %v4998_v57  ;;  %5235 = vmax.xlane.f32.xlu1 %v5234_v33  ;;  %v5221_v51 = vsel %vm9161_vm13, %v5213_v37, -1e+30  ;;  %vm6282_vm13 = vcmask 1045509  }
 0xc57   :  { %v4928_v6 = vpop.f32.mrf.mxu1  ;;  %v5231_v62 = vsel %vm3979_vm11, %v5221_v51, -inf  ;;  %v6768_v24 = vpop.f32.mrf.mxu0 }
 0xc58   :  { %v5215_v36 = vmul.f32 0.25, %v4928_v6  ;;  %5232 = vmax.xlane.f32.xlu0 %v5231_v62  ;;  %v5224_v40 = vsel %vm9194_vm3, %v5216_v20, -1e+30 }
 0xc59   :  { %v6763_v15 = vpop.f32.mrf.mxu1  ;;  %v5138_v8 = vpop.f32.mrf.mxu0  ;;  %v5240_v4 = vsel %vm3979_vm11, %v5224_v40, -inf }
 0xc5a   :  { %v5218_v54 = vmul.f32 0.25, %v5138_v8  ;;  %5241 = vmax.xlane.f32.xlu1 %v5240_v4  ;;  %v5223_v49 = vsel %vm9185_vm1, %v5215_v36, -1e+30 }
 0xc5b   :  { %v5068_v18 = vpop.f32.mrf.mxu1  ;;  %v5237_v14 = vsel %vm3979_vm11, %v5223_v49, -inf  ;;  %v6778_v28 = vpop.f32.mrf.mxu0 }
 0xc5c   :  { %v5217_v35 = vmul.f32 0.25, %v5068_v18  ;;  %5238 = vmax.xlane.f32.xlu0 %v5237_v14  ;;  %v5226_v27 = vsel %vm9212_vm8, %v5218_v54, -1e+30 }
 0xc5d   :  { %v6773_v34 = vpop.f32.mrf.mxu1  ;;  %v5246_v42 = vsel %vm3979_vm11, %v5226_v27, -inf }
 0xc5e   :  { %5247 = vmax.xlane.f32.xlu1 %v5246_v42  ;;  %v5225_v11 = vsel %vm9203_vm5, %v5217_v35, -1e+30 }
 0xc5f   :  { %v5208_v58 = vpop.f32.mrf.mxu1  ;;  %v5243_v50 = vsel %vm3979_vm11, %v5225_v11, -inf }
 0xc60   :  { %v5219_v56 = vmul.f32 0.25, %v5208_v58  ;;  %5244 = vmax.xlane.f32.xlu0 %v5243_v50 }
 0xc61   :  { %v6783_v5 = vpop.f32.mrf.mxu1 }
 0xc62   :  { %v5227_v29 = vsel %vm9220_vm9, %v5219_v56, -1e+30 }
 0xc63   :  { %v5249_v32 = vsel %vm3979_vm11, %v5227_v29, -inf }
 0xc64   :  { %5250 = vmax.xlane.f32.xlu0 %v5249_v32 }
 0xcdb   :  { %v5230_v55 = vpop.xlane.xlu1 %5229 }
 0xcdc   :  { %v5252_v21 = vsub.f32 %v5220_v30, %v5230_v55 }
 0xcde   :  { %v5260_v25 = vmul.f32 1.442695, %v5252_v21 }
 0xcdf   :  { %v5236_v1 = vpop.xlane.xlu1 %5235 }
 0xce0   :  { %7108 = vpow2.f32 %v5260_v25  ;;  %v5254_v39 = vsub.f32 %v5222_v17, %v5236_v1 }
 0xce1   :  { %v5233_v19 = vpop.xlane.xlu0 %5232 }
 0xce2   :  { %v5264_v44 = vmul.f32 1.442695, %v5254_v39  ;;  %v5253_v63 = vsub.f32 %v5221_v51, %v5233_v19 }
 0xce3   :  { %v5242_v7 = vpop.xlane.xlu1 %5241 }
 0xce4   :  { %7110 = vpow2.f32 %v5264_v44  ;;  %v5262_v16 = vmul.f32 1.442695, %v5253_v63  ;;  %v5256_v47 = vsub.f32 %v5224_v40, %v5242_v7  ;;  %v3263_v7 = vadd.f32 %v9329_v9, %v9101_v10 }
 0xce5   :  { %v5239_v48 = vpop.xlane.xlu0 %5238 }
 0xce6   :  { %7112 = vpow2.f32 %v5262_v16  ;;  %v5268_v61 = vmul.f32 1.442695, %v5256_v47  ;;  %v5255_v43 = vsub.f32 %v5223_v49, %v5239_v48  ;;  %v5931_v47 = vld [vmem:[#allocation15 + $0xf8] sm:$0xff] }
 0xce7   :  { %v5248_v38 = vpop.xlane.xlu1 %5247 }
 0xce8   :  { %7114 = vpow2.f32 %v5268_v61  ;;  %v5266_v37 = vmul.f32 1.442695, %v5255_v43  ;;  %v5258_v53 = vsub.f32 %v5226_v27, %v5248_v38  ;;  %v5915_v61 = vld [vmem:[#allocation15 + $0x78] sm:$0xff]  ;;  %v5930_v38 = vld [vmem:[#allocation15 + $0xf0] sm:$0xff] }
 0xce9   :  { %v5245_v30 = vpop.xlane.xlu0 %5244 }
 0xcea   :  { %7116 = vpow2.f32 %v5266_v37  ;;  %v5272_v57 = vmul.f32 1.442695, %v5258_v53  ;;  %v5257_v33 = vsub.f32 %v5225_v11, %v5245_v30  ;;  %v5914_v53 = vld [vmem:[#allocation15 + $0x70] sm:$0xff]  ;;  %v5929_v30 = vld [vmem:[#allocation15 + $0xe8] sm:$0xff] }
 0xcec   :  { %7118 = vpow2.f32 %v5272_v57  ;;  %v5270_v17 = vmul.f32 1.442695, %v5257_v33 }
 0xced   :  { %v7109_v20 = vpop.eup %7108  ;;  %v5251_v51 = vpop.xlane.xlu0 %5250 }
 0xcee   :  { %7120 = vpow2.f32 %v5270_v17  ;;  %v5259_v6 = vsub.f32 %v5227_v29, %v5251_v51  ;;  %v5276_v62 = vsel %vm3979_vm11, %v7109_v20, 0.0  ;;  %v5928_v17 = vld [vmem:[#allocation15 + $0xe0] sm:$0xff]  ;;  %v5926_v51 = vld [vmem:[#allocation15 + $0xd0] sm:$0xff] }
 0xcef   :  { %5277 = vadd.xlane.f32.xlu1 %v5276_v62  ;;  %v5925_v62 = vld [vmem:[#allocation15 + $0xc8] sm:$0xff] }
 0xcf0   :  { %v5274_v24 = vmul.f32 1.442695, %v5259_v6  ;;  %v5910_v6 = vld [vmem:[#allocation15 + $0x50] sm:$0xff] }
 0xcf1   :  { %v7111_v36 = vpop.eup %7110 }
 0xcf2   :  { %7122 = vpow2.f32 %v5274_v24  ;;  %v5282_v40 = vsel %vm3979_vm11, %v7111_v36, 0.0  ;;  %v5909_v24 = vld [vmem:[#allocation15 + $0x48] sm:$0xff] }
 0xcf3   :  { %v7113_v15 = vpop.eup %7112  ;;  %5283 = vadd.xlane.f32.xlu1 %v5282_v40  ;;  %v5908_v40 = vld [vmem:[#allocation15 + $0x40] sm:$0xff] }
 0xcf4   :  { %v5279_v8 = vsel %vm3979_vm11, %v7113_v15, 0.0 }
 0xcf5   :  { %v7115_v4 = vpop.eup %7114  ;;  %5280 = vadd.xlane.f32.xlu0 %v5279_v8  ;;  %v5907_v8 = vld [vmem:[#allocation15 + $0x38] sm:$0xff] }
 0xcf6   :  { %v5288_v54 = vsel %vm3979_vm11, %v7115_v4, 0.0 }
 0xcf7   :  { %v7117_v49 = vpop.eup %7116  ;;  %5289 = vadd.xlane.f32.xlu1 %v5288_v54  ;;  %v5906_v54 = vld [vmem:[#allocation15 + $0x30] sm:$0xff] }
 0xcf8   :  { %v5285_v18 = vsel %vm3979_vm11, %v7117_v49, 0.0 }
 0xcf9   :  { %v7119_v14 = vpop.eup %7118  ;;  %5286 = vadd.xlane.f32.xlu0 %v5285_v18  ;;  %v5905_v18 = vld [vmem:[#allocation15 + $0x28] sm:$0xff] }
 0xcfa   :  { %v5294_v28 = vsel %vm3979_vm11, %v7119_v14, 0.0 }
 0xcfb   :  { %v7121_v35 = vpop.eup %7120  ;;  %5295 = vadd.xlane.f32.xlu1 %v5294_v28  ;;  %v5904_v28 = vld [vmem:[#allocation15 + $0x20] sm:$0xff] }
 0xcfc   :  { %v5291_v27 = vsel %vm3979_vm11, %v7121_v35, 0.0 }
 0xcfd   :  { %5292 = vadd.xlane.f32.xlu0 %v5291_v27  ;;  %v5903_v27 = vld [vmem:[#allocation15 + $0x18] sm:$0xff] }
 0xcff   :  { %v9378_v34 = vpop.eup %7122 }
 0xd00   :  { %v5297_v42 = vsel %vm3979_vm11, %v9378_v34, 0.0 }
 0xd01   :  { %5298 = vadd.xlane.f32.xlu0 %v5297_v42  ;;  %v5902_v42 = vld [vmem:[#allocation15 + $0x10] sm:$0xff] }
 0xd78   :  { %v5278_v11 = vpop.xlane.xlu1 %5277 }
 0xd79   :  { %7124 = vrcp.f32 %v5278_v11  ;;  %v5917_v11 = vld [vmem:[#allocation15 + $0x88] sm:$0xff] }
 0xd7c   :  { %v5284_v58 = vpop.xlane.xlu1 %5283 }
 0xd7d   :  { %7126 = vrcp.f32 %v5284_v58  ;;  %v5901_v58 = vld [vmem:[#allocation15 + $0x8] sm:$0xff] }
 0xd7e   :  { %v5281_v50 = vpop.xlane.xlu0 %5280 }
 0xd7f   :  { %7128 = vrcp.f32 %v5281_v50  ;;  %v5916_v50 = vld [vmem:[#allocation15 + $0x80] sm:$0xff] }
 0xd80   :  { %v5290_v56 = vpop.xlane.xlu1 %5289 }
 0xd81   :  { %7130 = vrcp.f32 %v5290_v56  ;;  %v5900_v56 = vld [vmem:[#allocation15] sm:$0xff] }
 0xd82   :  { %v5287_v5 = vpop.xlane.xlu0 %5286 }
 0xd83   :  { %7132 = vrcp.f32 %v5287_v5 }
 0xd84   :  { %v5296_v29 = vpop.xlane.xlu1 %5295 }
 0xd85   :  { %7134 = vrcp.f32 %v5296_v29 }
 0xd86   :  { %v7125_v32 = vpop.eup %7124  ;;  %v5293_v55 = vpop.xlane.xlu0 %5292 }
 0xd87   :  { %7136 = vrcp.f32 %v5293_v55  ;;  %v5301_v21 = vmul.f32 %v7125_v32, %v7109_v20  ;;  %v5911_v20 = vld [vmem:[#allocation15 + $0x58] sm:$0xff] }
 0xd89   :  { %6787 = vmatmul.mubr.msk.f32.vlgmr.msra.gmra.mxu0 %vm3979_vm11, %v5301_v21 }
 0xd8a   :  { %v7127_v25 = vpop.eup %7126  ;;  %v5299_v1 = vpop.xlane.xlu0 %5298  ;;  %6795 = vmatpush3.msra.mxu0 %v9133_v41  ;;  %6796 = vmatprep.mubr.msk.f32.mxu0 %vm7473_vm7, %v9943_v13 }
 0xd8b   :  { %7138 = vrcp.f32 %v5299_v1  ;;  %6804 = vmatprep.subr.mxu0 %v9943_v13  ;;  %v5305_v39 = vmul.f32 %v7127_v25, %v7111_v36  ;;  %v5924_v36 = vld [vmem:[#allocation15 + $0xc0] sm:$0xff] }
 0xd8c   :  { %v7129_v19 = vpop.eup %7128 }
 0xd8d   :  { %v5303_v44 = vmul.f32 %v7129_v19, %v7113_v15  ;;  %6797 = vmatmul.mubr.msk.f32.vlgmr.msra.gmra.mxu0 %vm3979_vm11, %v5305_v39  ;;  %v5923_v15 = vld [vmem:[#allocation15 + $0xb8] sm:$0xff] }
 0xd8e   :  { %v7131_v63 = vpop.eup %7130  ;;  %6805 = vmatpush3.msra.mxu0 %v9114_v46  ;;  %6806 = vmatprep.mubr.msk.f32.mxu0 %vm7473_vm7, %v9943_v13 }
 0xd8f   :  { %6792 = vmatmul.mubr.msk.f32.vlgmr.msra.gmra.mxu1 %vm3979_vm11, %v5303_v44  ;;  %6814 = vmatprep.subr.mxu0 %v9943_v13  ;;  %v5309_v41 = vmul.f32 %v7131_v63, %v7115_v4  ;;  %v5922_v4 = vld [vmem:[#allocation15 + $0xb0] sm:$0xff] }
 0xd90   :  { %v7133_v16 = vpop.eup %7132  ;;  %6800 = vmatpush3.msra.mxu1 %v3263_v7  ;;  %6801 = vmatprep.mubr.msk.f32.mxu1 %vm7473_vm7, %v9943_v13 }
 0xd91   :  { %6809 = vmatprep.subr.mxu1 %v9943_v13  ;;  %v5307_v48 = vmul.f32 %v7133_v16, %v7117_v49  ;;  %6807 = vmatmul.mubr.msk.f32.vlgmr.msra.gmra.mxu0 %vm3979_vm11, %v5309_v41  ;;  %v5921_v49 = vld [vmem:[#allocation15 + $0xa8] sm:$0xff] }
 0xd92   :  { %v7135_v46 = vpop.eup %7134  ;;  %6815 = vmatpush3.msra.mxu0 %v9136_v12  ;;  %6816 = vmatprep.mubr.msk.f32.mxu0 %vm7473_vm7, %v9943_v13  ;;  %v3287_v12 = vadd.f32 %v9146_v22, %v9101_v10  ;;  %v5912_v10 = vld [vmem:[#allocation15 + $0x60] sm:$0xff]  ;;  %v5927_v22 = vld [vmem:[#allocation15 + $0xd8] sm:$0xff] }
 0xd93   :  { %6802 = vmatmul.mubr.msk.f32.vlgmr.msra.gmra.mxu1 %vm3979_vm11, %v5307_v48  ;;  %v5313_v9 = vmul.f32 %v7135_v46, %v7119_v14  ;;  %6574 = vmatprep.subr.mxu0 %v5931_v47  ;;  %v5920_v14 = vld [vmem:[#allocation15 + $0xa0] sm:$0xff] }
 0xd94   :  { %v7137_v43 = vpop.eup %7136  ;;  %6810 = vmatpush3.msra.mxu1 %v9124_v23  ;;  %6811 = vmatprep.mubr.msk.f32.mxu1 %vm7473_vm7, %v9943_v13  ;;  %v5913_v23 = vld [vmem:[#allocation15 + $0x68] sm:$0xff] }
 0xd95   :  { %6819 = vmatprep.subr.mxu1 %v9943_v13  ;;  %v5311_v37 = vmul.f32 %v7137_v43, %v7121_v35  ;;  %6817 = vmatmul.mubr.msk.f32.vlgmr.msra.gmra.mxu0 %vm3979_vm11, %v5313_v9  ;;  %v5919_v35 = vld [vmem:[#allocation15 + $0x98] sm:$0xff] }
 0xd96   :  { %6575 = vmatpush3.msra.mxu0 %v5915_v61 }
 0xd97   :  { %6812 = vmatmul.mubr.msk.f32.vlgmr.msra.gmra.mxu1 %vm3979_vm11, %v5311_v37  ;;  %6576 = vmatprep.subr.mxu0 %v5930_v38 }
 0xd98   :  { %v7139_v57 = vpop.eup %7138  ;;  %6820 = vmatpush3.msra.mxu1 %v3287_v12  ;;  %6821 = vmatprep.mubr.msk.f32.mxu1 %vm7473_vm7, %v9943_v13  ;;  %v9980_v12 = vld [vmem:[#allocation60_spill] sm:$0xff] }
 0xd99   :  { %v5315_v33 = vmul.f32 %v7139_v57, %v9378_v34  ;;  %6577 = vmatpush3.msra.mxu0 %v5914_v53  ;;  %6824 = vmatprep.subr.mxu1 %v9943_v13  ;;  %v5918_v34 = vld [vmem:[#allocation15 + $0x90] sm:$0xff] }
 0xd9a   :  { %6578 = vmatprep.subr.mxu0 %v5929_v30 }
 0xd9b   :  { %6822 = vmatmul.mubr.msk.f32.vlgmr.msra.gmra.mxu1 %vm3979_vm11, %v5315_v33  ;;  %6579 = vmatpush3.msra.mxu0 %v5913_v23  ;;  %v9981_v33 = vld [vmem:[#allocation58_spill] sm:$0xff]  ;;  %vm6278_vm11 = vcmask 1043459  }
 0xd9c   :  { %6580 = vmatprep.subr.mxu0 %v5928_v17  ;;  %6856 = vmatprep.mubr.msk.f32.mxu1 %vm7473_vm7, %v9943_v13 }
 0xd9d   :  { %6581 = vmatpush3.msra.mxu0 %v5912_v10 }
 0xd9e   :  { %6582 = vmatprep.subr.mxu0 %v5927_v22 }
 0xd9f   :  { %6583 = vmatpush3.msra.mxu0 %v5911_v20 }
 0xda0   :  { %6584 = vmatprep.subr.mxu0 %v5926_v51 }
 0xda1   :  { %6585 = vmatpush3.msra.mxu0 %v5910_v6 }
 0xda2   :  { %6586 = vmatprep.subr.mxu0 %v5925_v62 }
 0xda3   :  { %6587 = vmatpush3.msra.mxu0 %v5909_v24 }
 0xda4   :  { %6588 = vmatprep.subr.mxu0 %v5924_v36 }
 0xda5   :  { %6589 = vmatpush3.msra.mxu0 %v5908_v40 }
 0xda6   :  { %6590 = vmatprep.subr.mxu0 %v5923_v15 }
 0xda7   :  { %6591 = vmatpush3.msra.mxu0 %v5907_v8  ;;  %v9982_v8 = vld [vmem:[#allocation63_spill] sm:$0xff] }
 0xda8   :  { %6592 = vmatprep.subr.mxu0 %v5922_v4 }
 0xda9   :  { %6593 = vmatpush3.msra.mxu0 %v5906_v54  ;;  %v9983_v54 = vld [vmem:[#allocation61_spill] sm:$0xff] }
 0xdaa   :  { %6594 = vmatprep.subr.mxu0 %v5921_v49 }
 0xdab   :  { %6595 = vmatpush3.msra.mxu0 %v5905_v18 }
 0xdac   :  { %6596 = vmatprep.subr.mxu0 %v5920_v14 }
 0xdad   :  { %6597 = vmatpush3.msra.mxu0 %v5904_v28 }
 0xdae   :  { %6598 = vmatprep.subr.mxu0 %v5919_v35 }
 0xdaf   :  { %6599 = vmatpush3.msra.mxu0 %v5903_v27 }
 0xdb0   :  { %6600 = vmatprep.subr.mxu0 %v5918_v34  ;;  %v9984_v34 = vld [vmem:[#allocation64_spill] sm:$0xff] }
 0xdb1   :  { %6601 = vmatpush3.msra.mxu0 %v5902_v42 }
 0xdb2   :  { %6602 = vmatprep.subr.mxu0 %v5917_v11 }
 0xdb3   :  { %6603 = vmatpush3.msra.mxu0 %v5901_v58 }
 0xdb4   :  { %6604 = vmatprep.subr.mxu0 %v5916_v50 }
 0xdb5   :  { %6605 = vmatpush3.msra.mxu0 %v5900_v56 }
 0xdb6   :  { %6859 = vmatprep.subr.mxu0 %v9943_v13 }
 0xe49   :  { %v5385_v5 = vpop.f32.mrf.mxu0 }
 0xe4a   :  { %6003 = vmatprep.mubr.f32.mxu0 %v5385_v5 }
 0xe4b   :  { %v6788_v29 = vpop.f32.mrf.mxu0  ;;  %6004 = vmatmul.mubr.f32.vlgmr.msra.gmra.mxu0 %v9331_v3 }
 0xe4c   :  { %v9985_v29 = vld [vmem:[#allocation62_spill] sm:$0xff] }
 0xe4d   :  { %v5531_v32 = vpop.f32.mrf.mxu0 }
 0xe4f   :  { %v5458_v55 = vpop.f32.mrf.mxu1  ;;  %v6798_v21 = vpop.f32.mrf.mxu0 }
 0xe50   :  { %6008 = vmatprep.mubr.f32.mxu0 %v5458_v55 }
 0xe51   :  { %v6793_v25 = vpop.f32.mrf.mxu1  ;;  %6009 = vmatmul.mubr.f32.gmra.mxu0 %v9333_v31  ;;  %v5677_v1 = vpop.f32.mrf.mxu0 }
 0xe52   :  { %6013 = vmatprep.mubr.f32.mxu0 %v5531_v32  ;;  %v9986_v25 = vld [vmem:[#allocation65_spill] sm:$0xff] }
 0xe53   :  { %v5604_v39 = vpop.f32.mrf.mxu1  ;;  %v6808_v19 = vpop.f32.mrf.mxu0 }
 0xe55   :  { %v6803_v44 = vpop.f32.mrf.mxu1  ;;  %6014 = vmatmul.mubr.f32.gmra.mxu0 %v9335_v60  ;;  %v5823_v63 = vpop.f32.mrf.mxu0  ;;  %v6506_v60 = vld [vmem:[%s9572_s12] ss:$0 sm:$0xff] }
 0xe56   :  { %6018 = vmatprep.mubr.f32.mxu0 %v5604_v39  ;;  %v6258_v44 = vld [vmem:[#allocation17 + $0x78] sm:$0xff] }
 0xe57   :  { %v5750_v7 = vpop.f32.mrf.mxu1  ;;  %v6818_v41 = vpop.f32.mrf.mxu0  ;;  %6825 = vmatpush3.msra.mxu1 %v6258_v44 }
 0xe58   :  { %6826 = vmatprep.subr.mxu1 %v9943_v13  ;;  %v6255_v41 = vld [vmem:[#allocation17 + $0x60] sm:$0xff] }
 0xe59   :  { %v6813_v16 = vpop.f32.mrf.mxu1  ;;  %6019 = vmatmul.mubr.f32.gmra.mxu0 %v9337_v59 }
 0xe5a   :  { %6023 = vmatprep.mubr.f32.mxu0 %v5677_v1  ;;  %v6254_v16 = vld [vmem:[#allocation17 + $0x58] sm:$0xff] }
 0xe5b   :  { %v5896_v3 = vpop.f32.mrf.mxu1 }
 0xe5d   :  { %v6823_v47 = vpop.f32.mrf.mxu1  ;;  %6024 = vmatmul.mubr.f32.gmra.mxu0 %v9339_v45 }
 0xe5e   :  { %6028 = vmatprep.mubr.f32.mxu0 %v5750_v7  ;;  %v6256_v7 = vld [vmem:[#allocation17 + $0x68] sm:$0xff] }
 0xe5f   :  { %v6252_v47 = vld [vmem:[#allocation17 + $0x48] sm:$0xff] }
 0xe61   :  { %6029 = vmatmul.mubr.f32.gmra.mxu0 %v9341_v52 }
 0xe62   :  { %6033 = vmatprep.mubr.f32.mxu0 %v5823_v63  ;;  %v6257_v63 = vld [vmem:[#allocation17 + $0x70] sm:$0xff] }
 0xe63   :  { %6827 = vmatpush3.msra.mxu1 %v6257_v63 }
 0xe64   :  { %6828 = vmatprep.subr.mxu1 %v9943_v13 }
 0xe65   :  { %6034 = vmatmul.mubr.f32.gmra.mxu0 %v9343_v26  ;;  %6829 = vmatpush3.msra.mxu1 %v6256_v7 }
 0xe66   :  { %6038 = vmatprep.mubr.f32.mxu0 %v5896_v3  ;;  %6830 = vmatprep.subr.mxu1 %v9943_v13  ;;  %v6253_v3 = vld [vmem:[#allocation17 + $0x50] sm:$0xff] }
 0xe67   :  { %6831 = vmatpush3.msra.mxu1 %v6255_v41 }
 0xe68   :  { %6832 = vmatprep.subr.mxu1 %v9943_v13 }
 0xe69   :  { %6039 = vmatmul.mubr.f32.gmra.mxu0 %v9345_v2  ;;  %6833 = vmatpush3.msra.mxu1 %v6254_v16 }
 0xe6a   :  { %6891 = vmatprep.mubr.msk.f32.mxu0 %vm7473_vm7, %v9943_v13  ;;  %6834 = vmatprep.subr.mxu1 %v9943_v13  ;;  %vm6274_vm7 = vcmask 1041409  }
 0xe6b   :  { %6835 = vmatpush3.msra.mxu1 %v6253_v3 }
 0xe6c   :  { %6836 = vmatprep.subr.mxu1 %v9943_v13 }
 0xe6d   :  { %6837 = vmatpush3.msra.mxu1 %v6252_v47 }
 0xe6e   :  { %6838 = vmatprep.subr.mxu1 %v9943_v13 }
 0xf0b   :  { %v6606_v31 = vpop.f32.mrf.mxu0 }
 0xf0d   :  { %v6607_v59 = vpop.f32.mrf.mxu0 }
 0xf0e   :  { %v6608_v48 = vadd.f32 %v6607_v59, %v6606_v31  ;;  %v6251_v31 = vld [vmem:[#allocation17 + $0x40] sm:$0xff]  ;;  %v6249_v59 = vld [vmem:[#allocation17 + $0x30] sm:$0xff] }
 0xf0f   :  { %6839 = vmatpush3.msra.mxu1 %v6251_v31 }
 0xf10   :  { %v6006_v45 = vadd.f32 %v6608_v48, %v6506_v60  ;;  %6840 = vmatprep.subr.mxu1 %v9943_v13  ;;  %v6248_v48 = vld [vmem:[#allocation17 + $0x28] sm:$0xff] }
 0xf11   :  { %v6609_v46 = vpop.f32.mrf.mxu0 }
 0xf12   :  { %v9433_v52 = vadd.f32 %v6006_v45, %v8899_v0  ;;  %v6247_v45 = vld [vmem:[#allocation17 + $0x20] sm:$0xff] }
 0xf13   :  { %v6610_v9 = vpop.f32.mrf.mxu0 }
 0xf14   :  { %v6611_v26 = vadd.f32 %v6610_v9, %v6609_v46  ;;  %6052 = vadd.xlane.f32.xlu1 %v9433_v52  ;;  %v6076_v43 = vmul.f32 %v9433_v52, %v9433_v52  ;;  %v6246_v46 = vld [vmem:[#allocation17 + $0x18] sm:$0xff]  ;;  %v6245_v9 = vld [vmem:[#allocation17 + $0x10] sm:$0xff] }
 0xf15   :  { %v6612_v2 = vpop.f32.mrf.mxu0 }
 0xf16   :  { %v6011_v61 = vadd.f32 %v6611_v26, %v6506_v60  ;;  %v6244_v26 = vld [vmem:[#allocation17 + $0x8] sm:$0xff] }
 0xf17   :  { %v6613_v38 = vpop.f32.mrf.mxu0 }
 0xf18   :  { %v6614_v37 = vadd.f32 %v6613_v38, %v6612_v2  ;;  %6084 = vadd.xlane.f32.xlu1 %v6076_v43  ;;  %v9439_v53 = vadd.f32 %v6011_v61, %v9980_v12  ;;  %v6243_v2 = vld [vmem:[#allocation17] sm:$0xff]  ;;  %v6374_v61 = vld [vmem:[#allocation18 + $0x78] sm:$0xff]  ;;  %v6373_v43 = vld [vmem:[#allocation18 + $0x70] sm:$0xff] }
 0xf19   :  { %v6615_v30 = vpop.f32.mrf.mxu0  ;;  %6860 = vmatpush3.msra.mxu0 %v6374_v61  ;;  %v6372_v38 = vld [vmem:[#allocation18 + $0x68] sm:$0xff]  ;;  %v6370_v12 = vld [vmem:[#allocation18 + $0x58] sm:$0xff] }
 0xf1a   :  { %v6016_v57 = vadd.f32 %v6614_v37, %v6506_v60  ;;  %6054 = vadd.xlane.f32.xlu0 %v9439_v53  ;;  %v6077_v10 = vmul.f32 %v9439_v53, %v9439_v53  ;;  %6861 = vmatprep.subr.mxu0 %v9943_v13  ;;  %v6371_v37 = vld [vmem:[#allocation18 + $0x60] sm:$0xff] }
 0xf1b   :  { %v6616_v0 = vpop.f32.mrf.mxu0  ;;  %6862 = vmatpush3.msra.mxu0 %v6373_v43 }
 0xf1c   :  { %v6617_v23 = vadd.f32 %v6616_v0, %v6615_v30  ;;  %v9443_v17 = vadd.f32 %v6016_v57, %v9981_v33  ;;  %6863 = vmatprep.subr.mxu0 %v9943_v13  ;;  %v6369_v30 = vld [vmem:[#allocation18 + $0x50] sm:$0xff]  ;;  %v6368_v57 = vld [vmem:[#allocation18 + $0x48] sm:$0xff]  ;;  %v6367_v0 = vld [vmem:[#allocation18 + $0x40] sm:$0xff] }
 0xf1d   :  { %v6618_v22 = vpop.f32.mrf.mxu0  ;;  %6864 = vmatpush3.msra.mxu0 %v6372_v38  ;;  %v6365_v33 = vld [vmem:[#allocation18 + $0x30] sm:$0xff] }
 0xf1e   :  { %6056 = vadd.xlane.f32.xlu1 %v9443_v17  ;;  %6086 = vadd.xlane.f32.xlu0 %v6077_v10  ;;  %v6021_v51 = vadd.f32 %v6617_v23, %v6506_v60  ;;  %v6078_v62 = vmul.f32 %v9443_v17, %v9443_v17  ;;  %v6366_v23 = vld [vmem:[#allocation18 + $0x38] sm:$0xff]  ;;  %v6364_v10 = vld [vmem:[#allocation18 + $0x28] sm:$0xff] }
 0xf1f   :  { %v6619_v20 = vpop.f32.mrf.mxu0  ;;  %6865 = vmatprep.subr.mxu0 %v9943_v13 }
 0xf20   :  { %v6620_v6 = vadd.f32 %v6619_v20, %v6618_v22  ;;  %v9454_v49 = vadd.f32 %v6021_v51, %v9983_v54  ;;  %6866 = vmatpush3.msra.mxu0 %v6371_v37  ;;  %v6363_v22 = vld [vmem:[#allocation18 + $0x20] sm:$0xff]  ;;  %v6362_v20 = vld [vmem:[#allocation18 + $0x18] sm:$0xff]  ;;  %v6361_v51 = vld [vmem:[#allocation18 + $0x10] sm:$0xff] }
 0xf21   :  { %v6621_v24 = vpop.f32.mrf.mxu0  ;;  %6867 = vmatprep.subr.mxu0 %v9943_v13 }
 0xf22   :  { %v6026_v36 = vadd.f32 %v6620_v6, %v6506_v60  ;;  %6088 = vadd.xlane.f32.xlu0 %v6078_v62  ;;  %v6079_v27 = vmul.f32 %v9454_v49, %v9454_v49  ;;  %6868 = vmatpush3.msra.mxu0 %v6370_v12 }
 0xf23   :  { %v6622_v40 = vpop.f32.mrf.mxu0  ;;  %6869 = vmatprep.subr.mxu0 %v9943_v13 }
 0xf24   :  { %v6623_v15 = vadd.f32 %v6622_v40, %v6621_v24  ;;  %v9451_v4 = vadd.f32 %v6026_v36, %v9982_v8  ;;  %6870 = vmatpush3.msra.mxu0 %v6369_v30 }
 0xf25   :  { %v6624_v18 = vpop.f32.mrf.mxu0  ;;  %6871 = vmatprep.subr.mxu0 %v9943_v13 }
 0xf26   :  { %v6031_v14 = vadd.f32 %v6623_v15, %v6506_v60  ;;  %6060 = vadd.xlane.f32.xlu1 %v9451_v4  ;;  %6058 = vadd.xlane.f32.xlu0 %v9454_v49  ;;  %v6080_v5 = vmul.f32 %v9451_v4, %v9451_v4 }
 0xf27   :  { %v6625_v28 = vpop.f32.mrf.mxu0  ;;  %6872 = vmatpush3.msra.mxu0 %v6368_v57 }
 0xf28   :  { %v6626_v35 = vadd.f32 %v6625_v28, %v6624_v18  ;;  %v9461_v42 = vadd.f32 %v6031_v14, %v9984_v34  ;;  %6873 = vmatprep.subr.mxu0 %v9943_v13 }
 0xf29   :  { %v6627_v11 = vpop.f32.mrf.mxu0  ;;  %6874 = vmatpush3.msra.mxu0 %v6367_v0  ;;  %v9522_v0 = vld [vmem:[%s9573_s13] ss:$0 sm:$0xff] }
 0xf2a   :  { %v6036_v58 = vadd.f32 %v6626_v35, %v6506_v60  ;;  %6090 = vadd.xlane.f32.xlu0 %v6079_v27  ;;  %6062 = vadd.xlane.f32.xlu1 %v9461_v42  ;;  %v6081_v21 = vmul.f32 %v9461_v42, %v9461_v42 }
 0xf2b   :  { %v6628_v50 = vpop.f32.mrf.mxu0  ;;  %6875 = vmatprep.subr.mxu0 %v9943_v13 }
 0xf2c   :  { %v6629_v56 = vadd.f32 %v6628_v50, %v6627_v11  ;;  %v9467_v32 = vadd.f32 %v6036_v58, %v9985_v29  ;;  %6876 = vmatpush3.msra.mxu0 %v6366_v23 }
 0xf2d   :  { %6877 = vmatprep.subr.mxu0 %v9943_v13 }
 0xf2e   :  { %v6041_v55 = vadd.f32 %v6629_v56, %v6506_v60  ;;  %6092 = vadd.xlane.f32.xlu0 %v6080_v5  ;;  %6064 = vadd.xlane.f32.xlu1 %v9467_v32  ;;  %v6082_v39 = vmul.f32 %v9467_v32, %v9467_v32  ;;  %v6250_v60 = vld [vmem:[#allocation17 + $0x38] sm:$0xff] }
 0xf2f   :  { %6841 = vmatpush3.msra.mxu1 %v6250_v60  ;;  %6878 = vmatpush3.msra.mxu0 %v6365_v33 }
 0xf30   :  { %v9473_v1 = vadd.f32 %v6041_v55, %v9986_v25  ;;  %6842 = vmatprep.subr.mxu1 %v9943_v13  ;;  %6879 = vmatprep.subr.mxu0 %v9943_v13 }
 0xf31   :  { %6843 = vmatpush3.msra.mxu1 %v6249_v59  ;;  %6880 = vmatpush3.msra.mxu0 %v6364_v10 }
 0xf32   :  { %6094 = vadd.xlane.f32.xlu0 %v6081_v21  ;;  %6066 = vadd.xlane.f32.xlu1 %v9473_v1  ;;  %v6083_v19 = vmul.f32 %v9473_v1, %v9473_v1 }
 0xf33   :  { %6844 = vmatprep.subr.mxu1 %v9943_v13  ;;  %6881 = vmatprep.subr.mxu0 %v9943_v13 }
 0xf34   :  { %6845 = vmatpush3.msra.mxu1 %v6248_v48  ;;  %6882 = vmatpush3.msra.mxu0 %v6363_v22 }
 0xf35   :  { %6846 = vmatprep.subr.mxu1 %v9943_v13  ;;  %6883 = vmatprep.subr.mxu0 %v9943_v13 }
 0xf36   :  { %6096 = vadd.xlane.f32.xlu1 %v6082_v39  ;;  %6098 = vadd.xlane.f32.xlu0 %v6083_v19 }
 0xf37   :  { %6847 = vmatpush3.msra.mxu1 %v6247_v45  ;;  %6884 = vmatpush3.msra.mxu0 %v6362_v20 }
 0xf38   :  { %6848 = vmatprep.subr.mxu1 %v9943_v13  ;;  %6885 = vmatprep.subr.mxu0 %v9943_v13 }
 0xf39   :  { %6849 = vmatpush3.msra.mxu1 %v6246_v46  ;;  %6886 = vmatpush3.msra.mxu0 %v6361_v51 }
 0xf3a   :  { %6850 = vmatprep.subr.mxu1 %v9943_v13  ;;  %6887 = vmatprep.subr.mxu0 %v9943_v13 }
 0xf3b   :  { %6851 = vmatpush3.msra.mxu1 %v6245_v9 }
 0xf3c   :  { %6852 = vmatprep.subr.mxu1 %v9943_v13 }
 0xf3d   :  { %6853 = vmatpush3.msra.mxu1 %v6244_v26 }
 0xf3e   :  { %6854 = vmatprep.subr.mxu1 %v9943_v13 }
 0xf3f   :  { %6855 = vmatpush3.msra.mxu1 %v6243_v2 }
 0xf9d   :  { %v6053_v6 = vpop.xlane.xlu1 %6052 }
 0xf9e   :  { %v6068_v62 = vmul.f32 0.03125, %v6053_v6 }
 0xfa0   :  { %v6108_v36 = vmul.f32 %v6068_v62, %v6068_v62  ;;  %v6124_v46 = vsub.f32 %v9433_v52, %v6068_v62 }
 0xfa1   :  { %v6085_v24 = vpop.xlane.xlu1 %6084 }
 0xfa2   :  { %v6100_v40 = vmul.f32 0.03125, %v6085_v24 }
 0xfa3   :  { %v6055_v15 = vpop.xlane.xlu0 %6054 }
 0xfa4   :  { %v6116_v8 = vsub.f32 %v6100_v40, %v6108_v36  ;;  %v6069_v54 = vmul.f32 0.03125, %v6055_v15 }
 0xfa6   :  { %v6132_v18 = vadd.f32 1e-05, %v6116_v8  ;;  %v6109_v35 = vmul.f32 %v6069_v54, %v6069_v54  ;;  %v6125_v9 = vsub.f32 %v9439_v53, %v6069_v54 }
 0xfa7   :  { %v6057_v14 = vpop.xlane.xlu1 %6056  ;;  %v6087_v28 = vpop.xlane.xlu0 %6086 }
 0xfa8   :  { %v6070_v27 = vmul.f32 0.03125, %v6057_v14  ;;  %v6101_v34 = vmul.f32 0.03125, %v6087_v28  ;;  %7140 = vrsqrt.f32 %v6132_v18 }
 0xfaa   :  { %v6117_v11 = vsub.f32 %v6101_v34, %v6109_v35  ;;  %v6110_v50 = vmul.f32 %v6070_v27, %v6070_v27  ;;  %v6126_v23 = vsub.f32 %v9443_v17, %v6070_v27  ;;  %v6508_v17 = vld [vmem:[%s9574_s14] ss:$0 sm:$0xff] }
 0xfab   :  { %v6089_v58 = vpop.xlane.xlu0 %6088 }
 0xfac   :  { %v6133_v56 = vadd.f32 1e-05, %v6117_v11  ;;  %v6102_v5 = vmul.f32 0.03125, %v6089_v58 }
 0xfae   :  { %7142 = vrsqrt.f32 %v6133_v56  ;;  %v6118_v29 = vsub.f32 %v6102_v5, %v6110_v50 }
 0xfaf   :  { %v6061_v55 = vpop.xlane.xlu1 %6060  ;;  %v6059_v21 = vpop.xlane.xlu0 %6058 }
 0xfb0   :  { %v6134_v25 = vadd.f32 1e-05, %v6118_v29  ;;  %v6071_v39 = vmul.f32 0.03125, %v6059_v21  ;;  %v9509_v63 = vmul.f32 0.03125, %v6061_v55 }
 0xfb2   :  { %7144 = vrsqrt.f32 %v6134_v25  ;;  %v6111_v7 = vmul.f32 %v6071_v39, %v6071_v39  ;;  %v6112_v60 = vmul.f32 %v9509_v63, %v9509_v63  ;;  %v6127_v58 = vsub.f32 %v9454_v49, %v6071_v39 }
 0xfb3   :  { %v6091_v19 = vpop.xlane.xlu0 %6090  ;;  %v6063_v44 = vpop.xlane.xlu1 %6062  ;;  %v6128_v21 = vsub.f32 %v9451_v4, %v9509_v63 }
 0xfb4   :  { %v6103_v41 = vmul.f32 0.03125, %v6091_v19  ;;  %v9513_v48 = vmul.f32 0.03125, %v6063_v44 }
 0xfb5   :  { %v7141_v31 = vpop.eup %7140 }
 0xfb6   :  { %v6119_v16 = vsub.f32 %v6103_v41, %v6111_v7  ;;  %v6148_v61 = vmul.f32 %v7141_v31, %v6124_v46  ;;  %v6113_v12 = vmul.f32 %v9513_v48, %v9513_v48  ;;  %v6129_v49 = vsub.f32 %v9461_v42, %v9513_v48 }
 0xfb7   :  { %v6093_v3 = vpop.xlane.xlu0 %6092  ;;  %v6065_v47 = vpop.xlane.xlu1 %6064 }
 0xfb8   :  { %v6135_v59 = vadd.f32 1e-05, %v6119_v16  ;;  %v6104_v45 = vmul.f32 0.03125, %v6093_v3  ;;  %v9524_v52 = vmul.f32 0.03125, %v6065_v47  ;;  %v6163_v51 = vmul.f32 %v9522_v0, %v6148_v61 }
 0xfba   :  { %7146 = vrsqrt.f32 %v6135_v59  ;;  %v6120_v26 = vsub.f32 %v6104_v45, %v6112_v60  ;;  %v6114_v36 = vmul.f32 %v9524_v52, %v9524_v52  ;;  %v6178_v35 = vadd.f32 %v6508_v17, %v6163_v51 }
 0xfbb   :  { %v7143_v2 = vpop.eup %7142  ;;  %v6095_v43 = vpop.xlane.xlu0 %6094  ;;  %v6130_v61 = vsub.f32 %v9467_v32, %v9524_v52 }
 0xfbc   :  { %v6067_v38 = vpop.xlane.xlu1 %6066  ;;  %v6149_v37 = vmul.f32 %v7143_v2, %v6125_v9  ;;  %v6136_v30 = vadd.f32 1e-05, %v6120_v26  ;;  %v6105_v57 = vmul.f32 0.03125, %v6095_v43  ;;  %v6186_v29 = vrot.slane %v6178_v35, 4 }
 0xfbd   :  { %v9526_v53 = vmul.f32 0.03125, %v6067_v38 }
 0xfbe   :  { %7148 = vrsqrt.f32 %v6136_v30  ;;  %v6121_v33 = vsub.f32 %v6105_v57, %v6113_v12  ;;  %v6164_v6 = vmul.f32 %v9522_v0, %v6149_v37  ;;  %v6187_v16 = vadd.f32 %v6186_v29, %v6178_v35 }
 0xfbf   :  { %v7145_v10 = vpop.eup %7144  ;;  %v6099_v20 = vpop.xlane.xlu0 %6098  ;;  %v6115_v40 = vmul.f32 %v9526_v53, %v9526_v53  ;;  %v6131_v42 = vsub.f32 %v9473_v1, %v9526_v53 }
 0xfc0   :  { %v6097_v22 = vpop.xlane.xlu1 %6096  ;;  %v6150_v62 = vmul.f32 %v7145_v10, %v6126_v23  ;;  %v6137_v24 = vadd.f32 1e-05, %v6121_v33  ;;  %v6107_v8 = vmul.f32 0.03125, %v6099_v20  ;;  %v6179_v28 = vadd.f32 %v6508_v17, %v6164_v6 }
 0xfc1   :  { %v6106_v15 = vmul.f32 0.03125, %v6097_v22  ;;  %v6188_v4 = vrot.slane %v6187_v16, 2 }
 0xfc2   :  { %v6165_v54 = vmul.f32 %v9522_v0, %v6150_v62  ;;  %7150 = vrsqrt.f32 %v6137_v24  ;;  %v6123_v14 = vsub.f32 %v6107_v8, %v6115_v40  ;;  %v6192_v56 = vrot.slane %v6179_v28, 4 }
 0xfc3   :  { %v6122_v18 = vsub.f32 %v6106_v15, %v6114_v36  ;;  %v6189_v57 = vadd.f32 %v6188_v4, %v6187_v16 }
 0xfc4   :  { %v6180_v27 = vadd.f32 %v6508_v17, %v6165_v54  ;;  %v6139_v11 = vadd.f32 1e-05, %v6123_v14  ;;  %v6193_v44 = vadd.f32 %v6192_v56, %v6179_v28 }
 0xfc5   :  { %v6138_v34 = vadd.f32 1e-05, %v6122_v18  ;;  %v6190_v36 = vrot.slane %v6189_v57, 1 }
 0xfc6   :  { %v6198_v55 = vrot.slane %v6180_v27, 4  ;;  %v6194_v60 = vrot.slane %v6193_v44, 2 }
 0xfc7   :  { %v7147_v50 = vpop.eup %7146  ;;  %7152 = vrsqrt.f32 %v6138_v34  ;;  %v6191_v34 = vadd.f32 %v6190_v36, %v6189_v57 }
 0xfc8   :  { %v6151_v5 = vmul.f32 %v7147_v50, %v6127_v58  ;;  %7154 = vrsqrt.f32 %v6139_v11  ;;  %v6199_v3 = vadd.f32 %v6198_v55, %v6180_v27  ;;  %v6195_v38 = vadd.f32 %v6194_v60, %v6193_v44 }
 0xfca   :  { %v6166_v25 = vmul.f32 %v9522_v0, %v6151_v5  ;;  %v6200_v63 = vrot.slane %v6199_v3, 2  ;;  %v6196_v32 = vrot.slane %v6195_v38, 1 }
 0xfcb   :  { %v7149_v19 = vpop.eup %7148 }
 0xfcc   :  { %v6181_v7 = vadd.f32 %v6508_v17, %v6166_v25  ;;  %v6152_v41 = vmul.f32 %v7149_v19, %v6128_v21  ;;  %v6201_v23 = vadd.f32 %v6200_v63, %v6199_v3  ;;  %v6197_v18 = vadd.f32 %v6196_v32, %v6195_v38 }
 0xfcd   :  { %v6235_v19 = vmul.f32 0.125, %v6191_v34 }
 0xfce   :  { %v6167_v39 = vmul.f32 %v9522_v0, %v6152_v41  ;;  %v6204_v47 = vrot.slane %v6181_v7, 4  ;;  %v6202_v1 = vrot.slane %v6201_v23, 1  ;;  %v6236_v55 = vmul.f32 0.125, %v6197_v18 }
 0xfcf   :  { %v7151_v31 = vpop.eup %7150 }
 0xfd0   :  { %v6153_v59 = vmul.f32 %v7151_v31, %v6129_v49  ;;  %v6182_v45 = vadd.f32 %v6508_v17, %v6167_v39  ;;  %v6205_v46 = vadd.f32 %v6204_v47, %v6181_v7  ;;  %v6203_v35 = vadd.f32 %v6202_v1, %v6201_v23 }
 0xfd1   :  { %v6275_v49 = vsel %vm6274_vm7, %v6236_v55, %v6235_v19 }
 0xfd2   :  { %v6168_v9 = vmul.f32 %v9522_v0, %v6153_v59  ;;  %v6206_v26 = vrot.slane %v6205_v46, 2  ;;  %v6210_v2 = vrot.slane %v6182_v45, 4  ;;  %v6237_v21 = vmul.f32 0.125, %v6203_v35 }
 0xfd4   :  { %v7153_v43 = vpop.eup %7152  ;;  %v6183_v48 = vadd.f32 %v6508_v17, %v6168_v9  ;;  %v6211_v37 = vadd.f32 %v6210_v2, %v6182_v45  ;;  %v6207_v10 = vadd.f32 %v6206_v26, %v6205_v46  ;;  %v6277_v47 = vsel %vm6276_vm10, %v6237_v21, %v6275_v49  ;;  %v6360_v26 = vld [vmem:[#allocation18 + $0x8] sm:$0xff]  ;;  %v6359_v2 = vld [vmem:[#allocation18] sm:$0xff] }
 0xfd5   :  { %v7155_v12 = vpop.eup %7154  ;;  %v6154_v30 = vmul.f32 %v7153_v43, %v6130_v61  ;;  %6888 = vmatpush3.msra.mxu0 %v6360_v26  ;;  %v6509_v61 = vld [vmem:[%s9576_s16] ss:$0 sm:$0xff] }
 0xfd6   :  { %v6155_v33 = vmul.f32 %v7155_v12, %v6131_v42  ;;  %v6212_v22 = vrot.slane %v6211_v37, 2  ;;  %v6216_v20 = vrot.slane %v6183_v48, 4  ;;  %v6208_v40 = vrot.slane %v6207_v10, 1  ;;  %6889 = vmatprep.subr.mxu0 %v9943_v13 }
 0xfd7   :  { %v6169_v51 = vmul.f32 %v9522_v0, %v6154_v30  ;;  %6890 = vmatpush3.msra.mxu0 %v6359_v2 }
 0xfd8   :  { %v6170_v6 = vmul.f32 %v9522_v0, %v6155_v33  ;;  %v6213_v52 = vadd.f32 %v6212_v22, %v6211_v37  ;;  %v6217_v62 = vadd.f32 %v6216_v20, %v6183_v48  ;;  %v6209_v11 = vadd.f32 %v6208_v40, %v6207_v10 }
 0xfd9   :  { %v6184_v24 = vadd.f32 %v6508_v17, %v6169_v51 }
 0xfda   :  { %v6185_v53 = vadd.f32 %v6508_v17, %v6170_v6  ;;  %v6218_v15 = vrot.slane %v6217_v62, 2  ;;  %v6214_v8 = vrot.slane %v6213_v52, 1  ;;  %v6238_v44 = vmul.f32 0.125, %v6209_v11 }
 0xfdb   :  { %v6222_v54 = vrot.slane %v6184_v24, 4 }
 0xfdc   :  { %v6219_v14 = vadd.f32 %v6218_v15, %v6217_v62  ;;  %v6228_v28 = vrot.slane %v6185_v53, 4  ;;  %v6215_v50 = vadd.f32 %v6214_v8, %v6213_v52  ;;  %v6279_v60 = vsel %vm6278_vm11, %v6238_v44, %v6277_v47 }
 0xfdd   :  { %v6223_v27 = vadd.f32 %v6222_v54, %v6184_v24 }
 0xfde   :  { %v6220_v58 = vrot.slane %v6219_v14, 1  ;;  %v6229_v0 = vadd.f32 %v6228_v28, %v6185_v53  ;;  %v6239_v41 = vmul.f32 0.125, %v6215_v50 }
 0xfdf   :  { %v6224_v56 = vrot.slane %v6223_v27, 2 }
 0xfe0   :  { %v6221_v5 = vadd.f32 %v6220_v58, %v6219_v14  ;;  %v6230_v29 = vrot.slane %v6229_v0, 2  ;;  %v6281_v45 = vsel %vm6280_vm12, %v6239_v41, %v6279_v60 }
 0xfe1   :  { %v6225_v17 = vadd.f32 %v6224_v56, %v6223_v27 }
 0xfe2   :  { %v6231_v25 = vadd.f32 %v6230_v29, %v6229_v0  ;;  %v6240_v3 = vmul.f32 0.125, %v6221_v5 }
 0xfe3   :  { %v6226_v7 = vrot.slane %v6225_v17, 1 }
 0xfe4   :  { %v6232_v16 = vrot.slane %v6231_v25, 1  ;;  %v6283_v4 = vsel %vm6282_vm13, %v6240_v3, %v6281_v45 }
 0xfe5   :  { %v6227_v39 = vadd.f32 %v6226_v7, %v6225_v17 }
 0xfe6   :  { %v6233_v31 = vadd.f32 %v6232_v16, %v6231_v25 }
 0xfe7   :  { %v6241_v59 = vmul.f32 0.125, %v6227_v39 }
 0xfe8   :  { %v6242_v46 = vmul.f32 0.125, %v6233_v31 }
 0xfe9   :  { %v6285_v63 = vsel %vm6284_vm14, %v6241_v59, %v6283_v4 }
 0xfea   :  { %v6287_v9 = vsel %vm6286_vm15, %v6242_v46, %v6285_v63 }
 0xfeb   :  { %6857 = vmatmul.mubr.f32.vlgmr.msra.gmra.mxu1 %v6287_v9 }
0x10ab   :  { %v6355_v43 = vpop.f32.mrf.mxu1 }
0x10ac   :  { %v6356_v42 = vadd.f32 %v6509_v61, %v6355_v43 }
0x10ad   :  { %v6858_v48 = vpop.f32.mrf.mxu1 }
0x10ae   :  { %6892 = vmatmul.mubr.f32.vlgmr.msra.gmra.mxu0 %v6356_v42 }
0x116e   :  { %v6441_v38 = vpop.f32.mrf.mxu0 }
0x116f   :  { %6445 = vst [vmem:[#allocation20] sm:$0xff] %v6441_v38 }
0x1170   :  { %v6893_v37 = vpop.f32.mrf.mxu0 }
0x1171   :  { %7432 = shalt.err (!%p7429_p12)
}
0x1172   :  { %6455 = dma.vmem_to_hbm [thread:$0]  %s6453_s22, 128, %s9578_s18, [#allocation5]  }
0x1173   :  { %7453 = dma.done.wait [#allocation5], 128  }
0x1174   :  { %7454 = vsyncadd [#allocation5], 4294967168 }
0x1175   :  { %6459 = vsyncpa [#allocation4], 1 }
0x1176   :  { %6460 = vsyncpa [#allocation7], 1 }
0x1177   :  { %6461 = vsyncpa [#allocation10], 1 }
0x1178   :  { %6462 = vsyncpa [#allocation13], 1 }
0x1179   :  { %6463 = vsyncpa [#allocation16], 1 }
0x117a   :  { %6464 = vsyncpa [#allocation19], 1 }
0x117b   :  { %6465 = vsyncpa [#allocation5], 1 }

</bundles_post_ra>
